<compile_context>
chip_gen: v7x
topology: tpu7x:2x2x1
jax: 0.10.0
libtpu: 0.0.40
codegen_flags: <defaults>
</compile_context>

<pallas_src>
import functools

import jax
import jax.numpy as jnp
from jax import lax
from jax.experimental import pallas as pl
from jax.experimental.pallas import tpu as pltpu

_LANE = 128
_SUBLANE = 8


def _round_up(x, m):
    return ((x + m - 1) // m) * m


def _physical_vmem_bytes():
    """Best-effort per-core VMEM query; conservative fallback (v7x = 64 MiB)."""
    try:
        info = pltpu.get_tpu_info()
        for name in ("vmem_capacity_bytes", "vmem_size_bytes", "vmem_bytes"):
            v = getattr(info, name, None)
            if v:
                return int(v)
    except Exception:
        pass
    return 64 << 20


def _tile_vmem_bytes(row_tile, W, pad, cin_pad, cout_pad, n_rates, cs, out_isize):
    """Per-grid-step VMEM footprint model used to derive row_tile."""
    halo_rows = row_tile + 2 * pad
    w_padded = W + 2 * pad
    xbuf = 2 * halo_rows * w_padded * cin_pad * cs           # halo double buffer
    outb = 2 * row_tile * W * cout_pad * out_isize           # pipelined out blocks
    sub = row_tile * W * 3 * cin_pad * cs                    # one (rate,ky) sub-slab
    acc = row_tile * W * cout_pad * 4                        # f32 accumulator
    wgt = 9 * n_rates * cin_pad * cout_pad * cs              # fused weights (1 buffer)
    return xbuf + outb + sub + acc + wgt + cout_pad * 4


def _aspp_kernel(x_hbm, w_ref, b_ref, o_ref, xbuf, sem, *,
                 rates, row_tile, W, pad, cin_pad):
    """One (image, row-tile) step of the summed dilated 3x3 convolutions.

    x_hbm : (N, Hpad+2P, W+2P, Cin_pad)  padded NHWC input, resident in HBM
    w_ref : (9*R*Cin_pad, Cout_pad)      fused im2col weights (whole-array VMEM)
    b_ref : (1, Cout_pad)                summed bias, f32     (whole-array VMEM)
    o_ref : (1, TH, W, Cout_pad)         output row tile      (VMEM block)
    xbuf  : (2, TH+2P, W+2P, Cin_pad)    double-buffered halo window (scratch)
    sem   : (2,)                         DMA completion semaphores
    """
    n = pl.program_id(0)
    t = pl.program_id(1)
    n_tiles = pl.num_programs(1)
    halo_rows = row_tile + 2 * pad

    def window_copy(tile_idx, slot_idx):
        row0 = pl.multiple_of(tile_idx * row_tile, row_tile)
        return pltpu.make_async_copy(
            x_hbm.at[n, pl.ds(row0, halo_rows)],
            xbuf.at[slot_idx],
            sem.at[slot_idx])

    slot = t % 2

    # First row tile of this image: fetch its own halo window.  Correct no
    # matter how the "parallel" batch axis is split across cores, because the
    # row-tile axis is "arbitrary" (sequential per image on one core).
    @pl.when(t == 0)
    def _():
        window_copy(t, slot).start()

    # Prefetch the next row tile of the SAME image so its halo DMA overlaps
    # this tile's matmuls.
    # TODO(synk): also prefetch (n+1, t=0) at the last tile to hide the
    # per-image bubble; needs a per-core "already issued" marker to remain
    # correct while the batch axis is parallel.
    @pl.when(t + 1 < n_tiles)
    def _():
        window_copy(t + 1, (t + 1) % 2).start()

    window_copy(t, slot).wait()

    cur = xbuf.at[slot]
    m = row_tile * W
    cout_pad = o_ref.shape[-1]
    kchunk = 3 * cin_pad

    # K-chunked im2col: one lane-aligned (TH*W, 3*Cin_pad) sub-slab per
    # (rate, ky), each consumed immediately by one MXU matmul with f32
    # accumulation.  Peak VMEM is bounded by a single sub-slab + accumulator.
    acc = jnp.zeros((m, cout_pad), jnp.float32)
    chunk = 0
    for rate in rates:                           # static python loops -> unrolled
        for ky in range(3):
            dy = pad + (ky - 1) * rate
            taps = []
            for kx in range(3):
                dx = pad + (kx - 1) * rate
                taps.append(cur[dy:dy + row_tile, dx:dx + W, :])
            sub = jnp.concatenate(taps, axis=-1).reshape(m, kchunk)
            wk = w_ref[chunk * kchunk:(chunk + 1) * kchunk, :]
            acc = acc + jnp.dot(sub, wk, preferred_element_type=jnp.float32)
            chunk += 1

    acc = acc + b_ref[...]                       # (1, Cout_pad) broadcast, f32
    o_ref[...] = acc.reshape(o_ref.shape).astype(o_ref.dtype)


def aspp_forward(x_nchw, weights, biases, rates, *, row_tile=None,
                 compute_dtype=jnp.bfloat16):
    """Sum of dilated 3x3 convs (DeepLabv2 ASPP head).

    x_nchw : (N, Cin, H, W)
    weights: (R, 3, 3, Cin, Cout)   per-rate HWIO kernels
    biases : (R, Cout)
    """
    N, Cin, H, W = map(int, x_nchw.shape)
    R = len(rates)
    Cout = int(weights.shape[-1])
    pad = int(max(rates))

    cs = jnp.dtype(compute_dtype).itemsize
    out_dtype = jnp.float32
    out_isize = jnp.dtype(out_dtype).itemsize
    cin_pad = _round_up(Cin, _LANE)              # lane-aligned K segments
    cout_pad = _round_up(Cout, _LANE)            # lane-dense output stores
    k_dim = 9 * R * cin_pad

    # ---- generation-aware VMEM budget & row tiling ---------------------------
    phys = _physical_vmem_bytes()
    vmem_limit = min(phys * 3 // 4, 100 << 20)   # ~48 MiB v7x, ~96 MiB v5e/v6e
    tile_budget = vmem_limit - (8 << 20)         # headroom for Mosaic internals

    max_tile = _round_up(H, _SUBLANE)
    if row_tile is None:
        row_tile = _SUBLANE
        for cand in range(_SUBLANE, min(max_tile, 256) + 1, _SUBLANE):
            if _tile_vmem_bytes(cand, W, pad, cin_pad, cout_pad, R, cs,
                                out_isize) <= tile_budget:
                row_tile = cand
    row_tile = max(_SUBLANE, min(int(row_tile), max_tile))

    footprint = _tile_vmem_bytes(row_tile, W, pad, cin_pad, cout_pad, R, cs,
                                 out_isize)
    if footprint + (8 << 20) > vmem_limit:
        # Tile (caller-forced or minimum) exceeds the budget: raise the limit
        # explicitly rather than silently clamping, capped below physical VMEM.
        vmem_limit = min(footprint + (8 << 20), phys * 9 // 10)

    n_tiles = int(pl.cdiv(H, row_tile))
    h_pad = n_tiles * row_tile                   # ragged last tile -> pad + slice
    halo_rows = row_tile + 2 * pad
    w_padded = W + 2 * pad

    # ---- plain-JAX glue -------------------------------------------------------
    # NCHW -> NHWC, bf16 compute dtype, zero-pad for the largest dilation plus
    # the ragged-row remainder, and lane-pad the channel dim.
    x_nhwc = jnp.transpose(x_nchw, (0, 2, 3, 1)).astype(compute_dtype)
    x_pad = jnp.pad(
        x_nhwc,
        ((0, 0), (pad, pad + (h_pad - H)), (pad, pad), (0, cin_pad - Cin)))

    # Fused im2col weights: (R,3,3,Cin,Cout) -> (9*R*Cin_pad, Cout_pad); row
    # order (rate, ky, kx, cin) matches the kernel's sub-slab concatenation.
    w_f = weights.astype(compute_dtype)
    w_f = jnp.pad(w_f, ((0, 0), (0, 0), (0, 0),
                        (0, cin_pad - Cin), (0, cout_pad - Cout)))
    w_fused = w_f.reshape(k_dim, cout_pad)

    bias_sum = jnp.sum(biases.astype(jnp.float32), axis=0)
    bias_sum = jnp.pad(bias_sum, (0, cout_pad - Cout)).reshape(1, cout_pad)

    # ---- cost hints -----------------------------------------------------------
    flops = int(2 * N * h_pad * W * k_dim * cout_pad)
    bytes_accessed = int(
        N * n_tiles * halo_rows * w_padded * cin_pad * cs     # halo re-reads
        + k_dim * cout_pad * cs + cout_pad * 4                # weights + bias
        + N * h_pad * W * cout_pad * out_isize)               # output writes

    kernel = functools.partial(
        _aspp_kernel, rates=tuple(int(r) for r in rates),
        row_tile=row_tile, W=W, pad=pad, cin_pad=cin_pad)

    out_padded = pl.pallas_call(
        kernel,
        out_shape=jax.ShapeDtypeStruct((N, h_pad, W, cout_pad), out_dtype),
        grid_spec=pltpu.PrefetchScalarGridSpec(
            num_scalar_prefetch=0,
            grid=(N, n_tiles),
            in_specs=[
                pl.BlockSpec(memory_space=pl.ANY),                    # x in HBM
                pl.BlockSpec(memory_space=pltpu.MemorySpace.VMEM),    # weights (1 buf)
                pl.BlockSpec(memory_space=pltpu.MemorySpace.VMEM),    # bias   (1 buf)
            ],
            out_specs=pl.BlockSpec((1, row_tile, W, cout_pad),
                                   lambda n, t: (n, t, 0, 0)),
            scratch_shapes=[
                pltpu.VMEM((2, halo_rows, w_padded, cin_pad), compute_dtype),
                pltpu.SemaphoreType.DMA((2,)),
            ],
        ),
        compiler_params=pltpu.CompilerParams(
            # TODO(synk): for N==1 on v7x, add a leading row-split "parallel"
            # axis so both TensorCores are used.
            dimension_semantics=("parallel", "arbitrary"),
            vmem_limit_bytes=int(vmem_limit),
        ),
        cost_estimate=pl.CostEstimate(
            flops=flops, transcendentals=0, bytes_accessed=bytes_accessed),
    )(x_pad, w_fused, bias_sum)

    out_nhwc = out_padded[:, :H, :, :Cout]            # drop row / lane padding
    return jnp.transpose(out_nhwc, (0, 3, 1, 2))      # back to NCHW


def aspp_reference(x_nchw, weights, biases, rates):
    """Pure-JAX (f32) reference matching the PyTorch module."""
    out = None
    for r_idx, rate in enumerate(rates):
        w_oihw = jnp.transpose(weights[r_idx], (3, 2, 0, 1))  # (Cout, Cin, 3, 3)
        y = lax.conv_general_dilated(
            x_nchw, w_oihw, window_strides=(1, 1),
            padding=((rate, rate), (rate, rate)),
            rhs_dilation=(rate, rate),
            dimension_numbers=("NCHW", "OIHW", "NCHW"))
        y = y + biases[r_idx][None, :, None, None]
        out = y if out is None else out + y
    return out


if __name__ == "__main__":
    # Small shapes consistent with the module's forward: NCHW input.
    N, Cin, H, W = 2, 4, 16, 16
    Cout = 8
    rates = (1, 2, 4)  # one Conv2d per rate, summed

    key = jax.random.PRNGKey(0)
    kx, kw, kb = jax.random.split(key, 3)
    x = jax.random.normal(kx, (N, Cin, H, W), dtype=jnp.float32)

    # std=0.01 weight init (as in the module); small nonzero bias to exercise
    # the bias path (module init is 0; forward semantics are identical).
    weights = 0.01 * jax.random.normal(
        kw, (len(rates), 3, 3, Cin, Cout), dtype=jnp.float32)
    biases = 0.1 * jax.random.normal(kb, (len(rates), Cout), dtype=jnp.float32)

    # row_tile=8 forces multiple row tiles so the double-buffered halo DMA and
    # prefetch path are exercised even at this small spatial size.
    out = aspp_forward(x, weights, biases, rates, row_tile=8)
    out = jax.block_until_ready(out)

    ref = aspp_reference(x, weights, biases, rates)
    assert out.shape == (N, Cout, H, W), out.shape
    # bf16 compute dtype -> relaxed tolerance vs. the f32 reference.
    max_err = float(jnp.max(jnp.abs(out - ref)))
    assert jnp.allclose(out, ref, atol=2e-2, rtol=2e-2), max_err

    print("KERNEL_OK")
</pallas_src>

<mosaic_0001>
module attributes {stable_mosaic.version = 11 : i64} {
  func.func @_aspp_kernel(%arg0: i32, %arg1: i32, %arg2: memref<2x24x24x128xbf16, #tpu.memory_space<any>>, %arg3: memref<3456x128xbf16, #tpu.memory_space<vmem>>, %arg4: memref<1x128xf32, #tpu.memory_space<vmem>>, %arg5: memref<1x8x16x128xf32, #tpu.memory_space<vmem>>, %arg6: memref<2x16x24x128xbf16, #tpu.memory_space<vmem>>, %arg7: memref<2x!tpu.dma_semaphore, #tpu.memory_space<semaphore_mem>>) attributes {dimension_semantics = [#tpu.dimension_semantics<parallel>, #tpu.dimension_semantics<arbitrary>], iteration_bounds = array<i64: 2, 2>, scalar_prefetch = 0 : i64, scratch_operands = 2 : i64, tpu.core_type = #tpu.core_type<tc>, window_params = [{}, {pipeline_mode = #tpu.pipeline_mode<synchronous>, transform_indices = @transform_1, window_bounds = array<i64: 3456, 128>}, {pipeline_mode = #tpu.pipeline_mode<synchronous>, transform_indices = @transform_2, window_bounds = array<i64: 1, 128>}, {transform_indices = @transform_3, window_bounds = array<i64: 1, 8, 16, 128>}]} {
    %c2_i32 = arith.constant 2 : i32
    %c0_i32 = arith.constant 0 : i32
    %0 = arith.cmpi eq, %c2_i32, %c0_i32 : i32
    %c1_i32 = arith.constant 1 : i32
    %1 = arith.select %0, %c1_i32, %c2_i32 : i32
    %2 = arith.remsi %arg1, %1 : i32
    %c0_i32_0 = arith.constant 0 : i32
    %3 = arith.cmpi ne, %2, %c0_i32_0 : i32
    %c0_i32_1 = arith.constant 0 : i32
    %4 = arith.cmpi slt, %2, %c0_i32_1 : i32
    %c0_i32_2 = arith.constant 0 : i32
    %5 = arith.cmpi slt, %1, %c0_i32_2 : i32
    %6 = arith.xori %4, %5 : i1
    %7 = arith.andi %6, %3 : i1
    %8 = arith.addi %2, %1 : i32
    %9 = arith.select %7, %8, %2 : i32
    %c0_i32_3 = arith.constant 0 : i32
    %10 = arith.cmpi eq, %arg1, %c0_i32_3 : i32
    %11 = arith.extui %10 : i1 to i32
    %c0_i32_4 = arith.constant 0 : i32
    %12 = arith.cmpi ne, %11, %c0_i32_4 : i32
    scf.if %12 {
      %c8_i32_193 = arith.constant 8 : i32
      %157 = arith.muli %arg1, %c8_i32_193 : i32
      %158 = tpu.assume_multiple %157, 8 : i32
      %c0_i32_194 = arith.constant 0 : i32
      %c0_i32_195 = arith.constant 0 : i32
      %159 = tpu.memref_slice %arg2[%arg0, %158, %c0_i32_194, %c0_i32_195] : memref<2x24x24x128xbf16, #tpu.memory_space<any>> -> memref<1x16x24x128xbf16, #tpu.memory_space<any>>
      %160 = tpu.memref_squeeze %159 : memref<1x16x24x128xbf16, #tpu.memory_space<any>> -> memref<16x24x128xbf16, #tpu.memory_space<any>>
      %c0_i32_196 = arith.constant 0 : i32
      %c0_i32_197 = arith.constant 0 : i32
      %c0_i32_198 = arith.constant 0 : i32
      %161 = tpu.memref_slice %arg6[%9, %c0_i32_196, %c0_i32_197, %c0_i32_198] : memref<2x16x24x128xbf16, #tpu.memory_space<vmem>> -> memref<1x16x24x128xbf16, #tpu.memory_space<vmem>>
      %162 = tpu.memref_squeeze %161 : memref<1x16x24x128xbf16, #tpu.memory_space<vmem>> -> memref<16x24x128xbf16, #tpu.memory_space<vmem>>
      %163 = tpu.memref_slice %arg7[%9] : memref<2x!tpu.dma_semaphore, #tpu.memory_space<semaphore_mem>> -> memref<1x!tpu.dma_semaphore, #tpu.memory_space<semaphore_mem>>
      %164 = tpu.memref_squeeze %163 : memref<1x!tpu.dma_semaphore, #tpu.memory_space<semaphore_mem>> -> memref<!tpu.dma_semaphore, #tpu.memory_space<semaphore_mem>>
      tpu.enqueue_dma source(%160 : memref<16x24x128xbf16, #tpu.memory_space<any>>) target(%162 : memref<16x24x128xbf16, #tpu.memory_space<vmem>>) target_semaphore(%164 : memref<!tpu.dma_semaphore, #tpu.memory_space<semaphore_mem>>)
    } else {
    }
    %c1_i32_5 = arith.constant 1 : i32
    %13 = arith.addi %arg1, %c1_i32_5 : i32
    %c2_i32_6 = arith.constant 2 : i32
    %14 = arith.cmpi slt, %13, %c2_i32_6 : i32
    %15 = arith.extui %14 : i1 to i32
    %c0_i32_7 = arith.constant 0 : i32
    %16 = arith.cmpi ne, %15, %c0_i32_7 : i32
    scf.if %16 {
      %c1_i32_193 = arith.constant 1 : i32
      %157 = arith.addi %arg1, %c1_i32_193 : i32
      %c1_i32_194 = arith.constant 1 : i32
      %158 = arith.addi %arg1, %c1_i32_194 : i32
      %c2_i32_195 = arith.constant 2 : i32
      %c0_i32_196 = arith.constant 0 : i32
      %159 = arith.cmpi eq, %c2_i32_195, %c0_i32_196 : i32
      %c1_i32_197 = arith.constant 1 : i32
      %160 = arith.select %159, %c1_i32_197, %c2_i32_195 : i32
      %161 = arith.remsi %158, %160 : i32
      %c0_i32_198 = arith.constant 0 : i32
      %162 = arith.cmpi ne, %161, %c0_i32_198 : i32
      %c0_i32_199 = arith.constant 0 : i32
      %163 = arith.cmpi slt, %161, %c0_i32_199 : i32
      %c0_i32_200 = arith.constant 0 : i32
      %164 = arith.cmpi slt, %160, %c0_i32_200 : i32
      %165 = arith.xori %163, %164 : i1
      %166 = arith.andi %165, %162 : i1
      %167 = arith.addi %161, %160 : i32
      %168 = arith.select %166, %167, %161 : i32
      %c8_i32_201 = arith.constant 8 : i32
      %169 = arith.muli %157, %c8_i32_201 : i32
      %170 = tpu.assume_multiple %169, 8 : i32
      %c0_i32_202 = arith.constant 0 : i32
      %c0_i32_203 = arith.constant 0 : i32
      %171 = tpu.memref_slice %arg2[%arg0, %170, %c0_i32_202, %c0_i32_203] : memref<2x24x24x128xbf16, #tpu.memory_space<any>> -> memref<1x16x24x128xbf16, #tpu.memory_space<any>>
      %172 = tpu.memref_squeeze %171 : memref<1x16x24x128xbf16, #tpu.memory_space<any>> -> memref<16x24x128xbf16, #tpu.memory_space<any>>
      %c0_i32_204 = arith.constant 0 : i32
      %c0_i32_205 = arith.constant 0 : i32
      %c0_i32_206 = arith.constant 0 : i32
      %173 = tpu.memref_slice %arg6[%168, %c0_i32_204, %c0_i32_205, %c0_i32_206] : memref<2x16x24x128xbf16, #tpu.memory_space<vmem>> -> memref<1x16x24x128xbf16, #tpu.memory_space<vmem>>
      %174 = tpu.memref_squeeze %173 : memref<1x16x24x128xbf16, #tpu.memory_space<vmem>> -> memref<16x24x128xbf16, #tpu.memory_space<vmem>>
      %175 = tpu.memref_slice %arg7[%168] : memref<2x!tpu.dma_semaphore, #tpu.memory_space<semaphore_mem>> -> memref<1x!tpu.dma_semaphore, #tpu.memory_space<semaphore_mem>>
      %176 = tpu.memref_squeeze %175 : memref<1x!tpu.dma_semaphore, #tpu.memory_space<semaphore_mem>> -> memref<!tpu.dma_semaphore, #tpu.memory_space<semaphore_mem>>
      tpu.enqueue_dma source(%172 : memref<16x24x128xbf16, #tpu.memory_space<any>>) target(%174 : memref<16x24x128xbf16, #tpu.memory_space<vmem>>) target_semaphore(%176 : memref<!tpu.dma_semaphore, #tpu.memory_space<semaphore_mem>>)
    } else {
    }
    %c8_i32 = arith.constant 8 : i32
    %17 = arith.muli %arg1, %c8_i32 : i32
    %18 = tpu.assume_multiple %17, 8 : i32
    %c0_i32_8 = arith.constant 0 : i32
    %c0_i32_9 = arith.constant 0 : i32
    %19 = tpu.memref_slice %arg2[%arg0, %18, %c0_i32_8, %c0_i32_9] : memref<2x24x24x128xbf16, #tpu.memory_space<any>> -> memref<1x16x24x128xbf16, #tpu.memory_space<any>>
    %20 = tpu.memref_squeeze %19 : memref<1x16x24x128xbf16, #tpu.memory_space<any>> -> memref<16x24x128xbf16, #tpu.memory_space<any>>
    %c0_i32_10 = arith.constant 0 : i32
    %c0_i32_11 = arith.constant 0 : i32
    %c0_i32_12 = arith.constant 0 : i32
    %21 = tpu.memref_slice %arg6[%9, %c0_i32_10, %c0_i32_11, %c0_i32_12] : memref<2x16x24x128xbf16, #tpu.memory_space<vmem>> -> memref<1x16x24x128xbf16, #tpu.memory_space<vmem>>
    %22 = tpu.memref_squeeze %21 : memref<1x16x24x128xbf16, #tpu.memory_space<vmem>> -> memref<16x24x128xbf16, #tpu.memory_space<vmem>>
    %23 = tpu.memref_slice %arg7[%9] : memref<2x!tpu.dma_semaphore, #tpu.memory_space<semaphore_mem>> -> memref<1x!tpu.dma_semaphore, #tpu.memory_space<semaphore_mem>>
    %24 = tpu.memref_squeeze %23 : memref<1x!tpu.dma_semaphore, #tpu.memory_space<semaphore_mem>> -> memref<!tpu.dma_semaphore, #tpu.memory_space<semaphore_mem>>
    tpu.wait_dma2 semaphore(%24 : memref<!tpu.dma_semaphore, #tpu.memory_space<semaphore_mem>>) src(%20 : memref<16x24x128xbf16, #tpu.memory_space<any>>) dst(%22 : memref<16x24x128xbf16, #tpu.memory_space<vmem>>)
    %cst = arith.constant 0.000000e+00 : f32
    %25 = vector.broadcast %cst : f32 to vector<128x128xf32>
    %c0_i32_13 = arith.constant 0 : i32
    %c0_i32_14 = arith.constant 0 : i32
    %c0_i32_15 = arith.constant 0 : i32
    %26 = tpu.memref_slice %arg6[%9, %c0_i32_13, %c0_i32_14, %c0_i32_15] : memref<2x16x24x128xbf16, #tpu.memory_space<vmem>> -> memref<1x16x24x128xbf16, #tpu.memory_space<vmem>>
    %27 = tpu.memref_squeeze %26 : memref<1x16x24x128xbf16, #tpu.memory_space<vmem>> -> memref<16x24x128xbf16, #tpu.memory_space<vmem>>
    %c3 = arith.constant 3 : index
    %c3_16 = arith.constant 3 : index
    %c0 = arith.constant 0 : index
    %28 = vector.load %27[%c3, %c3_16, %c0] : memref<16x24x128xbf16, #tpu.memory_space<vmem>>, vector<8x16x128xbf16>
    %c0_i32_17 = arith.constant 0 : i32
    %c0_i32_18 = arith.constant 0 : i32
    %c0_i32_19 = arith.constant 0 : i32
    %29 = tpu.memref_slice %arg6[%9, %c0_i32_17, %c0_i32_18, %c0_i32_19] : memref<2x16x24x128xbf16, #tpu.memory_space<vmem>> -> memref<1x16x24x128xbf16, #tpu.memory_space<vmem>>
    %30 = tpu.memref_squeeze %29 : memref<1x16x24x128xbf16, #tpu.memory_space<vmem>> -> memref<16x24x128xbf16, #tpu.memory_space<vmem>>
    %c3_20 = arith.constant 3 : index
    %c4 = arith.constant 4 : index
    %c0_21 = arith.constant 0 : index
    %31 = vector.load %30[%c3_20, %c4, %c0_21] : memref<16x24x128xbf16, #tpu.memory_space<vmem>>, vector<8x16x128xbf16>
    %c0_i32_22 = arith.constant 0 : i32
    %c0_i32_23 = arith.constant 0 : i32
    %c0_i32_24 = arith.constant 0 : i32
    %32 = tpu.memref_slice %arg6[%9, %c0_i32_22, %c0_i32_23, %c0_i32_24] : memref<2x16x24x128xbf16, #tpu.memory_space<vmem>> -> memref<1x16x24x128xbf16, #tpu.memory_space<vmem>>
    %33 = tpu.memref_squeeze %32 : memref<1x16x24x128xbf16, #tpu.memory_space<vmem>> -> memref<16x24x128xbf16, #tpu.memory_space<vmem>>
    %c3_25 = arith.constant 3 : index
    %c5 = arith.constant 5 : index
    %c0_26 = arith.constant 0 : index
    %34 = vector.load %33[%c3_25, %c5, %c0_26] : memref<16x24x128xbf16, #tpu.memory_space<vmem>>, vector<8x16x128xbf16>
    %35 = tpu.concatenate %28, %31, %34 in 2 : vector<8x16x128xbf16>, vector<8x16x128xbf16>, vector<8x16x128xbf16> -> vector<8x16x384xbf16>
    %36 = vector.shape_cast %35 : vector<8x16x384xbf16> to vector<128x384xbf16>
    %c0_27 = arith.constant 0 : index
    %c0_28 = arith.constant 0 : index
    %37 = vector.load %arg3[%c0_27, %c0_28] : memref<3456x128xbf16, #tpu.memory_space<vmem>>, vector<384x128xbf16>
    %cst_29 = arith.constant dense<0.000000e+00> : vector<128x128xf32>
    %38 = tpu.matmul %36, %37, %cst_29 {dimension_numbers = #tpu.dot_dimension_numbers<[1], [0], [0], [1], [0, 0, 1, 1], [], []>} : vector<128x384xbf16>, vector<384x128xbf16>, vector<128x128xf32> -> vector<128x128xf32>
    %39 = arith.addf %25, %38 : vector<128x128xf32>
    %c0_i32_30 = arith.constant 0 : i32
    %c0_i32_31 = arith.constant 0 : i32
    %c0_i32_32 = arith.constant 0 : i32
    %40 = tpu.memref_slice %arg6[%9, %c0_i32_30, %c0_i32_31, %c0_i32_32] : memref<2x16x24x128xbf16, #tpu.memory_space<vmem>> -> memref<1x16x24x128xbf16, #tpu.memory_space<vmem>>
    %41 = tpu.memref_squeeze %40 : memref<1x16x24x128xbf16, #tpu.memory_space<vmem>> -> memref<16x24x128xbf16, #tpu.memory_space<vmem>>
    %c4_33 = arith.constant 4 : index
    %c3_34 = arith.constant 3 : index
    %c0_35 = arith.constant 0 : index
    %42 = vector.load %41[%c4_33, %c3_34, %c0_35] : memref<16x24x128xbf16, #tpu.memory_space<vmem>>, vector<8x16x128xbf16>
    %c0_i32_36 = arith.constant 0 : i32
    %c0_i32_37 = arith.constant 0 : i32
    %c0_i32_38 = arith.constant 0 : i32
    %43 = tpu.memref_slice %arg6[%9, %c0_i32_36, %c0_i32_37, %c0_i32_38] : memref<2x16x24x128xbf16, #tpu.memory_space<vmem>> -> memref<1x16x24x128xbf16, #tpu.memory_space<vmem>>
    %44 = tpu.memref_squeeze %43 : memref<1x16x24x128xbf16, #tpu.memory_space<vmem>> -> memref<16x24x128xbf16, #tpu.memory_space<vmem>>
    %c4_39 = arith.constant 4 : index
    %c4_40 = arith.constant 4 : index
    %c0_41 = arith.constant 0 : index
    %45 = vector.load %44[%c4_39, %c4_40, %c0_41] : memref<16x24x128xbf16, #tpu.memory_space<vmem>>, vector<8x16x128xbf16>
    %c0_i32_42 = arith.constant 0 : i32
    %c0_i32_43 = arith.constant 0 : i32
    %c0_i32_44 = arith.constant 0 : i32
    %46 = tpu.memref_slice %arg6[%9, %c0_i32_42, %c0_i32_43, %c0_i32_44] : memref<2x16x24x128xbf16, #tpu.memory_space<vmem>> -> memref<1x16x24x128xbf16, #tpu.memory_space<vmem>>
    %47 = tpu.memref_squeeze %46 : memref<1x16x24x128xbf16, #tpu.memory_space<vmem>> -> memref<16x24x128xbf16, #tpu.memory_space<vmem>>
    %c4_45 = arith.constant 4 : index
    %c5_46 = arith.constant 5 : index
    %c0_47 = arith.constant 0 : index
    %48 = vector.load %47[%c4_45, %c5_46, %c0_47] : memref<16x24x128xbf16, #tpu.memory_space<vmem>>, vector<8x16x128xbf16>
    %49 = tpu.concatenate %42, %45, %48 in 2 : vector<8x16x128xbf16>, vector<8x16x128xbf16>, vector<8x16x128xbf16> -> vector<8x16x384xbf16>
    %50 = vector.shape_cast %49 : vector<8x16x384xbf16> to vector<128x384xbf16>
    %c384 = arith.constant 384 : index
    %c0_48 = arith.constant 0 : index
    %51 = vector.load %arg3[%c384, %c0_48] : memref<3456x128xbf16, #tpu.memory_space<vmem>>, vector<384x128xbf16>
    %cst_49 = arith.constant dense<0.000000e+00> : vector<128x128xf32>
    %52 = tpu.matmul %50, %51, %cst_49 {dimension_numbers = #tpu.dot_dimension_numbers<[1], [0], [0], [1], [0, 0, 1, 1], [], []>} : vector<128x384xbf16>, vector<384x128xbf16>, vector<128x128xf32> -> vector<128x128xf32>
    %53 = arith.addf %39, %52 : vector<128x128xf32>
    %c0_i32_50 = arith.constant 0 : i32
    %c0_i32_51 = arith.constant 0 : i32
    %c0_i32_52 = arith.constant 0 : i32
    %54 = tpu.memref_slice %arg6[%9, %c0_i32_50, %c0_i32_51, %c0_i32_52] : memref<2x16x24x128xbf16, #tpu.memory_space<vmem>> -> memref<1x16x24x128xbf16, #tpu.memory_space<vmem>>
    %55 = tpu.memref_squeeze %54 : memref<1x16x24x128xbf16, #tpu.memory_space<vmem>> -> memref<16x24x128xbf16, #tpu.memory_space<vmem>>
    %c5_53 = arith.constant 5 : index
    %c3_54 = arith.constant 3 : index
    %c0_55 = arith.constant 0 : index
    %56 = vector.load %55[%c5_53, %c3_54, %c0_55] : memref<16x24x128xbf16, #tpu.memory_space<vmem>>, vector<8x16x128xbf16>
    %c0_i32_56 = arith.constant 0 : i32
    %c0_i32_57 = arith.constant 0 : i32
    %c0_i32_58 = arith.constant 0 : i32
    %57 = tpu.memref_slice %arg6[%9, %c0_i32_56, %c0_i32_57, %c0_i32_58] : memref<2x16x24x128xbf16, #tpu.memory_space<vmem>> -> memref<1x16x24x128xbf16, #tpu.memory_space<vmem>>
    %58 = tpu.memref_squeeze %57 : memref<1x16x24x128xbf16, #tpu.memory_space<vmem>> -> memref<16x24x128xbf16, #tpu.memory_space<vmem>>
    %c5_59 = arith.constant 5 : index
    %c4_60 = arith.constant 4 : index
    %c0_61 = arith.constant 0 : index
    %59 = vector.load %58[%c5_59, %c4_60, %c0_61] : memref<16x24x128xbf16, #tpu.memory_space<vmem>>, vector<8x16x128xbf16>
    %c0_i32_62 = arith.constant 0 : i32
    %c0_i32_63 = arith.constant 0 : i32
    %c0_i32_64 = arith.constant 0 : i32
    %60 = tpu.memref_slice %arg6[%9, %c0_i32_62, %c0_i32_63, %c0_i32_64] : memref<2x16x24x128xbf16, #tpu.memory_space<vmem>> -> memref<1x16x24x128xbf16, #tpu.memory_space<vmem>>
    %61 = tpu.memref_squeeze %60 : memref<1x16x24x128xbf16, #tpu.memory_space<vmem>> -> memref<16x24x128xbf16, #tpu.memory_space<vmem>>
    %c5_65 = arith.constant 5 : index
    %c5_66 = arith.constant 5 : index
    %c0_67 = arith.constant 0 : index
    %62 = vector.load %61[%c5_65, %c5_66, %c0_67] : memref<16x24x128xbf16, #tpu.memory_space<vmem>>, vector<8x16x128xbf16>
    %63 = tpu.concatenate %56, %59, %62 in 2 : vector<8x16x128xbf16>, vector<8x16x128xbf16>, vector<8x16x128xbf16> -> vector<8x16x384xbf16>
    %64 = vector.shape_cast %63 : vector<8x16x384xbf16> to vector<128x384xbf16>
    %c768 = arith.constant 768 : index
    %c0_68 = arith.constant 0 : index
    %65 = vector.load %arg3[%c768, %c0_68] : memref<3456x128xbf16, #tpu.memory_space<vmem>>, vector<384x128xbf16>
    %cst_69 = arith.constant dense<0.000000e+00> : vector<128x128xf32>
    %66 = tpu.matmul %64, %65, %cst_69 {dimension_numbers = #tpu.dot_dimension_numbers<[1], [0], [0], [1], [0, 0, 1, 1], [], []>} : vector<128x384xbf16>, vector<384x128xbf16>, vector<128x128xf32> -> vector<128x128xf32>
    %67 = arith.addf %53, %66 : vector<128x128xf32>
    %c0_i32_70 = arith.constant 0 : i32
    %c0_i32_71 = arith.constant 0 : i32
    %c0_i32_72 = arith.constant 0 : i32
    %68 = tpu.memref_slice %arg6[%9, %c0_i32_70, %c0_i32_71, %c0_i32_72] : memref<2x16x24x128xbf16, #tpu.memory_space<vmem>> -> memref<1x16x24x128xbf16, #tpu.memory_space<vmem>>
    %69 = tpu.memref_squeeze %68 : memref<1x16x24x128xbf16, #tpu.memory_space<vmem>> -> memref<16x24x128xbf16, #tpu.memory_space<vmem>>
    %c2 = arith.constant 2 : index
    %c2_73 = arith.constant 2 : index
    %c0_74 = arith.constant 0 : index
    %70 = vector.load %69[%c2, %c2_73, %c0_74] : memref<16x24x128xbf16, #tpu.memory_space<vmem>>, vector<8x16x128xbf16>
    %c0_i32_75 = arith.constant 0 : i32
    %c0_i32_76 = arith.constant 0 : i32
    %c0_i32_77 = arith.constant 0 : i32
    %71 = tpu.memref_slice %arg6[%9, %c0_i32_75, %c0_i32_76, %c0_i32_77] : memref<2x16x24x128xbf16, #tpu.memory_space<vmem>> -> memref<1x16x24x128xbf16, #tpu.memory_space<vmem>>
    %72 = tpu.memref_squeeze %71 : memref<1x16x24x128xbf16, #tpu.memory_space<vmem>> -> memref<16x24x128xbf16, #tpu.memory_space<vmem>>
    %c2_78 = arith.constant 2 : index
    %c4_79 = arith.constant 4 : index
    %c0_80 = arith.constant 0 : index
    %73 = vector.load %72[%c2_78, %c4_79, %c0_80] : memref<16x24x128xbf16, #tpu.memory_space<vmem>>, vector<8x16x128xbf16>
    %c0_i32_81 = arith.constant 0 : i32
    %c0_i32_82 = arith.constant 0 : i32
    %c0_i32_83 = arith.constant 0 : i32
    %74 = tpu.memref_slice %arg6[%9, %c0_i32_81, %c0_i32_82, %c0_i32_83] : memref<2x16x24x128xbf16, #tpu.memory_space<vmem>> -> memref<1x16x24x128xbf16, #tpu.memory_space<vmem>>
    %75 = tpu.memref_squeeze %74 : memref<1x16x24x128xbf16, #tpu.memory_space<vmem>> -> memref<16x24x128xbf16, #tpu.memory_space<vmem>>
    %c2_84 = arith.constant 2 : index
    %c6 = arith.constant 6 : index
    %c0_85 = arith.constant 0 : index
    %76 = vector.load %75[%c2_84, %c6, %c0_85] : memref<16x24x128xbf16, #tpu.memory_space<vmem>>, vector<8x16x128xbf16>
    %77 = tpu.concatenate %70, %73, %76 in 2 : vector<8x16x128xbf16>, vector<8x16x128xbf16>, vector<8x16x128xbf16> -> vector<8x16x384xbf16>
    %78 = vector.shape_cast %77 : vector<8x16x384xbf16> to vector<128x384xbf16>
    %c1152 = arith.constant 1152 : index
    %c0_86 = arith.constant 0 : index
    %79 = vector.load %arg3[%c1152, %c0_86] : memref<3456x128xbf16, #tpu.memory_space<vmem>>, vector<384x128xbf16>
    %cst_87 = arith.constant dense<0.000000e+00> : vector<128x128xf32>
    %80 = tpu.matmul %78, %79, %cst_87 {dimension_numbers = #tpu.dot_dimension_numbers<[1], [0], [0], [1], [0, 0, 1, 1], [], []>} : vector<128x384xbf16>, vector<384x128xbf16>, vector<128x128xf32> -> vector<128x128xf32>
    %81 = arith.addf %67, %80 : vector<128x128xf32>
    %c0_i32_88 = arith.constant 0 : i32
    %c0_i32_89 = arith.constant 0 : i32
    %c0_i32_90 = arith.constant 0 : i32
    %82 = tpu.memref_slice %arg6[%9, %c0_i32_88, %c0_i32_89, %c0_i32_90] : memref<2x16x24x128xbf16, #tpu.memory_space<vmem>> -> memref<1x16x24x128xbf16, #tpu.memory_space<vmem>>
    %83 = tpu.memref_squeeze %82 : memref<1x16x24x128xbf16, #tpu.memory_space<vmem>> -> memref<16x24x128xbf16, #tpu.memory_space<vmem>>
    %c4_91 = arith.constant 4 : index
    %c2_92 = arith.constant 2 : index
    %c0_93 = arith.constant 0 : index
    %84 = vector.load %83[%c4_91, %c2_92, %c0_93] : memref<16x24x128xbf16, #tpu.memory_space<vmem>>, vector<8x16x128xbf16>
    %c0_i32_94 = arith.constant 0 : i32
    %c0_i32_95 = arith.constant 0 : i32
    %c0_i32_96 = arith.constant 0 : i32
    %85 = tpu.memref_slice %arg6[%9, %c0_i32_94, %c0_i32_95, %c0_i32_96] : memref<2x16x24x128xbf16, #tpu.memory_space<vmem>> -> memref<1x16x24x128xbf16, #tpu.memory_space<vmem>>
    %86 = tpu.memref_squeeze %85 : memref<1x16x24x128xbf16, #tpu.memory_space<vmem>> -> memref<16x24x128xbf16, #tpu.memory_space<vmem>>
    %c4_97 = arith.constant 4 : index
    %c4_98 = arith.constant 4 : index
    %c0_99 = arith.constant 0 : index
    %87 = vector.load %86[%c4_97, %c4_98, %c0_99] : memref<16x24x128xbf16, #tpu.memory_space<vmem>>, vector<8x16x128xbf16>
    %c0_i32_100 = arith.constant 0 : i32
    %c0_i32_101 = arith.constant 0 : i32
    %c0_i32_102 = arith.constant 0 : i32
    %88 = tpu.memref_slice %arg6[%9, %c0_i32_100, %c0_i32_101, %c0_i32_102] : memref<2x16x24x128xbf16, #tpu.memory_space<vmem>> -> memref<1x16x24x128xbf16, #tpu.memory_space<vmem>>
    %89 = tpu.memref_squeeze %88 : memref<1x16x24x128xbf16, #tpu.memory_space<vmem>> -> memref<16x24x128xbf16, #tpu.memory_space<vmem>>
    %c4_103 = arith.constant 4 : index
    %c6_104 = arith.constant 6 : index
    %c0_105 = arith.constant 0 : index
    %90 = vector.load %89[%c4_103, %c6_104, %c0_105] : memref<16x24x128xbf16, #tpu.memory_space<vmem>>, vector<8x16x128xbf16>
    %91 = tpu.concatenate %84, %87, %90 in 2 : vector<8x16x128xbf16>, vector<8x16x128xbf16>, vector<8x16x128xbf16> -> vector<8x16x384xbf16>
    %92 = vector.shape_cast %91 : vector<8x16x384xbf16> to vector<128x384xbf16>
    %c1536 = arith.constant 1536 : index
    %c0_106 = arith.constant 0 : index
    %93 = vector.load %arg3[%c1536, %c0_106] : memref<3456x128xbf16, #tpu.memory_space<vmem>>, vector<384x128xbf16>
    %cst_107 = arith.constant dense<0.000000e+00> : vector<128x128xf32>
    %94 = tpu.matmul %92, %93, %cst_107 {dimension_numbers = #tpu.dot_dimension_numbers<[1], [0], [0], [1], [0, 0, 1, 1], [], []>} : vector<128x384xbf16>, vector<384x128xbf16>, vector<128x128xf32> -> vector<128x128xf32>
    %95 = arith.addf %81, %94 : vector<128x128xf32>
    %c0_i32_108 = arith.constant 0 : i32
    %c0_i32_109 = arith.constant 0 : i32
    %c0_i32_110 = arith.constant 0 : i32
    %96 = tpu.memref_slice %arg6[%9, %c0_i32_108, %c0_i32_109, %c0_i32_110] : memref<2x16x24x128xbf16, #tpu.memory_space<vmem>> -> memref<1x16x24x128xbf16, #tpu.memory_space<vmem>>
    %97 = tpu.memref_squeeze %96 : memref<1x16x24x128xbf16, #tpu.memory_space<vmem>> -> memref<16x24x128xbf16, #tpu.memory_space<vmem>>
    %c6_111 = arith.constant 6 : index
    %c2_112 = arith.constant 2 : index
    %c0_113 = arith.constant 0 : index
    %98 = vector.load %97[%c6_111, %c2_112, %c0_113] : memref<16x24x128xbf16, #tpu.memory_space<vmem>>, vector<8x16x128xbf16>
    %c0_i32_114 = arith.constant 0 : i32
    %c0_i32_115 = arith.constant 0 : i32
    %c0_i32_116 = arith.constant 0 : i32
    %99 = tpu.memref_slice %arg6[%9, %c0_i32_114, %c0_i32_115, %c0_i32_116] : memref<2x16x24x128xbf16, #tpu.memory_space<vmem>> -> memref<1x16x24x128xbf16, #tpu.memory_space<vmem>>
    %100 = tpu.memref_squeeze %99 : memref<1x16x24x128xbf16, #tpu.memory_space<vmem>> -> memref<16x24x128xbf16, #tpu.memory_space<vmem>>
    %c6_117 = arith.constant 6 : index
    %c4_118 = arith.constant 4 : index
    %c0_119 = arith.constant 0 : index
    %101 = vector.load %100[%c6_117, %c4_118, %c0_119] : memref<16x24x128xbf16, #tpu.memory_space<vmem>>, vector<8x16x128xbf16>
    %c0_i32_120 = arith.constant 0 : i32
    %c0_i32_121 = arith.constant 0 : i32
    %c0_i32_122 = arith.constant 0 : i32
    %102 = tpu.memref_slice %arg6[%9, %c0_i32_120, %c0_i32_121, %c0_i32_122] : memref<2x16x24x128xbf16, #tpu.memory_space<vmem>> -> memref<1x16x24x128xbf16, #tpu.memory_space<vmem>>
    %103 = tpu.memref_squeeze %102 : memref<1x16x24x128xbf16, #tpu.memory_space<vmem>> -> memref<16x24x128xbf16, #tpu.memory_space<vmem>>
    %c6_123 = arith.constant 6 : index
    %c6_124 = arith.constant 6 : index
    %c0_125 = arith.constant 0 : index
    %104 = vector.load %103[%c6_123, %c6_124, %c0_125] : memref<16x24x128xbf16, #tpu.memory_space<vmem>>, vector<8x16x128xbf16>
    %105 = tpu.concatenate %98, %101, %104 in 2 : vector<8x16x128xbf16>, vector<8x16x128xbf16>, vector<8x16x128xbf16> -> vector<8x16x384xbf16>
    %106 = vector.shape_cast %105 : vector<8x16x384xbf16> to vector<128x384xbf16>
    %c1920 = arith.constant 1920 : index
    %c0_126 = arith.constant 0 : index
    %107 = vector.load %arg3[%c1920, %c0_126] : memref<3456x128xbf16, #tpu.memory_space<vmem>>, vector<384x128xbf16>
    %cst_127 = arith.constant dense<0.000000e+00> : vector<128x128xf32>
    %108 = tpu.matmul %106, %107, %cst_127 {dimension_numbers = #tpu.dot_dimension_numbers<[1], [0], [0], [1], [0, 0, 1, 1], [], []>} : vector<128x384xbf16>, vector<384x128xbf16>, vector<128x128xf32> -> vector<128x128xf32>
    %109 = arith.addf %95, %108 : vector<128x128xf32>
    %c0_i32_128 = arith.constant 0 : i32
    %c0_i32_129 = arith.constant 0 : i32
    %c0_i32_130 = arith.constant 0 : i32
    %110 = tpu.memref_slice %arg6[%9, %c0_i32_128, %c0_i32_129, %c0_i32_130] : memref<2x16x24x128xbf16, #tpu.memory_space<vmem>> -> memref<1x16x24x128xbf16, #tpu.memory_space<vmem>>
    %111 = tpu.memref_squeeze %110 : memref<1x16x24x128xbf16, #tpu.memory_space<vmem>> -> memref<16x24x128xbf16, #tpu.memory_space<vmem>>
    %c0_131 = arith.constant 0 : index
    %c0_132 = arith.constant 0 : index
    %c0_133 = arith.constant 0 : index
    %112 = vector.load %111[%c0_131, %c0_132, %c0_133] : memref<16x24x128xbf16, #tpu.memory_space<vmem>>, vector<8x16x128xbf16>
    %c0_i32_134 = arith.constant 0 : i32
    %c0_i32_135 = arith.constant 0 : i32
    %c0_i32_136 = arith.constant 0 : i32
    %113 = tpu.memref_slice %arg6[%9, %c0_i32_134, %c0_i32_135, %c0_i32_136] : memref<2x16x24x128xbf16, #tpu.memory_space<vmem>> -> memref<1x16x24x128xbf16, #tpu.memory_space<vmem>>
    %114 = tpu.memref_squeeze %113 : memref<1x16x24x128xbf16, #tpu.memory_space<vmem>> -> memref<16x24x128xbf16, #tpu.memory_space<vmem>>
    %c0_137 = arith.constant 0 : index
    %c4_138 = arith.constant 4 : index
    %c0_139 = arith.constant 0 : index
    %115 = vector.load %114[%c0_137, %c4_138, %c0_139] : memref<16x24x128xbf16, #tpu.memory_space<vmem>>, vector<8x16x128xbf16>
    %c0_i32_140 = arith.constant 0 : i32
    %c0_i32_141 = arith.constant 0 : i32
    %c0_i32_142 = arith.constant 0 : i32
    %116 = tpu.memref_slice %arg6[%9, %c0_i32_140, %c0_i32_141, %c0_i32_142] : memref<2x16x24x128xbf16, #tpu.memory_space<vmem>> -> memref<1x16x24x128xbf16, #tpu.memory_space<vmem>>
    %117 = tpu.memref_squeeze %116 : memref<1x16x24x128xbf16, #tpu.memory_space<vmem>> -> memref<16x24x128xbf16, #tpu.memory_space<vmem>>
    %c0_143 = arith.constant 0 : index
    %c8 = arith.constant 8 : index
    %c0_144 = arith.constant 0 : index
    %118 = vector.load %117[%c0_143, %c8, %c0_144] : memref<16x24x128xbf16, #tpu.memory_space<vmem>>, vector<8x16x128xbf16>
    %119 = tpu.concatenate %112, %115, %118 in 2 : vector<8x16x128xbf16>, vector<8x16x128xbf16>, vector<8x16x128xbf16> -> vector<8x16x384xbf16>
    %120 = vector.shape_cast %119 : vector<8x16x384xbf16> to vector<128x384xbf16>
    %c2304 = arith.constant 2304 : index
    %c0_145 = arith.constant 0 : index
    %121 = vector.load %arg3[%c2304, %c0_145] : memref<3456x128xbf16, #tpu.memory_space<vmem>>, vector<384x128xbf16>
    %cst_146 = arith.constant dense<0.000000e+00> : vector<128x128xf32>
    %122 = tpu.matmul %120, %121, %cst_146 {dimension_numbers = #tpu.dot_dimension_numbers<[1], [0], [0], [1], [0, 0, 1, 1], [], []>} : vector<128x384xbf16>, vector<384x128xbf16>, vector<128x128xf32> -> vector<128x128xf32>
    %123 = arith.addf %109, %122 : vector<128x128xf32>
    %c0_i32_147 = arith.constant 0 : i32
    %c0_i32_148 = arith.constant 0 : i32
    %c0_i32_149 = arith.constant 0 : i32
    %124 = tpu.memref_slice %arg6[%9, %c0_i32_147, %c0_i32_148, %c0_i32_149] : memref<2x16x24x128xbf16, #tpu.memory_space<vmem>> -> memref<1x16x24x128xbf16, #tpu.memory_space<vmem>>
    %125 = tpu.memref_squeeze %124 : memref<1x16x24x128xbf16, #tpu.memory_space<vmem>> -> memref<16x24x128xbf16, #tpu.memory_space<vmem>>
    %c4_150 = arith.constant 4 : index
    %c0_151 = arith.constant 0 : index
    %c0_152 = arith.constant 0 : index
    %126 = vector.load %125[%c4_150, %c0_151, %c0_152] : memref<16x24x128xbf16, #tpu.memory_space<vmem>>, vector<8x16x128xbf16>
    %c0_i32_153 = arith.constant 0 : i32
    %c0_i32_154 = arith.constant 0 : i32
    %c0_i32_155 = arith.constant 0 : i32
    %127 = tpu.memref_slice %arg6[%9, %c0_i32_153, %c0_i32_154, %c0_i32_155] : memref<2x16x24x128xbf16, #tpu.memory_space<vmem>> -> memref<1x16x24x128xbf16, #tpu.memory_space<vmem>>
    %128 = tpu.memref_squeeze %127 : memref<1x16x24x128xbf16, #tpu.memory_space<vmem>> -> memref<16x24x128xbf16, #tpu.memory_space<vmem>>
    %c4_156 = arith.constant 4 : index
    %c4_157 = arith.constant 4 : index
    %c0_158 = arith.constant 0 : index
    %129 = vector.load %128[%c4_156, %c4_157, %c0_158] : memref<16x24x128xbf16, #tpu.memory_space<vmem>>, vector<8x16x128xbf16>
    %c0_i32_159 = arith.constant 0 : i32
    %c0_i32_160 = arith.constant 0 : i32
    %c0_i32_161 = arith.constant 0 : i32
    %130 = tpu.memref_slice %arg6[%9, %c0_i32_159, %c0_i32_160, %c0_i32_161] : memref<2x16x24x128xbf16, #tpu.memory_space<vmem>> -> memref<1x16x24x128xbf16, #tpu.memory_space<vmem>>
    %131 = tpu.memref_squeeze %130 : memref<1x16x24x128xbf16, #tpu.memory_space<vmem>> -> memref<16x24x128xbf16, #tpu.memory_space<vmem>>
    %c4_162 = arith.constant 4 : index
    %c8_163 = arith.constant 8 : index
    %c0_164 = arith.constant 0 : index
    %132 = vector.load %131[%c4_162, %c8_163, %c0_164] : memref<16x24x128xbf16, #tpu.memory_space<vmem>>, vector<8x16x128xbf16>
    %133 = tpu.concatenate %126, %129, %132 in 2 : vector<8x16x128xbf16>, vector<8x16x128xbf16>, vector<8x16x128xbf16> -> vector<8x16x384xbf16>
    %134 = vector.shape_cast %133 : vector<8x16x384xbf16> to vector<128x384xbf16>
    %c2688 = arith.constant 2688 : index
    %c0_165 = arith.constant 0 : index
    %135 = vector.load %arg3[%c2688, %c0_165] : memref<3456x128xbf16, #tpu.memory_space<vmem>>, vector<384x128xbf16>
    %cst_166 = arith.constant dense<0.000000e+00> : vector<128x128xf32>
    %136 = tpu.matmul %134, %135, %cst_166 {dimension_numbers = #tpu.dot_dimension_numbers<[1], [0], [0], [1], [0, 0, 1, 1], [], []>} : vector<128x384xbf16>, vector<384x128xbf16>, vector<128x128xf32> -> vector<128x128xf32>
    %137 = arith.addf %123, %136 : vector<128x128xf32>
    %c0_i32_167 = arith.constant 0 : i32
    %c0_i32_168 = arith.constant 0 : i32
    %c0_i32_169 = arith.constant 0 : i32
    %138 = tpu.memref_slice %arg6[%9, %c0_i32_167, %c0_i32_168, %c0_i32_169] : memref<2x16x24x128xbf16, #tpu.memory_space<vmem>> -> memref<1x16x24x128xbf16, #tpu.memory_space<vmem>>
    %139 = tpu.memref_squeeze %138 : memref<1x16x24x128xbf16, #tpu.memory_space<vmem>> -> memref<16x24x128xbf16, #tpu.memory_space<vmem>>
    %c8_170 = arith.constant 8 : index
    %c0_171 = arith.constant 0 : index
    %c0_172 = arith.constant 0 : index
    %140 = vector.load %139[%c8_170, %c0_171, %c0_172] : memref<16x24x128xbf16, #tpu.memory_space<vmem>>, vector<8x16x128xbf16>
    %c0_i32_173 = arith.constant 0 : i32
    %c0_i32_174 = arith.constant 0 : i32
    %c0_i32_175 = arith.constant 0 : i32
    %141 = tpu.memref_slice %arg6[%9, %c0_i32_173, %c0_i32_174, %c0_i32_175] : memref<2x16x24x128xbf16, #tpu.memory_space<vmem>> -> memref<1x16x24x128xbf16, #tpu.memory_space<vmem>>
    %142 = tpu.memref_squeeze %141 : memref<1x16x24x128xbf16, #tpu.memory_space<vmem>> -> memref<16x24x128xbf16, #tpu.memory_space<vmem>>
    %c8_176 = arith.constant 8 : index
    %c4_177 = arith.constant 4 : index
    %c0_178 = arith.constant 0 : index
    %143 = vector.load %142[%c8_176, %c4_177, %c0_178] : memref<16x24x128xbf16, #tpu.memory_space<vmem>>, vector<8x16x128xbf16>
    %c0_i32_179 = arith.constant 0 : i32
    %c0_i32_180 = arith.constant 0 : i32
    %c0_i32_181 = arith.constant 0 : i32
    %144 = tpu.memref_slice %arg6[%9, %c0_i32_179, %c0_i32_180, %c0_i32_181] : memref<2x16x24x128xbf16, #tpu.memory_space<vmem>> -> memref<1x16x24x128xbf16, #tpu.memory_space<vmem>>
    %145 = tpu.memref_squeeze %144 : memref<1x16x24x128xbf16, #tpu.memory_space<vmem>> -> memref<16x24x128xbf16, #tpu.memory_space<vmem>>
    %c8_182 = arith.constant 8 : index
    %c8_183 = arith.constant 8 : index
    %c0_184 = arith.constant 0 : index
    %146 = vector.load %145[%c8_182, %c8_183, %c0_184] : memref<16x24x128xbf16, #tpu.memory_space<vmem>>, vector<8x16x128xbf16>
    %147 = tpu.concatenate %140, %143, %146 in 2 : vector<8x16x128xbf16>, vector<8x16x128xbf16>, vector<8x16x128xbf16> -> vector<8x16x384xbf16>
    %148 = vector.shape_cast %147 : vector<8x16x384xbf16> to vector<128x384xbf16>
    %c3072 = arith.constant 3072 : index
    %c0_185 = arith.constant 0 : index
    %149 = vector.load %arg3[%c3072, %c0_185] : memref<3456x128xbf16, #tpu.memory_space<vmem>>, vector<384x128xbf16>
    %cst_186 = arith.constant dense<0.000000e+00> : vector<128x128xf32>
    %150 = tpu.matmul %148, %149, %cst_186 {dimension_numbers = #tpu.dot_dimension_numbers<[1], [0], [0], [1], [0, 0, 1, 1], [], []>} : vector<128x384xbf16>, vector<384x128xbf16>, vector<128x128xf32> -> vector<128x128xf32>
    %151 = arith.addf %137, %150 : vector<128x128xf32>
    %c0_187 = arith.constant 0 : index
    %c0_188 = arith.constant 0 : index
    %152 = vector.load %arg4[%c0_187, %c0_188] : memref<1x128xf32, #tpu.memory_space<vmem>>, vector<1x128xf32>
    %153 = vector.broadcast %152 : vector<1x128xf32> to vector<128x128xf32>
    %154 = arith.addf %151, %153 : vector<128x128xf32>
    %155 = vector.shape_cast %154 : vector<128x128xf32> to vector<1x8x16x128xf32>
    %c0_189 = arith.constant 0 : index
    %c0_190 = arith.constant 0 : index
    %c0_191 = arith.constant 0 : index
    %c0_192 = arith.constant 0 : index
    %156 = vector.load %arg5[%c0_189, %c0_190, %c0_191, %c0_192] : memref<1x8x16x128xf32, #tpu.memory_space<vmem>>, vector<1x8x16x128xf32>
    tpu.vector_store %arg5[%c0_189, %c0_190, %c0_191, %c0_192], %155 {strides = array<i32>} : memref<1x8x16x128xf32, #tpu.memory_space<vmem>>, vector<1x8x16x128xf32>,
    return
  }
  func.func @transform_1(%arg0: i32, %arg1: i32) -> (i32, i32) {
    %c0_i32 = arith.constant 0 : i32
    %c0_i32_0 = arith.constant 0 : i32
    %c0_i32_1 = arith.constant 0 : i32
    return %c0_i32, %c0_i32_0 : i32, i32
  }
  func.func @transform_2(%arg0: i32, %arg1: i32) -> (i32, i32) {
    %c0_i32 = arith.constant 0 : i32
    %c0_i32_0 = arith.constant 0 : i32
    %c0_i32_1 = arith.constant 0 : i32
    return %c0_i32, %c0_i32_0 : i32, i32
  }
  func.func @transform_3(%arg0: i32, %arg1: i32) -> (i32, i32, i32, i32) {
    %c0_i32 = arith.constant 0 : i32
    %c0_i32_0 = arith.constant 0 : i32
    %c0_i32_1 = arith.constant 0 : i32
    return %arg0, %arg1, %c0_i32, %c0_i32_0 : i32, i32, i32, i32
  }
}

</mosaic_0001>

<bundles_post_ra>
// kernel: tpu_custom_call.1
= control target key start
LH: loop header
LB: loop body
LE: loop exit
PB: predicated region body
PF: predicated region fallthrough
CT: control target
= control target key end

     0   :  { %s12382_s0 = inlined_call_operand.hbm [shape: bf16[2,24,24,128], index: 0, kind: input, shape index: {}]   ;;  %s12383_s1 = inlined_call_operand.hbm [shape: bf16[3456,128], index: 1, kind: input, shape index: {}]   ;;  %s12384_s2 = inlined_call_operand.vmem [shape: f32[1,128], index: 2, kind: input, shape index: {}]   ;;  %s12385_s3 = inlined_call_operand.hbm [shape: f32[2,16,16,128], index: 3, kind: output, shape index: {}]  }
   0x1   :  { %12402 = sst [smem:[#allocation20_spill]] %s12383_s1 }
   0x2   :  { %8 = vsyncpa [#allocation5], 0 }
   0x3   :  { %9 = vsyncpa [#allocation6], 0 }
   0x4   :  { %11 = vsyncpa [#allocation6 + $0x1], 0  ;;  %s10504_s12 = smov 0   ;;  %s10506_s13 = smov 0  }
   0x5   :  { %s10508_s14 = smov 0   ;;  %s10510_s15 = smov 0  }
   0x6   :  { %s10512_s16 = smov 0   ;;  %s10514_s17 = smov 0  }
   0x7   :  { %s10516_s18 = smov 0   ;;  %s10518_s19 = smov 0  }
   0x8 LB: > { %12403 = sst [smem:[#allocation17_spill]] %s10471_s18  ;;  %s7520_s20 = sadd.s32 4294967295, %s10475_s19   ;;  %s10475_s19 = sphi %s10518_s19, %s17_s19   ;;  %s10471_s18 = sphi %s10516_s18, %s12427_s18   ;;  %s10467_s17 = sphi %s10514_s17, %s12432_s17   ;;  %s10463_s16 = sphi %s10512_s16, %s12425_s16   ;;  %s10459_s15 = sphi %s10510_s15, %s12431_s15   ;;  %s10455_s14 = sphi %s10508_s14, %s12430_s14   ;;  %s10451_s13 = sphi %s10506_s13, %s12429_s13   ;;  %s10447_s12 = sphi %s10504_s12, %s12428_s12  }
   0x9   : > { %s7521_s21 = sadd.s32 4294967294, %s10475_s19   ;;  %s26_s22 = sadd.s32 1, %s10467_s17 }
   0xa   : > { %s29_s23 = sadd.s32 1, %s10471_s18  ;;  %p27_p0 = scmp.ge.s32.totalorder %s26_s22, 2 }
   0xb   : > { %s80_s24 = sadd.s32 1, %s10455_s14  ;;  %p90_p1 = scmp.ne.s32.totalorder %s10455_s14, %s10451_s13 }
   0xc   : > { %p91_p2 = scmp.eq.s32.totalorder %s7520_s20, 3  ;;  %s12434_s22 = smov (%p27_p0, %s26_s22), 0 }
   0xd   : > { %12404 = sst [smem:[#allocation18_spill]] %s12434_s22  ;;  %s12436_s23 = smov (!%p27_p0, %s29_s23), %s10471_s18 }
   0xe   : > { %s76_s25 = ssub.s32 %s10467_s17, %s12434_s22  ;;  %p10556_p3 = por %p91_p2, %p90_p1 }
   0xf   : > { %p31_p4 = scmp.ge.s32.totalorder %s12436_s23, 2  ;;  %p96_p5 = scmp.ne.s32.totalorder %s10451_s13, %s10447_s12 }
  0x10   : > { %s12405_s26 = scalar_select %p10556_p3, 1, 0 }
  0x11   : > { %p97_p6 = scmp.eq.s32.totalorder %s7521_s21, 3  ;;  %p7522_p7 = scmp.ge.s32.totalorder %s10475_s19, 1 }
  0x12   : > { %s12438_s23 = smov (%p31_p4, %s12436_s23), 0  ;;  %p104_p9 = scmp.lt.s32.totalorder %s10475_s19, 5 }
  0x13   : > { %12406 = sst [smem:[#allocation19_spill]] %s12438_s23  ;;  %p10565_p8 = por %p97_p6, %p96_p5 }
  0x14   : > { %s75_s28 = ssub.s32 %s10471_s18, %s12438_s23  ;;  %p10572_p10 = pnand %p7522_p7, %p104_p9 }
  0x15   : > { %s12407_s27 = scalar_select %p10565_p8, 1, 0 }
  0x16   : > { %s77_s29 = sor.u32 %s76_s25, %s75_s28  ;;  %p10576_p12 = scmp.eq.s32.totalorder %s7520_s20, 0 }
  0x17   : > { %s12408_s30 = scalar_select %p10572_p10, 1, 0 }
  0x18   : > { %p78_p11 = scmp.eq.s32.totalorder %s77_s29, 0  ;;  %p9662_p13 = pneg %p10572_p10 }
  0x19   : > { %s12409_s4 = scalar_select %p10576_p12, 1, 0 }
  0x1a   : > { %s10583_s5 = scalar_select %p78_p11, %s10455_s14, %s80_s24  }
  0x1b   : > { %s10477_s6 = smov [#allocation4]   ;;  %p10587_p0 = pnand %p10576_p12, %p9662_p13 }
  0x1c   : > { %s116_s7 = sshll.u32 %s10477_s6, 4  ;;  %s12411_s1 = sld [smem:[#allocation20_spill]]  ;;  %s117_s7 = int_to_ptr.vmem [resolvable:$true] %s116_s7 }
  0x1d   : > { %p10292_p2 = pneg %p10587_p0 }
  0x22   : > { %s10290_s11 = scalar_lea.hbm %s12411_s1, 27648 }
  0x23   : > { %p10291_p1 = scmp.ne.s32.totalorder %s12411_s1, %s10290_s11  ;;  %p10297_p6 = scmp.lt.u32.totalorder %s10290_s11, %s12411_s1 }
  0x25   : > { %p10293_p4 = pnand %p10292_p2, %p10291_p1 }
  0x27   : > { %p10294_p5 = pneg %p10293_p4 }
  0x29   : > { %p10299_p7 = pnand %p10297_p6, %p10294_p5 }
  0x2b   : > { %10302 = shalt.err (!%p10299_p7)
}
  0x2c   : > { %s10303_s28 = scalar_lea.vmem %s117_s7, 27648  ;;  %p10311_p8 = scmp.lt.s32.totalorder %s117_s7, %s117_s7 }
  0x2d   : > { %p10304_p9 = scmp.ne.s32.totalorder %s117_s7, %s10303_s28  ;;  %p10312_p3 = scmp.lt.s32.totalorder %s10303_s28, %s10303_s28 }
  0x2f   : > { %p10306_p11 = pnand %p10304_p9, %p10292_p2  ;;  %p10313_p12 = por %p10312_p3, %p10311_p8 }
  0x31   : > { %p10307_p13 = pneg %p10306_p11 }
  0x33   : > { %p10314_p10 = pnand %p10313_p12, %p10307_p13 }
  0x35   : > { %10317 = shalt.err (!%p10314_p10)
}
  0x36   : > { %s10478_s29 = smov 64   ;;  %s10479_s6 = smov 4  }
  0x37   : > { %9665 = dma.hbm_to_vmem [thread:$0]  (!%p10587_p0), %s12411_s1, 27648, %s117_s7, [#allocation5], %s10478_s29, %s10478_s29, %s10479_s6  }
  0x38   : > { %p12412_p1 = scmp.ne.s32.totalorder %s12408_s30, 0 }
  0x39   : > { %p12413_p4 = scmp.ne.s32.totalorder (!%p12412_p1), %s12409_s4, 0 }
  0x3a   : > { %135 = sbr.rel (%p12412_p1) target bundleno = 956 (0x3bc), region = 28 }
  0x41   : > { %10436 = dma.done.wait (%p12413_p4), [#allocation5], 27648  }
  0x42   : > { %10438 = vsyncadd (%p12413_p4), [#allocation5], 4294939648  ;;  %s12390_s8 = sand.u32 1, %s10451_s13   ;;  %p154_p3 = scmp.lt.s32.totalorder %s10459_s15, 0 }
  0x43   : > { %s10617_s30 = sshll.u32 %s12390_s8, 7  ;;  %s155_s7 = ssub.s32 0, %s10459_s15 }
  0x44   : > { %s7527_s11 = smin.u32 %s10459_s15, %s155_s7  ;;  %s7532_s4 = smul.u32 24, %s10459_s15 }
  0x45   : > { %s157_s20 = sand.u32 1, %s7527_s11   ;;  %s10623_s24 = sadd.s32 1, %s10459_s15 }
  0x46   : > { %s158_s21 = ssub.s32 0, %s157_s20  ;;  %s172_s28 = smul.u32 72, %s10463_s16 }
  0x47   : > { %s12440_s21 = smov (!%p154_p3, %s158_s21), %s157_s20  ;;  %p9672_p10 = scmp.eq.s32.totalorder %s10459_s15, 0 }
  0x48   : > { %p7529_p8 = scmp.lt.s32.totalorder %s12440_s21, 0  ;;  %s164_s25 = sadd.s32 2, %s12440_s21 }
  0x49   : > { %s173_s29 = sadd.s32 %s7532_s4, %s172_s28  ;;  %p196_p12 = scmp.lt.s32.totalorder %s10623_s24, 0 }
  0x4a   : > { %s12442_s25 = smov (!%p7529_p8, %s164_s25), %s12440_s21  ;;  %s7533_s6 = sshll.u32 %s173_s29, 6 }
  0x4b   : > { %s8368_s9 = smul.u32 192, %s12442_s25  ;;  %s10630_s7 = scalar_lea.hbm %s12382_s0, %s7533_s6 }
  0x4c   : > { %s197_s21 = ssub.s32 0, %s10623_s24  ;;  %s10639_s4 = scalar_lea.sflag [#allocation3], %s12442_s25 }
  0x4d   : > { %s10632_s11 = scalar_lea.vmem [#allocation2], %s8368_s9  ;;  %s10318_s28 = scalar_lea.hbm %s10630_s7, 3072 }
  0x4e   : > { %s187_s20 = sshll.u32 %s10632_s11, 4  ;;  %p10319_p0 = scmp.ne.s32.totalorder %s10630_s7, %s10318_s28  ;;  %s10636_s20 = int_to_ptr.vmem [resolvable:$true] %s187_s20 }
  0x4f   : > { %s12393_s6 = scalar_lea.hbm %s12382_s0, 9216  ;;  %p10323_p6 = scmp.lt.u32.totalorder %s10630_s7, %s12382_s0 }
  0x50   : > { %p10320_p2 = pnand %p10319_p0, %p9672_p10  ;;  %p10324_p7 = scmp.lt.u32.totalorder %s12393_s6, %s10318_s28 }
  0x51   : > { %p10326_p11 = scmp.lt.u32.totalorder %s10318_s28, %s10630_s7 }
  0x52   : > { %p10321_p5 = pneg %p10320_p2  ;;  %p10325_p9 = por %p10324_p7, %p10323_p6 }
  0x54   : > { %p10327_p13 = por %p10326_p11, %p10325_p9 }
  0x56   : > { %p10328_p1 = pnand %p10327_p13, %p10321_p5 }
  0x58   : > { %10331 = shalt.err (!%p10328_p1)  }
  0x59   : > { %s10332_s25 = scalar_lea.vmem %s10636_s20, 3072  ;;  %s10480_s8 = smov [#allocation2]  }
  0x5a   : > { %p10333_p4 = scmp.ne.s32.totalorder %s10636_s20, %s10332_s25  ;;  %s10336_s29 = sshll.u32 %s10480_s8, 4  ;;  %s10661_s29 = int_to_ptr.vmem [resolvable:$false] %s10336_s29 }
  0x5b   : > { %s12392_s1 = scalar_lea.vmem %s10661_s29, 6144  ;;  %p10339_p0 = scmp.lt.s32.totalorder %s10636_s20, %s10661_s29 }
  0x5c   : > { %p10334_p3 = pnand %p10333_p4, %p9672_p10  ;;  %p10340_p2 = scmp.lt.s32.totalorder %s12392_s1, %s10332_s25 }
  0x5e   : > { %p10335_p8 = pneg %p10334_p3  ;;  %p10341_p5 = por %p10340_p2, %p10339_p0 }
  0x60   : > { %p10342_p6 = pnand %p10341_p5, %p10335_p8 }
  0x62   : > { %10345 = shalt.err (!%p10342_p6)  }
  0x63   : > { %9657 = dma.hbm_to_vmem [thread:$0]  (%p9672_p10), %s10630_s7, 3072, %s10636_s20, %s10639_s4 }
  0x64   : > { %s7536_s23 = smin.u32 %s197_s21, %s10623_s24  ;;  %s7467_s8 = scalar_lea.hbm %s10630_s7, 1536 }
  0x65   : > { %s199_s28 = sand.u32 1, %s7536_s23   ;;  %p9673_p9 = scmp.lt.s32.totalorder %s10623_s24, 2 }
  0x66   : > { %s200_s10 = ssub.s32 0, %s199_s28  ;;  %s10374_s22 = scalar_lea.hbm %s10630_s7, 4608 }
  0x67   : > { %s12444_s10 = smov (!%p196_p12, %s200_s10), %s199_s28  ;;  %p10347_p10 = scmp.ne.s32.totalorder %s7467_s8, %s10374_s22 }
  0x68   : > { %p7538_p7 = scmp.lt.s32.totalorder %s12444_s10, 0  ;;  %s206_s9 = sadd.s32 2, %s12444_s10 }
  0x69   : > { %p10348_p11 = pnand %p10347_p10, %p9673_p9  ;;  %p10351_p12 = scmp.lt.u32.totalorder %s7467_s8, %s12382_s0 }
  0x6a   : > { %s12446_s9 = smov (!%p7538_p7, %s206_s9), %s12444_s10  ;;  %s12414_s18 = scalar_lea.hbm %s12382_s0, 9216 }
  0x6b   : > { %s8369_s25 = smul.u32 192, %s12446_s9  ;;  %s217_s20 = scalar_lea.sflag [#allocation3], %s12446_s9 }
  0x6c   : > { %p10349_p13 = pneg %p10348_p11  ;;  %p10352_p1 = scmp.lt.u32.totalorder %s12414_s18, %s10374_s22 }
  0x6d   : > { %s216_s1 = scalar_lea.vmem [#allocation2], %s8369_s25  ;;  %p10354_p3 = scmp.lt.u32.totalorder %s10374_s22, %s7467_s8 }
  0x6e   : > { %s225_s6 = sshll.u32 %s216_s1, 4  ;;  %p10353_p4 = por %p10352_p1, %p10351_p12  ;;  %s226_s6 = int_to_ptr.vmem [resolvable:$true] %s225_s6 }
  0x70   : > { %p10355_p8 = por %p10354_p3, %p10353_p4 }
  0x72   : > { %p10356_p0 = pnand %p10355_p8, %p10349_p13 }
  0x74   : > { %10359 = shalt.err (!%p10356_p0)  }
  0x75   : > { %s10360_s1 = scalar_lea.vmem %s226_s6, 3072  ;;  %p10367_p7 = scmp.lt.s32.totalorder %s226_s6, %s10661_s29 }
  0x76   : > { %p10361_p2 = scmp.ne.s32.totalorder %s226_s6, %s10360_s1  ;;  %s12415_s7 = scalar_lea.vmem %s10661_s29, 6144 }
  0x77   : > { %p10368_p10 = scmp.lt.s32.totalorder %s12415_s7, %s10360_s1 }
  0x78   : > { %p10362_p5 = pnand %p10361_p2, %p9673_p9 }
  0x79   : > { %p10369_p11 = por %p10368_p10, %p10367_p7 }
  0x7a   : > { %p10363_p6 = pneg %p10362_p5 }
  0x7c   : > { %p10370_p1 = pnand %p10369_p11, %p10363_p6 }
  0x7e   : > { %10373 = shalt.err (!%p10370_p1)  }
  0x7f   : > { %9659 = dma.hbm_to_vmem [thread:$0]  (%p9673_p9), %s7467_s8, 3072, %s226_s6, %s217_s20 }
  0x80   : > { %s10702_s18 = scalar_lea.vmem [#allocation7], %s10617_s30 }
  0x81   : > { %10439 = dma.done.wait %s10639_s4, 3072 }
  0x82   : > { %10440 = vsyncadd %s10639_s4, 4294964224  ;;  %v9744_v0 = vld [vmem:[#allocation4 + $0x100] sm:$0xff]   ;;  %v9747_v3 = vld [vmem:[#allocation4 + $0x108] sm:$0xff]   ;;  %vm368_vm0 = vsmask.f32 7424  ;;  %vm513_vm1 = vcmask 1046528  }
  0x83   : > { %v9745_v1 = vld [vmem:[#allocation4 + $0x140] sm:$0xff]   ;;  %8372 = vmatprep.subr.bf16.mxu0 %v9744_v0  ;;  %v9748_v4 = vld [vmem:[#allocation4 + $0x148] sm:$0xff]   ;;  %v9750_v6 = vld [vmem:[#allocation4 + $0x110] sm:$0xff]   ;;  %vm538_vm2 = vsmask.f32 6400  ;;  %vm3724_vm3 = vcmask 1045504  }
  0x84   : > { %v9746_v2 = vld [vmem:[#allocation4 + $0xc0] sm:$0xff]   ;;  %9092 = vmatprep.subr.bf16.mxu1 %v9745_v1  ;;  %v9749_v5 = vld [vmem:[#allocation4 + $0xc8] sm:$0xff]   ;;  %v9751_v7 = vld [vmem:[#allocation4 + $0x150] sm:$0xff]   ;;  %s8371_s24 = sshll.u32 %s10459_s15, 4  ;;  %s7411_s15 = sshll.u32 %s10702_s18, 4  ;;  %s12318_s15 = int_to_ptr.vmem [resolvable:$true] %s7411_s15 }
  0x85   : > { %8373 = vmatpush3.bf16.msra.mxu0 %v9746_v2  ;;  %9093 = vmatpush3.bf16.msra.mxu1 %v9745_v1  ;;  %v9752_v8 = vld [vmem:[#allocation4 + $0xd0] sm:$0xff]   ;;  %v9753_v9 = vld [vmem:[#allocation4 + $0x118] sm:$0xff]   ;;  %v9756_v12 = vld [vmem:[#allocation4 + $0x120] sm:$0xff]   ;;  %s12422_s25 = sand.u32 1, %s10451_s13   ;;  %s10375_s20 = scalar_lea.vmem %s12318_s15, 2048 }
  0x86   : > { %8374 = vmatprep.subr.bf16.mxu0 %v9747_v3  ;;  %9094 = vmatprep.subr.bf16.mxu1 %v9748_v4  ;;  %v9754_v10 = vld [vmem:[#allocation4 + $0x158] sm:$0xff]   ;;  %v9757_v13 = vld [vmem:[#allocation4 + $0x160] sm:$0xff]   ;;  %v9759_v15 = vld [vmem:[#allocation4 + $0x128] sm:$0xff]   ;;  %s12330_s8 = scalar_lea.sflag [#allocation6], %s12422_s25  ;;  %p10376_p9 = scmp.ne.s32.totalorder %s12318_s15, %s10375_s20 }
  0x87   : > { %v9755_v11 = vld [vmem:[#allocation4 + $0xd8] sm:$0xff]   ;;  %v9758_v14 = vld [vmem:[#allocation4 + $0xe0] sm:$0xff]   ;;  %v9760_v16 = vld [vmem:[#allocation4 + $0x168] sm:$0xff]   ;;  %p12423_p13 = scmp.ne.s32.totalorder %s12405_s26, 0  ;;  %s10481_s21 = smov [#allocation7]  }
  0x88   : > { %v9761_v17 = vld [vmem:[#allocation4 + $0xe8] sm:$0xff]   ;;  %v9762_v18 = vld [vmem:[#allocation4 + $0x130] sm:$0xff]   ;;  %v9765_v21 = vld [vmem:[#allocation4 + $0x138] sm:$0xff]   ;;  %s10379_s23 = sshll.u32 %s10481_s21, 4  ;;  %s10380_s23 = int_to_ptr.vmem [resolvable:$false] %s10379_s23 }
  0x89   : > { %8375 = vmatpush3.bf16.msra.mxu0 %v9749_v5  ;;  %9095 = vmatpush3.bf16.msra.mxu1 %v9748_v4  ;;  %v9763_v19 = vld [vmem:[#allocation4 + $0x170] sm:$0xff]   ;;  %v9766_v24 = vld [vmem:[#allocation4 + $0x178] sm:$0xff]   ;;  %v9774_v37 = vld [vmem:[#allocation4 + $0x40] sm:$0xff]   ;;  %p10377_p12 = pnand %p10376_p9, %p12423_p13  ;;  %s10381_s28 = scalar_lea.vmem %s10380_s23, 4096 }
  0x8a   : > { %8376 = vmatprep.subr.bf16.mxu0 %v9750_v6  ;;  %9096 = vmatprep.subr.bf16.mxu1 %v9751_v7  ;;  %v9764_v20 = vld [vmem:[#allocation4 + $0xf0] sm:$0xff]   ;;  %v9768_v25 = vld [vmem:[%s10632_s11 + $0x38] ss:$0 sps:$4 sm:$0x33]   ;;  %v9775_v38 = vld [vmem:[#allocation4 + $0x1c0] sm:$0xff]   ;;  %p10382_p3 = scmp.lt.s32.totalorder %s12318_s15, %s10380_s23  ;;  %p10383_p8 = scmp.lt.s32.totalorder %s10381_s28, %s10375_s20 }
  0x8b   : > { %v7615_v22 = vld [vmem:[%s10632_s11 + $0x34] sm:$0xf]  ;;  %v7638_v23 = vld [vmem:[%s10632_s11 + $0x30] sm:$0xc]  ;;  %v9767_v29 = vld [vmem:[#allocation4 + $0xf8] sm:$0xff]   ;;  %v1116_v32 = vshll.u32 %v9768_v25, 16  ;;  %p10378_p4 = pneg %p10377_p12 }
  0x8c   : > { %v10709_v26 = vcombine.low %v7638_v23, %v7615_v22  ;;  %v9770_v27 = vld [vmem:[%s10632_s11 + $0x38] ss:$0 sps:$4 sm:$0x77]   ;;  %v7614_v28 = vld [vmem:[%s10632_s11 + $0x30] sm:$0xe]  ;;  %v1120_v33 = vshrl.u32 %v9768_v25, 16  ;;  %p10384_p0 = por %p10383_p8, %p10382_p3 }
  0x8d   : > { %8377 = vmatpush3.bf16.msra.mxu0 %v9752_v8  ;;  %9097 = vmatpush3.bf16.msra.mxu1 %v9751_v7  ;;  %v1253_v35 = vrot.slane %v9770_v27, 1  ;;  %v10716_v36 = vcombine.low %v7614_v28, %v7615_v22  ;;  %v1118_v40 = vrot.slane %v1116_v32, 1  ;;  %v1285_v42 = vrot.slane %v1116_v32, 2  ;;  %v7618_v51 = vld [vmem:[%s10632_s11 + $0x40] sm:$0xf] }
  0x8e   : > { %8378 = vmatprep.subr.bf16.mxu0 %v9753_v9  ;;  %9098 = vmatprep.subr.bf16.mxu1 %v9754_v10  ;;  %v1109_v30 = vshrl.u32 %v10709_v26, 16  ;;  %v1111_v31 = vshll.u32 %v10709_v26, 16  ;;  %v1252_v34 = vrot.slane %v10709_v26, 1  ;;  %v1284_v41 = vrot.slane %v1120_v33, 1  ;;  %v7639_v52 = vld [vmem:[%s10632_s11 + $0x3c] sm:$0xc]  ;;  %p10385_p2 = pnand %p10384_p0, %p10378_p4 }
  0x8f   : > { %v1314_v44 = vshrl.u32 %v1253_v35, 16  ;;  %v1317_v45 = vshll.u32 %v1253_v35, 16  ;;  %v1277_v46 = vshrl.u32 %v10716_v36, 16  ;;  %v1122_v48 = vor.u32 %v1120_v33, %v1118_v40  ;;  %v9773_v53 = vld [vmem:[%s10632_s11 + $0x44] ss:$0 sps:$4 sm:$0x77]  }
  0x90   : > { %v1113_v39 = vrot.slane %v1111_v31, 1  ;;  %v1254_v43 = vsel %vm513_vm1, %v1252_v34, %v1253_v35  ;;  %v1280_v57 = vshll.u32 %v10716_v36, 16  ;;  %v1286_v5 = vor.u32 %v1285_v42, %v1284_v41  ;;  %v10742_v25 = vld [vmem:[%s10632_s11 + $0x4c] sm:$0xf]  ;;  %v7640_v27 = vld [vmem:[%s10632_s11 + $0x48] sm:$0xc] }
  0x91   : > { %8379 = vmatpush3.bf16.msra.mxu0 %v9755_v11  ;;  %9099 = vmatpush3.bf16.msra.mxu1 %v9754_v10  ;;  %v1306_v49 = vshrl.u32 %v1254_v43, 16  ;;  %v1309_v50 = vshll.u32 %v1254_v43, 16  ;;  %v1316_v54 = vrot.slane %v1314_v44, 1  ;;  %v1319_v55 = vrot.slane %v1317_v45, 2  ;;  %v7617_v32 = vld [vmem:[%s10632_s11 + $0x3c] sm:$0xe] }
  0x92   : > { %8380 = vmatprep.subr.bf16.mxu0 %v9756_v12  ;;  %9100 = vmatprep.subr.bf16.mxu1 %v9757_v13  ;;  %v1114_v47 = vor.u32 %v1113_v39, %v1109_v30  ;;  %v1279_v56 = vrot.slane %v1277_v46, 1  ;;  %v1297_v59 = vshrl.u32 %v1122_v48, 16  ;;  %v1300_v60 = vshll.u32 %v1122_v48, 16  ;;  %v9782_v39 = vld [vmem:[%s10632_s11 + $0x50] ss:$0 sps:$4 sm:$0x77]  }
  0x93   : > { %v1308_v61 = vrot.slane %v1306_v49, 1  ;;  %v1311_v0 = vrot.slane %v1309_v50, 2  ;;  %v1320_v1 = vor.u32 %v1319_v55, %v1316_v54  ;;  %v1282_v4 = vrot.slane %v1280_v57, 2  ;;  %v9776_v49 = vld [vmem:[#allocation4] sm:$0xff]   ;;  %v9778_v50 = vld [vmem:[#allocation4 + $0x48] sm:$0xff]  }
  0x94   : > { %v1119_v58 = vsel %vm368_vm0, %v1114_v47, %v1118_v40  ;;  %v1299_v2 = vrot.slane %v1297_v59, 1  ;;  %v1302_v3 = vrot.slane %v1300_v60, 2  ;;  %v10727_v9 = vcombine.low %v7639_v52, %v7618_v51  ;;  %v9787_v59 = vld [vmem:[#allocation4 + $0x1c8] sm:$0xff]  }
  0x95   : > { %8381 = vmatpush3.bf16.msra.mxu0 %v9758_v14  ;;  %9101 = vmatpush3.bf16.msra.mxu1 %v9757_v13  ;;  %v1289_v62 = vshrl.u32 %v1119_v58, 16  ;;  %v1292_v63 = vshll.u32 %v1119_v58, 16  ;;  %v1312_v8 = vor.u32 %v1311_v0, %v1308_v61  ;;  %v1283_v11 = vor.u32 %v1282_v4, %v1279_v56  ;;  %v9777_v13 = vld [vmem:[#allocation4 + $0x180] sm:$0xff]   ;;  %v9785_v58 = vld [vmem:[%s10632_s11 + $0x5c] ss:$0 sps:$4 sm:$0x77]  }
  0x96   : > { %8382 = vmatprep.subr.bf16.mxu0 %v9759_v15  ;;  %9102 = vmatprep.subr.bf16.mxu1 %v9760_v16  ;;  %v1303_v10 = vor.u32 %v1302_v3, %v1299_v2  ;;  %v1256_v12 = vrot.slane %v9773_v53, 1  ;;  %v1126_v22 = vshll.u32 %v10727_v9, 16  ;;  %v10752_v43 = vcombine.low %v7617_v32, %v7618_v51  ;;  %v9779_v61 = vld [vmem:[#allocation4 + $0x8] sm:$0xff]   ;;  %v7641_v2 = vld [vmem:[%s10632_s11 + $0x54] sm:$0xc] }
  0x97   : > { %v1291_v6 = vrot.slane %v1289_v62, 1  ;;  %v1294_v7 = vrot.slane %v1292_v63, 2  ;;  %v1321_v15 = vsel %vm538_vm2, %v1312_v8, %v1320_v1  ;;  %v1259_v47 = vrot.slane %v9782_v39, 1  ;;  %v10764_v1 = vld [vmem:[%s10632_s11 + $0x58] sm:$0xf] }
  0x98   : > { %9108 = vmatprep.mubr.bf16.mxu1 %v1321_v15  ;;  %v1128_v33 = vrot.slane %v1126_v22, 1  ;;  %v1323_v52 = vshrl.u32 %v10752_v43, 16  ;;  %v1326_v53 = vshll.u32 %v10752_v43, 16  ;;  %v9789_v22 = vld [vmem:[#allocation4 + $0x188] sm:$0xff]  }
  0x99   : > { %8383 = vmatpush3.bf16.msra.mxu0 %v9761_v17  ;;  %9103 = vmatpush3.bf16.msra.mxu1 %v9760_v16  ;;  %v1295_v14 = vor.u32 %v1294_v7, %v1291_v6  ;;  %v1255_v16 = vrot.slane %v10727_v9, 1  ;;  %v1124_v17 = vshrl.u32 %v10727_v9, 16  ;;  %v1406_v57 = vshrl.u32 %v1259_v47, 16  ;;  %v9786_v7 = vld [vmem:[#allocation4 + $0x50] sm:$0xff]  }
  0x9a   : > { %8384 = vmatprep.subr.bf16.mxu0 %v9762_v18  ;;  %9104 = vmatprep.subr.bf16.mxu1 %v9763_v19  ;;  %v1287_v18 = vsel %vm538_vm2, %v1283_v11, %v1286_v5 }
  0x9b   : > { %v1304_v23 = vsel %vm538_vm2, %v1295_v14, %v1303_v10  ;;  %v1129_v44 = vor.u32 %v1128_v33, %v1124_v17  ;;  %v1408_v6 = vrot.slane %v1406_v57, 1  ;;  %v1325_v17 = vrot.slane %v1323_v52, 1 }
  0x9c   : > { %1892 = vmatprep.mubr.bf16.mxu0 %v1304_v23 }
  0x9d   : > { %8385 = vmatpush3.bf16.msra.mxu0 %v9764_v20  ;;  %9105 = vmatpush3.bf16.msra.mxu1 %v9763_v19  ;;  %v1360_v19 = vshrl.u32 %v1256_v12, 16  ;;  %v1363_v20 = vshll.u32 %v1256_v12, 16 }
  0x9e   : > { %8386 = vmatprep.subr.bf16.mxu0 %v9765_v21  ;;  %9106 = vmatprep.subr.bf16.mxu1 %v9766_v24  ;;  %v10734_v21 = vld [vmem:[%s10632_s11 + $0x44] ss:$0 sps:$4 sm:$0x33]  }
  0x9f   : > { %v1362_v30 = vrot.slane %v1360_v19, 1  ;;  %v1365_v31 = vrot.slane %v1363_v20, 2  ;;  %v1131_v35 = vshll.u32 %v10734_v21, 16  ;;  %v1328_v20 = vrot.slane %v1326_v53, 2  ;;  %v10781_v53 = vld [vmem:[%s10632_s11 + $0x64] sm:$0xf] }
  0xa1   : > { %8387 = vmatpush3.bf16.msra.mxu0 %v9767_v29  ;;  %9107 = vmatpush3.bf16.msra.mxu1 %v9766_v24  ;;  %v1257_v24 = vsel %vm513_vm1, %v1255_v16, %v1256_v12  ;;  %v1366_v42 = vor.u32 %v1365_v31, %v1362_v30  ;;  %v1133_v45 = vrot.slane %v1131_v35, 1  ;;  %v1409_v12 = vshll.u32 %v1259_v47, 16 }
  0xa2   : > { %8452 = vmatprep.subr.bf16.mxu1 %v9774_v37  ;;  %8532 = vmatprep.subr.bf16.mxu0 %v9775_v38  ;;  %v1352_v28 = vshrl.u32 %v1257_v24, 16  ;;  %v1355_v29 = vshll.u32 %v1257_v24, 16  ;;  %v1135_v37 = vshrl.u32 %v10734_v21, 16  ;;  %v10749_v38 = vcombine.low %v7640_v27, %v10742_v25 }
  0xa3   : > { %v1134_v55 = vsel %vm368_vm0, %v1129_v44, %v1133_v45  ;;  %v1411_v19 = vrot.slane %v1409_v12, 2  ;;  %v1331_v21 = vrot.slane %v1131_v35, 2  ;;  %v10768_v27 = vcombine.low %v7641_v2, %v10764_v1  ;;  %v9791_v44 = vld [vmem:[#allocation4 + $0x18] sm:$0xff]  }
  0xa4   : > { %1893 = vmatmul.mubr.bf16.vlgmr.msra.gmra.mrb[0].mxu0 %v1287_v18  ;;  %v1354_v40 = vrot.slane %v1352_v28, 1  ;;  %v1357_v41 = vrot.slane %v1355_v29, 2  ;;  %v12401_v46 = vrot.slane %v10749_v38, 1  ;;  %v1330_v54 = vrot.slane %v1135_v37, 1  ;;  %v9788_v29 = vld [vmem:[#allocation4 + $0x10] sm:$0xff]  }
  0xa5   : > { %8533 = vmatpush3.bf16.msra.mxu0 %v9777_v13  ;;  %v1137_v56 = vor.u32 %v1135_v37, %v1133_v45  ;;  %v1335_v62 = vshrl.u32 %v1134_v55, 16  ;;  %v1338_v63 = vshll.u32 %v1134_v55, 16  ;;  %v1262_v28 = vrot.slane %v9785_v58, 1  ;;  %v9792_v45 = vld [vmem:[%s10632_s11 + $0x50] ss:$0 sps:$4 sm:$0x33]  }
  0xa6   : > { %v1358_v48 = vor.u32 %v1357_v41, %v1354_v40  ;;  %v1260_v51 = vsel %vm513_vm1, %v12401_v46, %v1259_v47  ;;  %8534 = vmatprep.subr.bf16.mxu0 %v9787_v59  ;;  %v1412_v30 = vor.u32 %v1411_v19, %v1408_v6  ;;  %v1329_v31 = vor.u32 %v1328_v20, %v1325_v17  ;;  %v9790_v40 = vld [vmem:[#allocation4 + $0x58] sm:$0xff]   ;;  %v9798_v55 = vld [vmem:[#allocation4 + $0x60] sm:$0xff]  }
  0xa7   : > { %v1398_v0 = vshrl.u32 %v1260_v51, 16  ;;  %v1343_v3 = vshrl.u32 %v1137_v56, 16  ;;  %v1346_v4 = vshll.u32 %v1137_v56, 16  ;;  %v1401_v5 = vshll.u32 %v1260_v51, 16 }
  0xa8   : > { %v1367_v60 = vsel %vm538_vm2, %v1358_v48, %v1366_v42  ;;  %v1337_v8 = vrot.slane %v1335_v62, 1  ;;  %v1340_v10 = vrot.slane %v1338_v63, 2  ;;  %v1332_v32 = vor.u32 %v1331_v21, %v1330_v54  ;;  %v7642_v54 = vld [vmem:[%s10632_s11 + $0x60] sm:$0xc]  ;;  %v7620_v63 = vld [vmem:[%s10632_s11 + $0x48] sm:$0xe] }
  0xa9   : > { %9109 = vmatmul.mubr.bf16.vlgmr.msra.gmra.mrb[0].mxu1 %v1367_v60  ;;  %v1400_v11 = vrot.slane %v1398_v0, 1  ;;  %v1345_v13 = vrot.slane %v1343_v3, 1  ;;  %v1348_v14 = vrot.slane %v1346_v4, 2  ;;  %v1403_v15 = vrot.slane %v1401_v5, 2  ;;  %8535 = vmatpush3.bf16.msra.mxu0 %v9789_v22  ;;  %v9799_v5 = vld [vmem:[#allocation4 + $0x1d0] sm:$0xff]  }
  0xaa   : > { %8453 = vmatpush3.bf16.msra.mxu1 %v9776_v49  ;;  %v1341_v18 = vor.u32 %v1340_v10, %v1337_v8  ;;  %v12400_v37 = vrot.slane %v10768_v27, 1  ;;  %v1452_v39 = vshrl.u32 %v1262_v28, 16  ;;  %v1455_v35 = vshll.u32 %v1262_v28, 16  ;;  %v9794_v62 = vld [vmem:[%s10632_s11 + $0x68] ss:$0 sps:$4 sm:$0x77]   ;;  %8536 = vmatprep.subr.bf16.mxu0 %v9799_v5 }
  0xab   : > { %8454 = vmatprep.subr.bf16.mxu1 %v9778_v50  ;;  %v1349_v23 = vor.u32 %v1348_v14, %v1345_v13  ;;  %v1404_v24 = vor.u32 %v1403_v15, %v1400_v11  ;;  %v1333_v42 = vsel %vm538_vm2, %v1329_v31, %v1332_v32  ;;  %v1139_v47 = vshrl.u32 %v10749_v38, 16  ;;  %v9800_v15 = vld [vmem:[#allocation4 + $0x20] sm:$0xff]   ;;  %v10800_v21 = vld [vmem:[%s10632_s11 + $0x70] sm:$0xf]  ;;  %v9802_v31 = vld [vmem:[#allocation4 + $0x68] sm:$0xff]  }
  0xac   : > { %v1141_v48 = vshll.u32 %v10749_v38, 16  ;;  %v1263_v49 = vsel %vm513_vm1, %v12400_v37, %v1262_v28  ;;  %v1454_v50 = vrot.slane %v1452_v39, 1  ;;  %v1457_v52 = vrot.slane %v1455_v35, 2  ;;  %v9797_v22 = vld [vmem:[%s10632_s11 + $0x74] ss:$0 sps:$4 sm:$0x77]  }
  0xad   : > { %v1350_v33 = vsel %vm538_vm2, %v1341_v18, %v1349_v23  ;;  %v1413_v41 = vsel %vm538_vm2, %v1404_v24, %v1412_v30  ;;  %v1444_v56 = vshrl.u32 %v1263_v49, 16  ;;  %v1447_v51 = vshll.u32 %v1263_v49, 16  ;;  %v9801_v23 = vld [vmem:[#allocation4 + $0x190] sm:$0xff]  }
  0xae   : > { %8455 = vmatpush3.bf16.msra.mxu1 %v9779_v61  ;;  %1900 = vmatprep.mubr.bf16.mxu0 %v1350_v33  ;;  %v1143_v57 = vrot.slane %v1141_v48, 1  ;;  %v1146_v58 = vshll.u32 %v9792_v45, 16  ;;  %v1458_v59 = vor.u32 %v1457_v52, %v1454_v50  ;;  %v1150_v60 = vshrl.u32 %v9792_v45, 16  ;;  %v9803_v50 = vld [vmem:[#allocation4 + $0x28] sm:$0xff]  }
  0xaf   : > { %8456 = vmatprep.subr.bf16.mxu1 %v9786_v7  ;;  %9112 = vmatprep.mubr.bf16.mxu1 %v1413_v41  ;;  %v10785_v61 = vcombine.low %v7642_v54, %v10781_v53  ;;  %v1446_v0 = vrot.slane %v1444_v56, 1  ;;  %v1449_v2 = vrot.slane %v1447_v51, 2  ;;  %v1265_v7 = vrot.slane %v9794_v62, 1  ;;  %v9810_v51 = vld [vmem:[#allocation4 + $0x70] sm:$0xff]   ;;  %v9811_v62 = vld [vmem:[#allocation4 + $0x1d8] sm:$0xff]  }
  0xb0   : > { %1901 = vmatmul.mubr.bf16.gmra.mrb[4].mxu0 %v1333_v42  ;;  %v1144_v3 = vor.u32 %v1143_v57, %v1139_v47  ;;  %v1148_v4 = vrot.slane %v1146_v58, 1  ;;  %v10791_v8 = vcombine.low %v7620_v63, %v10742_v25  ;;  %v10793_v10 = vrot.slane %v1150_v60, 1  ;;  %v7643_v25 = vld [vmem:[%s10632_s11 + $0x6c] sm:$0xc] }
  0xb1   : > { %v12399_v6 = vrot.slane %v10785_v61, 1  ;;  %v1450_v11 = vor.u32 %v1449_v2, %v1446_v0  ;;  %v1377_v14 = vrot.slane %v1146_v58, 2  ;;  %v1498_v20 = vshrl.u32 %v1265_v7, 16  ;;  %8537 = vmatpush3.bf16.msra.mxu0 %v9801_v23 }
  0xb2   : > { %8457 = vmatpush3.bf16.msra.mxu1 %v9788_v29  ;;  %v1149_v12 = vsel %vm368_vm0, %v1144_v3, %v1148_v4  ;;  %v1152_v13 = vor.u32 %v1150_v60, %v1148_v4  ;;  %v1369_v48 = vshrl.u32 %v10791_v8, 16  ;;  %v1372_v49 = vshll.u32 %v10791_v8, 16  ;;  %8538 = vmatprep.subr.bf16.mxu0 %v9811_v62 }
  0xb3   : > { %8458 = vmatprep.subr.bf16.mxu1 %v9790_v40  ;;  %v1381_v17 = vshrl.u32 %v1149_v12, 16  ;;  %v1384_v18 = vshll.u32 %v1149_v12, 16  ;;  %v1266_v19 = vsel %vm513_vm1, %v12399_v6, %v1265_v7  ;;  %v1459_v24 = vsel %vm538_vm2, %v1450_v11, %v1458_v59  ;;  %v9804_v12 = vld [vmem:[%s10632_s11 + $0x5c] ss:$0 sps:$4 sm:$0x33]  }
  0xb4   : > { %v1389_v28 = vshrl.u32 %v1152_v13, 16  ;;  %v1392_v29 = vshll.u32 %v1152_v13, 16  ;;  %v1490_v30 = vshrl.u32 %v1266_v19, 16  ;;  %9113 = vmatmul.mubr.bf16.gmra.mrb[4].mxu1 %v1459_v24  ;;  %v1493_v39 = vshll.u32 %v1266_v19, 16  ;;  %v10822_v19 = vld [vmem:[%s10632_s11 + $0x7c] sm:$0xf] }
  0xb5   : > { %v1383_v32 = vrot.slane %v1381_v17, 1  ;;  %v1386_v33 = vrot.slane %v1384_v18, 2  ;;  %v1500_v35 = vrot.slane %v1498_v20, 1  ;;  %v10809_v56 = vcombine.low %v7643_v25, %v10800_v21  ;;  %v9812_v20 = vld [vmem:[#allocation4 + $0x30] sm:$0xff]  }
  0xb6   : > { %8459 = vmatpush3.bf16.msra.mxu1 %v9791_v44  ;;  %v1391_v40 = vrot.slane %v1389_v28, 1  ;;  %v1394_v41 = vrot.slane %v1392_v29, 2  ;;  %v1492_v42 = vrot.slane %v1490_v30, 1  ;;  %v1501_v44 = vshll.u32 %v1265_v7, 16  ;;  %v7644_v28 = vld [vmem:[%s10632_s11 + $0x78] sm:$0xc] }
  0xb7   : > { %8460 = vmatprep.subr.bf16.mxu1 %v9798_v55  ;;  %v1387_v45 = vor.u32 %v1386_v33, %v1383_v32  ;;  %v1495_v47 = vrot.slane %v1493_v39, 2  ;;  %v1378_v55 = vor.u32 %v1377_v14, %v10793_v10  ;;  %v1371_v58 = vrot.slane %v1369_v48, 1  ;;  %v7623_v32 = vld [vmem:[%s10632_s11 + $0x54] sm:$0xe]  ;;  %v9813_v48 = vld [vmem:[#allocation4 + $0x198] sm:$0xff]  }
  0xb8   : > { %v1395_v52 = vor.u32 %v1394_v41, %v1391_v40  ;;  %v1503_v54 = vrot.slane %v1501_v44, 2  ;;  %v1374_v59 = vrot.slane %v1372_v49, 2  ;;  %v1268_v60 = vrot.slane %v9797_v22, 1  ;;  %v9806_v40 = vld [vmem:[%s10632_s11 + $0x80] ss:$0 sps:$4 sm:$0x77]   ;;  %8539 = vmatpush3.bf16.msra.mxu0 %v9813_v48 }
  0xb9   : > { %v1496_v57 = vor.u32 %v1495_v47, %v1492_v42  ;;  %v12398_v2 = vrot.slane %v10809_v56, 1  ;;  %v1154_v3 = vshrl.u32 %v10768_v27, 16  ;;  %v1156_v13 = vshll.u32 %v10768_v27, 16 }
  0xba   : > { %8461 = vmatpush3.bf16.msra.mxu1 %v9800_v15  ;;  %v1396_v63 = vsel %vm538_vm2, %v1387_v45, %v1395_v52  ;;  %v1504_v0 = vor.u32 %v1503_v54, %v1500_v35  ;;  %v1375_v4 = vor.u32 %v1374_v59, %v1371_v58  ;;  %v1544_v5 = vshrl.u32 %v1268_v60, 16  ;;  %v9809_v58 = vld [vmem:[%s10632_s11 + $0x8c] ss:$0 sps:$4 sm:$0x77]  }
  0xbb   : > { %8462 = vmatprep.subr.bf16.mxu1 %v9802_v31  ;;  %1908 = vmatprep.mubr.bf16.mxu0 %v1396_v63  ;;  %v1547_v7 = vshll.u32 %v1268_v60, 16  ;;  %v1269_v11 = vsel %vm513_vm1, %v12398_v2, %v1268_v60  ;;  %v1158_v22 = vrot.slane %v1156_v13, 1  ;;  %v1161_v23 = vshll.u32 %v9804_v12, 16 }
  0xbc   : > { %v1505_v10 = vsel %vm538_vm2, %v1496_v57, %v1504_v0  ;;  %v1379_v14 = vsel %vm538_vm2, %v1375_v4, %v1378_v55  ;;  %v1536_v15 = vshrl.u32 %v1269_v11, 16  ;;  %v1539_v17 = vshll.u32 %v1269_v11, 16  ;;  %v10843_v0 = vld [vmem:[%s10632_s11 + $0x88] sm:$0xf]  ;;  %v9814_v4 = vld [vmem:[#allocation4 + $0x78] sm:$0xff]  }
  0xbd   : > { %9116 = vmatprep.mubr.bf16.mxu1 %v1505_v10  ;;  %v1546_v18 = vrot.slane %v1544_v5, 1  ;;  %1909 = vmatmul.mubr.bf16.gmra.mrb[8].mxu0 %v1379_v14  ;;  %v1549_v25 = vrot.slane %v1547_v7, 2  ;;  %v1165_v24 = vshrl.u32 %v9804_v12, 16  ;;  %v10826_v31 = vcombine.low %v7644_v28, %v10822_v19 }
  0xbe   : > { %8463 = vmatpush3.bf16.msra.mxu1 %v9803_v50  ;;  %v1538_v29 = vrot.slane %v1536_v15, 1  ;;  %v1541_v30 = vrot.slane %v1539_v17, 2  ;;  %v1159_v39 = vor.u32 %v1158_v22, %v1154_v3  ;;  %v1163_v35 = vrot.slane %v1161_v23, 1  ;;  %v7645_v3 = vld [vmem:[%s10632_s11 + $0x84] sm:$0xc]  ;;  %v9815_v22 = vld [vmem:[#allocation4 + $0x38] sm:$0xff]  }
  0xbf   : > { %8464 = vmatprep.subr.bf16.mxu1 %v9810_v51  ;;  %v1550_v33 = vor.u32 %v1549_v25, %v1546_v18  ;;  %v10831_v41 = vcombine.low %v7623_v32, %v10764_v1  ;;  %v12397_v44 = vrot.slane %v10826_v31, 1  ;;  %v1422_v45 = vrot.slane %v1165_v24, 1 }
  0xc0   : > { %v1542_v42 = vor.u32 %v1541_v30, %v1538_v29  ;;  %v1423_v47 = vrot.slane %v1161_v23, 2  ;;  %v1164_v49 = vsel %vm368_vm0, %v1159_v39, %v1163_v35  ;;  %v1167_v50 = vor.u32 %v1165_v24, %v1163_v35 }
  0xc1   : > { %v1271_v52 = vrot.slane %v9806_v40, 1  ;;  %v1415_v54 = vshrl.u32 %v10831_v41, 16  ;;  %v1427_v51 = vshrl.u32 %v1164_v49, 16  ;;  %v1430_v57 = vshll.u32 %v1164_v49, 16 }
  0xc2   : > { %8465 = vmatpush3.bf16.msra.mxu1 %v9812_v20  ;;  %v1551_v55 = vsel %vm538_vm2, %v1542_v42, %v1550_v33  ;;  %v1418_v1 = vshll.u32 %v10831_v41, 16  ;;  %v1435_v59 = vshrl.u32 %v1167_v50, 16  ;;  %v1438_v60 = vshll.u32 %v1167_v50, 16 }
  0xc3   : > { %9117 = vmatmul.mubr.bf16.gmra.mrb[8].mxu1 %v1551_v55  ;;  %v1272_v62 = vsel %vm513_vm1, %v12397_v44, %v1271_v52  ;;  %v1590_v63 = vshrl.u32 %v1271_v52, 16  ;;  %v1429_v5 = vrot.slane %v1427_v51, 1  ;;  %v1432_v7 = vrot.slane %v1430_v57, 2  ;;  %8466 = vmatprep.subr.bf16.mxu1 %v9814_v4  ;;  %v10859_v55 = vld [vmem:[%s10632_s11 + $0x28] sm:$0xf]  ;;  %v9821_v51 = vld [vmem:[#allocation4 + $0x1e0] sm:$0xff]  }
  0xc4   : > { %v1582_v10 = vshrl.u32 %v1272_v62, 16  ;;  %v1585_v11 = vshll.u32 %v1272_v62, 16  ;;  %v1437_v12 = vrot.slane %v1435_v59, 1  ;;  %v1440_v13 = vrot.slane %v1438_v60, 2  ;;  %v9822_v60 = vld [vmem:[#allocation4 + $0x1a0] sm:$0xff]   ;;  %8540 = vmatprep.subr.bf16.mxu0 %v9821_v51 }
  0xc5   : > { %v1592_v14 = vrot.slane %v1590_v63, 1  ;;  %v1593_v15 = vshll.u32 %v1271_v52, 16  ;;  %v1433_v17 = vor.u32 %v1432_v7, %v1429_v5  ;;  %v1417_v25 = vrot.slane %v1415_v54, 1  ;;  %v10856_v54 = vld [vmem:[%s10632_s11 + $0x68] ss:$0 sps:$4 sm:$0x33]   ;;  %8541 = vmatpush3.bf16.msra.mxu0 %v9822_v60 }
  0xc6   : > { %v1584_v18 = vrot.slane %v1582_v10, 1  ;;  %v1587_v20 = vrot.slane %v1585_v11, 2  ;;  %v1441_v23 = vor.u32 %v1440_v13, %v1437_v12  ;;  %v1420_v28 = vrot.slane %v1418_v1, 2  ;;  %8467 = vmatpush3.bf16.msra.mxu1 %v9815_v22  ;;  %v7566_v5 = vld [vmem:[%s10632_s11 + $0x24] sm:$0xc] }
  0xc7   : > { %v1595_v24 = vrot.slane %v1593_v15, 2  ;;  %v1424_v29 = vor.u32 %v1423_v47, %v1422_v45  ;;  %v10847_v32 = vcombine.low %v7645_v3, %v10843_v0  ;;  %v1274_v33 = vrot.slane %v9809_v58, 1  ;;  %v10868_v11 = vld [vmem:[%s10632_s11 + $0x2c] ss:$0 sps:$4 sm:$0x33]  }
  0xc8   : > { %v1588_v30 = vor.u32 %v1587_v20, %v1584_v18  ;;  %v1169_v39 = vshrl.u32 %v10785_v61, 16  ;;  %v1442_v35 = vsel %vm538_vm2, %v1433_v17, %v1441_v23  ;;  %v1421_v42 = vor.u32 %v1420_v28, %v1417_v25  ;;  %v7626_v13 = vld [vmem:[%s10632_s11 + $0x60] sm:$0xe]  ;;  %v9828_v25 = vld [vmem:[#allocation4 + $0x1e8] sm:$0xff]   ;;  %v7573_v44 = vld [vmem:[%s10632_s11 + $0x78] sm:$0xc] }
  0xc9   : > { %v1596_v40 = vor.u32 %v1595_v24, %v1592_v14  ;;  %1916 = vmatprep.mubr.bf16.mxu0 %v1442_v35  ;;  %v12396_v48 = vrot.slane %v10847_v32, 1  ;;  %v1636_v49 = vshrl.u32 %v1274_v33, 16  ;;  %v1639_v50 = vshll.u32 %v1274_v33, 16  ;;  %8542 = vmatprep.subr.bf16.mxu0 %v9828_v25  ;;  %v9829_v35 = vld [vmem:[#allocation4 + $0x1a8] sm:$0xff]  }
  0xca   : > { %v1171_v45 = vshll.u32 %v10785_v61, 16  ;;  %v1425_v52 = vsel %vm538_vm2, %v1421_v42, %v1424_v29  ;;  %v1176_v3 = vshll.u32 %v10856_v54, 16  ;;  %v1180_v4 = vshrl.u32 %v10856_v54, 16  ;;  %8543 = vmatpush3.bf16.msra.mxu0 %v9829_v35  ;;  %v9835_v54 = vld [vmem:[#allocation4 + $0x1f0] sm:$0xff]   ;;  %v9842_v35 = vld [vmem:[#allocation4 + $0x1f8] sm:$0xff]  }
  0xcb   : > { %v1597_v47 = vsel %vm538_vm2, %v1588_v30, %v1596_v40  ;;  %1917 = vmatmul.mubr.bf16.gmra.mrb[12].mxu0 %v1425_v52  ;;  %v1275_v57 = vsel %vm513_vm1, %v12396_v48, %v1274_v33  ;;  %v1638_v1 = vrot.slane %v1636_v49, 1  ;;  %v1641_v58 = vrot.slane %v1639_v50, 2  ;;  %8544 = vmatprep.subr.bf16.mxu0 %v9835_v54 }
  0xcc   : > { %9120 = vmatprep.mubr.bf16.mxu1 %v1597_v47  ;;  %v1173_v59 = vrot.slane %v1171_v45, 1  ;;  %v1628_v62 = vshrl.u32 %v1275_v57, 16  ;;  %v1631_v63 = vshll.u32 %v1275_v57, 16  ;;  %v10871_v12 = vcombine.low %v7566_v5, %v10859_v55 }
  0xcd   : > { %v1642_v7 = vor.u32 %v1641_v58, %v1638_v1  ;;  %v1184_v14 = vshrl.u32 %v10809_v56, 16  ;;  %v1178_v18 = vrot.slane %v1176_v3, 1  ;;  %v10876_v20 = vcombine.low %v7626_v13, %v10781_v53 }
  0xce   : > { %v1174_v10 = vor.u32 %v1173_v59, %v1169_v39  ;;  %v1630_v15 = vrot.slane %v1628_v62, 1  ;;  %v1633_v17 = vrot.slane %v1631_v63, 2  ;;  %v370_v22 = vshrl.u32 %v10871_v12, 16  ;;  %v9836_v59 = vld [vmem:[#allocation4 + $0x1b0] sm:$0xff]  }
  0xcf   : > { %v372_v23 = vshll.u32 %v10871_v12, 16  ;;  %v377_v24 = vshll.u32 %v10868_v11, 16  ;;  %v381_v28 = vshrl.u32 %v10868_v11, 16  ;;  %v1182_v33 = vor.u32 %v1180_v4, %v1178_v18  ;;  %8545 = vmatpush3.bf16.msra.mxu0 %v9836_v59 }
  0xd0   : > { %v1634_v29 = vor.u32 %v1633_v17, %v1630_v15  ;;  %v1179_v30 = vsel %vm368_vm0, %v1174_v10, %v1178_v18  ;;  %v1461_v39 = vshrl.u32 %v10876_v20, 16  ;;  %v1464_v63 = vshll.u32 %v10876_v20, 16  ;;  %v7542_v10 = vld [vmem:[%s10632_s11 + $0x24] sm:$0xe]  ;;  %8546 = vmatprep.subr.bf16.mxu0 %v9842_v35 }
  0xd1   : > { %v1473_v40 = vshrl.u32 %v1179_v30, 16  ;;  %v1476_v53 = vshll.u32 %v1179_v30, 16  ;;  %v374_v42 = vrot.slane %v372_v23, 1  ;;  %v379_v49 = vrot.slane %v377_v24, 1 }
  0xd2   : > { %v1643_v50 = vsel %vm538_vm2, %v1634_v29, %v1642_v7  ;;  %v1481_v45 = vshrl.u32 %v1182_v33, 16  ;;  %v1484_v47 = vshll.u32 %v1182_v33, 16  ;;  %v1463_v52 = vrot.slane %v1461_v39, 1  ;;  %v10889_v23 = vld [vmem:[%s10632_s11 + $0x74] ss:$0 sps:$4 sm:$0x33]  }
  0xd3   : > { %9121 = vmatmul.mubr.bf16.gmra.mrb[12].mxu1 %v1643_v50  ;;  %v1475_v51 = vrot.slane %v1473_v40, 1  ;;  %v1478_v57 = vrot.slane %v1476_v53, 2  ;;  %v375_v1 = vor.u32 %v374_v42, %v370_v22  ;;  %v383_v58 = vor.u32 %v381_v28, %v379_v49  ;;  %v10893_v39 = vld [vmem:[%s10632_s11 + $0x38] ss:$0 sps:$4 sm:$0x33]  }
  0xd4   : > { %v1483_v60 = vrot.slane %v1481_v45, 1  ;;  %v1486_v62 = vrot.slane %v1484_v47, 2  ;;  %v1468_v5 = vrot.slane %v1180_v4, 1  ;;  %v1466_v22 = vrot.slane %v1464_v63, 2  ;;  %v10897_v50 = vld [vmem:[%s10632_s11 + $0x34] sm:$0xf] }
  0xd5   : > { %v1479_v7 = vor.u32 %v1478_v57, %v1475_v51  ;;  %v380_v11 = vsel %vm368_vm0, %v375_v1, %v379_v49  ;;  %v560_v13 = vshrl.u32 %v383_v58, 16  ;;  %v563_v15 = vshll.u32 %v383_v58, 16  ;;  %v7567_v45 = vld [vmem:[%s10632_s11 + $0x30] sm:$0xc]  ;;  %v7629_v1 = vld [vmem:[%s10632_s11 + $0x6c] sm:$0xe] }
  0xd6   : > { %v1487_v17 = vor.u32 %v1486_v62, %v1483_v60  ;;  %v552_v18 = vshrl.u32 %v380_v11, 16  ;;  %v555_v25 = vshll.u32 %v380_v11, 16  ;;  %v1469_v4 = vrot.slane %v1176_v3, 2  ;;  %v9843_v60 = vld [vmem:[#allocation4 + $0x1b8] sm:$0xff]  }
  0xd7   : > { %v562_v29 = vrot.slane %v560_v13, 1  ;;  %v565_v30 = vrot.slane %v563_v15, 2  ;;  %v7582_v33 = vcombine.low %v7542_v10, %v10859_v55  ;;  %v1467_v49 = vor.u32 %v1466_v22, %v1463_v52  ;;  %8547 = vmatpush3.bf16.msra.mxu0 %v9843_v60 }
  0xd8   : > { %v1488_v40 = vsel %vm538_vm2, %v1479_v7, %v1487_v17  ;;  %v554_v53 = vrot.slane %v552_v18, 1  ;;  %v557_v42 = vrot.slane %v555_v25, 2  ;;  %v1470_v54 = vor.u32 %v1469_v4, %v1468_v5  ;;  %v9849_v7 = vld [vmem:[#allocation4 + $0x80] sm:$0xff]  }
  0xd9   : > { %1924 = vmatprep.mubr.bf16.mxu0 %v1488_v40  ;;  %v566_v47 = vor.u32 %v565_v30, %v562_v29  ;;  %v540_v51 = vshrl.u32 %v7582_v33, 16  ;;  %v543_v57 = vshll.u32 %v7582_v33, 16  ;;  %v547_v55 = vrot.slane %v381_v28, 1  ;;  %v9851_v17 = vld [vmem:[#allocation4 + $0x280] sm:$0xff]   ;;  %9124 = vmatprep.subr.bf16.mxu1 %v9849_v7 }
  0xda   : > { %v558_v3 = vor.u32 %v557_v42, %v554_v53  ;;  %v548_v58 = vrot.slane %v377_v24, 2  ;;  %v1186_v59 = vshll.u32 %v10809_v56, 16  ;;  %v1471_v62 = vsel %vm538_vm2, %v1467_v49, %v1470_v54  ;;  %8612 = vmatprep.subr.bf16.mxu0 %v9851_v17  ;;  %v9853_v49 = vld [vmem:[#allocation4 + $0x88] sm:$0xff]  }
  0xdb   : > { %v542_v63 = vrot.slane %v540_v51, 1  ;;  %v545_v52 = vrot.slane %v543_v57, 2  ;;  %v1191_v10 = vshll.u32 %v10889_v23, 16  ;;  %1925 = vmatmul.mubr.bf16.gmra.mrb[16].mxu0 %v1471_v62  ;;  %v1195_v15 = vshrl.u32 %v10889_v23, 16 }
  0xdc   : > { %v567_v11 = vsel %vm538_vm2, %v558_v3, %v566_v47  ;;  %v549_v5 = vor.u32 %v548_v58, %v547_v55  ;;  %v1188_v13 = vrot.slane %v1186_v59, 1  ;;  %v10907_v18 = vcombine.low %v7567_v45, %v10897_v50  ;;  %v9859_v58 = vld [vmem:[#allocation4 + $0x90] sm:$0xff]  }
  0xdd   : > { %2230 = vmatprep.mubr.bf16.mxu1 %v567_v11  ;;  %v546_v24 = vor.u32 %v545_v52, %v542_v63  ;;  %v1193_v28 = vrot.slane %v1191_v10, 1  ;;  %v392_v25 = vshll.u32 %v10893_v39, 16  ;;  %v396_v29 = vshrl.u32 %v10893_v39, 16 }
  0xde   : > { %v1189_v22 = vor.u32 %v1188_v13, %v1184_v14  ;;  %v10914_v30 = vcombine.low %v7629_v1, %v10800_v21  ;;  %v1514_v23 = vrot.slane %v1195_v15, 1  ;;  %v385_v35 = vshrl.u32 %v10907_v18, 16  ;;  %v7545_v21 = vld [vmem:[%s10632_s11 + $0x30] sm:$0xe] }
  0xdf   : > { %v550_v4 = vsel %vm538_vm2, %v546_v24, %v549_v5  ;;  %v1197_v33 = vor.u32 %v1195_v15, %v1193_v28  ;;  %v387_v40 = vshll.u32 %v10907_v18, 16  ;;  %v394_v42 = vrot.slane %v392_v25, 1 }
  0xe0   : > { %2231 = vmatmul.mubr.bf16.vlgmr.msra.gmra.mrb[16].mxu1 %v550_v4  ;;  %v1194_v53 = vsel %vm368_vm0, %v1189_v22, %v1193_v28  ;;  %v1507_v14 = vshrl.u32 %v10914_v30, 16  ;;  %v1510_v39 = vshll.u32 %v10914_v30, 16  ;;  %v7584_v24 = vcombine.low %v7545_v21, %v10897_v50  ;;  %v9830_v28 = vld [vmem:[%s10632_s11 + $0x80] ss:$0 sps:$4 sm:$0x33]  }
  0xe1   : > { %v1519_v45 = vshrl.u32 %v1194_v53, 16  ;;  %v1522_v47 = vshll.u32 %v1194_v53, 16  ;;  %v1527_v54 = vshrl.u32 %v1197_v33, 16  ;;  %v1530_v51 = vshll.u32 %v1197_v33, 16  ;;  %9125 = vmatpush3.bf16.msra.mxu1 %v9849_v7 }
  0xe2   : > { %v389_v57 = vrot.slane %v387_v40, 1  ;;  %v398_v1 = vor.u32 %v396_v29, %v394_v42  ;;  %v1509_v3 = vrot.slane %v1507_v14, 1  ;;  %v1512_v55 = vrot.slane %v1510_v39, 2  ;;  %9126 = vmatprep.subr.bf16.mxu1 %v9853_v49 }
  0xe3   : > { %v1521_v59 = vrot.slane %v1519_v45, 1  ;;  %v1524_v60 = vrot.slane %v1522_v47, 2  ;;  %v1529_v62 = vrot.slane %v1527_v54, 1  ;;  %v1532_v63 = vrot.slane %v1530_v51, 2  ;;  %v10928_v45 = vld [vmem:[%s10632_s11 + $0x40] sm:$0xf] }
  0xe4   : > { %v390_v52 = vor.u32 %v389_v57, %v385_v35  ;;  %v606_v11 = vshrl.u32 %v398_v1, 16  ;;  %v609_v5 = vshll.u32 %v398_v1, 16  ;;  %v1513_v13 = vor.u32 %v1512_v55, %v1509_v3  ;;  %v7632_v1 = vld [vmem:[%s10632_s11 + $0x78] sm:$0xe] }
  0xe5   : > { %v1525_v15 = vor.u32 %v1524_v60, %v1521_v59  ;;  %v1533_v17 = vor.u32 %v1532_v63, %v1529_v62  ;;  %v1515_v7 = vrot.slane %v1191_v10, 2  ;;  %9127 = vmatpush3.bf16.msra.mxu1 %v9853_v49  ;;  %v593_v40 = vrot.slane %v396_v29, 1  ;;  %v7568_v10 = vld [vmem:[%s10632_s11 + $0x3c] sm:$0xc] }
  0xe6   : > { %v395_v22 = vsel %vm368_vm0, %v390_v52, %v394_v42  ;;  %v608_v4 = vrot.slane %v606_v11, 1  ;;  %v611_v33 = vrot.slane %v609_v5, 2  ;;  %9128 = vmatprep.subr.bf16.mxu1 %v9859_v58  ;;  %v586_v21 = vshrl.u32 %v7584_v24, 16  ;;  %v10932_v42 = vld [vmem:[%s10632_s11 + $0x44] ss:$0 sps:$4 sm:$0x33]  }
  0xe7   : > { %v1534_v35 = vsel %vm538_vm2, %v1525_v15, %v1533_v17  ;;  %v598_v53 = vshrl.u32 %v395_v22, 16  ;;  %v601_v14 = vshll.u32 %v395_v22, 16  ;;  %v1516_v39 = vor.u32 %v1515_v7, %v1514_v23  ;;  %v9863_v60 = vld [vmem:[#allocation4 + $0x98] sm:$0xff]  }
  0xe8   : > { %1932 = vmatprep.mubr.bf16.mxu0 %v1534_v35  ;;  %v612_v50 = vor.u32 %v611_v33, %v608_v4  ;;  %v589_v49 = vshll.u32 %v7584_v24, 16  ;;  %v594_v47 = vrot.slane %v392_v25, 2  ;;  %v1199_v57 = vshrl.u32 %v10826_v31, 16 }
  0xe9   : > { %v600_v54 = vrot.slane %v598_v53, 1  ;;  %v603_v51 = vrot.slane %v601_v14, 2  ;;  %v1517_v29 = vsel %vm538_vm2, %v1513_v13, %v1516_v39  ;;  %9129 = vmatpush3.bf16.msra.mxu1 %v9859_v58  ;;  %v588_v23 = vrot.slane %v586_v21, 1  ;;  %v9869_v58 = vld [vmem:[#allocation4 + $0xa0] sm:$0xff]  }
  0xea   : > { %1933 = vmatmul.mubr.bf16.gmra.mrb[20].mxu0 %v1517_v29  ;;  %v591_v3 = vrot.slane %v589_v49, 2  ;;  %v595_v55 = vor.u32 %v594_v47, %v593_v40  ;;  %v1201_v59 = vshll.u32 %v10826_v31, 16  ;;  %v1206_v63 = vshll.u32 %v9830_v28, 16  ;;  %9130 = vmatprep.subr.bf16.mxu1 %v9863_v60 }
  0xeb   : > { %v604_v62 = vor.u32 %v603_v51, %v600_v54  ;;  %v1210_v25 = vshrl.u32 %v9830_v28, 16  ;;  %v10939_v52 = vcombine.low %v7568_v10, %v10928_v45  ;;  %v407_v13 = vshll.u32 %v10932_v42, 16 }
  0xec   : > { %v592_v11 = vor.u32 %v591_v3, %v588_v23  ;;  %v1203_v5 = vrot.slane %v1201_v59, 1  ;;  %v411_v15 = vshrl.u32 %v10932_v42, 16  ;;  %v1208_v7 = vrot.slane %v1206_v63, 1 }
  0xed   : > { %v613_v17 = vsel %vm538_vm2, %v604_v62, %v612_v50  ;;  %v400_v24 = vshrl.u32 %v10939_v52, 16  ;;  %v402_v22 = vshll.u32 %v10939_v52, 16  ;;  %9131 = vmatpush3.bf16.msra.mxu1 %v9863_v60  ;;  %v409_v33 = vrot.slane %v407_v13, 1  ;;  %v7548_v62 = vld [vmem:[%s10632_s11 + $0x3c] sm:$0xe] }
  0xee   : > { %2238 = vmatprep.mubr.bf16.mxu1 %v613_v17  ;;  %v596_v28 = vsel %vm538_vm2, %v592_v11, %v595_v55  ;;  %v1204_v4 = vor.u32 %v1203_v5, %v1199_v57  ;;  %v10950_v40 = vcombine.low %v7632_v1, %v10822_v19  ;;  %9132 = vmatprep.subr.bf16.mxu1 %v9869_v58  ;;  %v1560_v14 = vrot.slane %v1210_v25, 1 }
  0xef   : > { %2239 = vmatmul.mubr.bf16.gmra.mrb[20].mxu1 %v596_v28  ;;  %v1212_v35 = vor.u32 %v1210_v25, %v1208_v7  ;;  %v404_v53 = vrot.slane %v402_v22, 1  ;;  %v1561_v39 = vrot.slane %v1206_v63, 2  ;;  %v413_v50 = vor.u32 %v411_v15, %v409_v33  ;;  %v10957_v63 = vld [vmem:[%s10632_s11 + $0x8c] ss:$0 sps:$4 sm:$0x33]  }
  0xf0   : > { %v1209_v10 = vsel %vm368_vm0, %v1204_v4, %v1208_v7  ;;  %v1553_v21 = vshrl.u32 %v10950_v40, 16  ;;  %v1556_v49 = vshll.u32 %v10950_v40, 16 }
  0xf1   : > { %v1565_v47 = vshrl.u32 %v1209_v10, 16  ;;  %v1568_v54 = vshll.u32 %v1209_v10, 16  ;;  %v1573_v51 = vshrl.u32 %v1212_v35, 16  ;;  %v1576_v19 = vshll.u32 %v1212_v35, 16  ;;  %9133 = vmatpush3.bf16.msra.mxu1 %v9869_v58  ;;  %v9873_v58 = vld [vmem:[#allocation4 + $0xa8] sm:$0xff]  }
  0xf2   : > { %v405_v29 = vor.u32 %v404_v53, %v400_v24  ;;  %v652_v57 = vshrl.u32 %v413_v50, 16  ;;  %v655_v1 = vshll.u32 %v413_v50, 16  ;;  %v1555_v23 = vrot.slane %v1553_v21, 1  ;;  %v10962_v50 = vld [vmem:[%s10632_s11 + $0x4c] sm:$0xf]  ;;  %9134 = vmatprep.subr.bf16.mxu1 %v9873_v58 }
  0xf3   : > { %v1567_v3 = vrot.slane %v1565_v47, 1  ;;  %v1570_v55 = vrot.slane %v1568_v54, 2  ;;  %v1575_v59 = vrot.slane %v1573_v51, 1  ;;  %v1578_v60 = vrot.slane %v1576_v19, 2  ;;  %v7569_v21 = vld [vmem:[%s10632_s11 + $0x48] sm:$0xc] }
  0xf4   : > { %v410_v25 = vsel %vm368_vm0, %v405_v29, %v409_v33  ;;  %v654_v11 = vrot.slane %v652_v57, 1  ;;  %v657_v5 = vrot.slane %v655_v1, 2  ;;  %v1558_v17 = vrot.slane %v1556_v49, 2  ;;  %v10966_v47 = vld [vmem:[%s10632_s11 + $0x50] ss:$0 sps:$4 sm:$0x33]  }
  0xf5   : > { %v1571_v7 = vor.u32 %v1570_v55, %v1567_v3  ;;  %v1579_v24 = vor.u32 %v1578_v60, %v1575_v59  ;;  %v644_v22 = vshrl.u32 %v410_v25, 16  ;;  %v647_v28 = vshll.u32 %v410_v25, 16  ;;  %v7635_v19 = vld [vmem:[%s10632_s11 + $0x84] sm:$0xe]  ;;  %9135 = vmatpush3.bf16.msra.mxu1 %v9873_v58  ;;  %v9879_v29 = vld [vmem:[#allocation4 + $0xb0] sm:$0xff]   ;;  %v9883_v25 = vld [vmem:[#allocation4 + $0xb8] sm:$0xff]  }
  0xf6   : > { %v658_v4 = vor.u32 %v657_v5, %v654_v11  ;;  %v1559_v35 = vor.u32 %v1558_v17, %v1555_v23  ;;  %v1562_v53 = vor.u32 %v1561_v39, %v1560_v14  ;;  %v7586_v10 = vcombine.low %v7548_v62, %v10928_v45  ;;  %9136 = vmatprep.subr.bf16.mxu1 %v9879_v29 }
  0xf7   : > { %v1580_v33 = vsel %vm538_vm2, %v1571_v7, %v1579_v24  ;;  %v646_v49 = vrot.slane %v644_v22, 1  ;;  %v649_v54 = vrot.slane %v647_v28, 2  ;;  %v639_v51 = vrot.slane %v411_v15, 1 }
  0xf8   : > { %1940 = vmatprep.mubr.bf16.mxu0 %v1580_v33  ;;  %v1563_v57 = vsel %vm538_vm2, %v1559_v35, %v1562_v53  ;;  %v632_v14 = vshrl.u32 %v7586_v10, 16  ;;  %v635_v39 = vshll.u32 %v7586_v10, 16  ;;  %v640_v45 = vrot.slane %v407_v13, 2  ;;  %v9889_v35 = vld [vmem:[#allocation4 + $0x200] sm:$0xff]  }
  0xf9   : > { %v650_v1 = vor.u32 %v649_v54, %v646_v49  ;;  %1941 = vmatmul.mubr.bf16.gmra.mrb[24].mxu0 %v1563_v57  ;;  %v1214_v23 = vshrl.u32 %v10847_v32, 16  ;;  %v1216_v3 = vshll.u32 %v10847_v32, 16  ;;  %v1221_v55 = vshll.u32 %v10957_v63, 16  ;;  %9137 = vmatpush3.bf16.msra.mxu1 %v9879_v29 }
  0xfa   : > { %v634_v15 = vrot.slane %v632_v14, 1  ;;  %v637_v59 = vrot.slane %v635_v39, 2  ;;  %v641_v60 = vor.u32 %v640_v45, %v639_v51  ;;  %v1225_v62 = vshrl.u32 %v10957_v63, 16  ;;  %9138 = vmatprep.subr.bf16.mxu1 %v9883_v25  ;;  %v7551_v14 = vld [vmem:[%s10632_s11 + $0x48] sm:$0xe] }
  0xfb   : > { %v659_v11 = vsel %vm538_vm2, %v650_v1, %v658_v4  ;;  %v1218_v5 = vrot.slane %v1216_v3, 1  ;;  %v1223_v42 = vrot.slane %v1221_v55, 1  ;;  %v10979_v13 = vcombine.low %v7569_v21, %v10962_v50 }
  0xfc   : > { %2246 = vmatprep.mubr.bf16.mxu1 %v659_v11  ;;  %v638_v17 = vor.u32 %v637_v59, %v634_v15  ;;  %v422_v58 = vshll.u32 %v10966_v47, 16  ;;  %v426_v7 = vshrl.u32 %v10966_v47, 16  ;;  %v10984_v24 = vcombine.low %v7635_v19, %v10843_v0 }
  0xfd   : > { %v1219_v63 = vor.u32 %v1218_v5, %v1214_v23  ;;  %v1227_v22 = vor.u32 %v1225_v62, %v1223_v42  ;;  %v415_v28 = vshrl.u32 %v10979_v13, 16  ;;  %v417_v4 = vshll.u32 %v10979_v13, 16  ;;  %9139 = vmatpush3.bf16.msra.mxu1 %v9883_v25  ;;  %v9844_v25 = vld [vmem:[%s10632_s11 + $0x5c] ss:$0 sps:$4 sm:$0x33]  }
  0xfe   : > { %v642_v53 = vsel %vm538_vm2, %v638_v17, %v641_v60  ;;  %v424_v10 = vrot.slane %v422_v58, 1  ;;  %v1599_v21 = vshrl.u32 %v10984_v24, 16  ;;  %v1602_v33 = vshll.u32 %v10984_v24, 16  ;;  %9156 = vmatprep.subr.bf16.mxu1 %v9889_v35 }
  0xff   : > { %2247 = vmatmul.mubr.bf16.gmra.mrb[24].mxu1 %v642_v53  ;;  %v1224_v0 = vsel %vm368_vm0, %v1219_v63, %v1223_v42  ;;  %v1619_v47 = vshrl.u32 %v1227_v22, 16  ;;  %v1622_v49 = vshll.u32 %v1227_v22, 16  ;;  %v419_v54 = vrot.slane %v417_v4, 1  ;;  %v7555_v63 = vld [vmem:[%s10632_s11 + $0x58] sm:$0xf] }
 0x100   : > { %v1611_v51 = vshrl.u32 %v1224_v0, 16  ;;  %v1614_v19 = vshll.u32 %v1224_v0, 16  ;;  %v428_v29 = vor.u32 %v426_v7, %v424_v10  ;;  %v1601_v57 = vrot.slane %v1599_v21, 1  ;;  %v7570_v22 = vld [vmem:[%s10632_s11 + $0x54] sm:$0xc] }
 0x101   : > { %v1621_v39 = vrot.slane %v1619_v47, 1  ;;  %v1624_v45 = vrot.slane %v1622_v49, 2  ;;  %v420_v1 = vor.u32 %v419_v54, %v415_v28  ;;  %v1604_v23 = vrot.slane %v1602_v33, 2  ;;  %v10999_v49 = vld [vmem:[%s10632_s11 + $0x44] ss:$0 sps:$4 sm:$0x33]  }
 0x102   : > { %v1613_v3 = vrot.slane %v1611_v51, 1  ;;  %v1616_v15 = vrot.slane %v1614_v19, 2  ;;  %v698_v59 = vshrl.u32 %v428_v29, 16  ;;  %v701_v60 = vshll.u32 %v428_v29, 16  ;;  %v11003_v19 = vld [vmem:[%s10632_s11 + $0x40] sm:$0xf] }
 0x103   : > { %v1625_v11 = vor.u32 %v1624_v45, %v1621_v39  ;;  %v425_v5 = vsel %vm368_vm0, %v420_v1, %v424_v10  ;;  %v1605_v42 = vor.u32 %v1604_v23, %v1601_v57  ;;  %v1606_v17 = vrot.slane %v1225_v62, 1 }
 0x104   : > { %v1617_v4 = vor.u32 %v1616_v15, %v1613_v3  ;;  %v690_v53 = vshrl.u32 %v425_v5, 16  ;;  %v693_v21 = vshll.u32 %v425_v5, 16  ;;  %v700_v28 = vrot.slane %v698_v59, 1 }
 0x105   : > { %v703_v33 = vrot.slane %v701_v60, 2  ;;  %v1607_v35 = vrot.slane %v1221_v55, 2  ;;  %v7588_v0 = vcombine.low %v7551_v14, %v10962_v50  ;;  %v685_v47 = vrot.slane %v426_v7, 1  ;;  %v7758_v14 = vld [vmem:[%s10632_s11 + $0x3c] sm:$0xc] }
 0x106   : > { %v1626_v10 = vsel %vm538_vm2, %v1617_v4, %v1625_v11  ;;  %v692_v54 = vrot.slane %v690_v53, 1  ;;  %v695_v62 = vrot.slane %v693_v21, 2  ;;  %v686_v51 = vrot.slane %v422_v58, 2  ;;  %v7554_v58 = vld [vmem:[%s10632_s11 + $0x54] sm:$0xe] }
 0x107   : > { %1948 = vmatprep.mubr.bf16.mxu0 %v1626_v10  ;;  %v704_v29 = vor.u32 %v703_v33, %v700_v28  ;;  %v1608_v57 = vor.u32 %v1607_v35, %v1606_v17  ;;  %v678_v39 = vshrl.u32 %v7588_v0, 16  ;;  %v681_v45 = vshll.u32 %v7588_v0, 16 }
 0x108   : > { %v696_v55 = vor.u32 %v695_v62, %v692_v54  ;;  %v687_v1 = vor.u32 %v686_v51, %v685_v47  ;;  %v11005_v50 = vcombine.low %v7570_v22, %v7555_v63  ;;  %v437_v7 = vshll.u32 %v9844_v25, 16 }
 0x109   : > { %v1609_v23 = vsel %vm538_vm2, %v1605_v42, %v1608_v57  ;;  %v680_v3 = vrot.slane %v678_v39, 1  ;;  %v683_v15 = vrot.slane %v681_v45, 2  ;;  %v441_v59 = vshrl.u32 %v9844_v25, 16 }
 0x10a   : > { %v705_v60 = vsel %vm538_vm2, %v696_v55, %v704_v29  ;;  %1949 = vmatmul.mubr.bf16.gmra.mrb[28].mxu0 %v1609_v23  ;;  %v430_v11 = vshrl.u32 %v11005_v50, 16  ;;  %v432_v5 = vshll.u32 %v11005_v50, 16  ;;  %v439_v17 = vrot.slane %v437_v7, 1  ;;  %v7734_v23 = vld [vmem:[%s10632_s11 + $0x3c] sm:$0xe] }
 0x10b   : > { %2254 = vmatprep.mubr.bf16.mxu1 %v705_v60  ;;  %v684_v4 = vor.u32 %v683_v15, %v680_v3  ;;  %v11014_v22 = vcombine.low %v7758_v14, %v11003_v19  ;;  %v2529_v53 = vshll.u32 %v10999_v49, 16  ;;  %v2533_v42 = vshrl.u32 %v10999_v49, 16 }
 0x10c   : > { %v434_v21 = vrot.slane %v432_v5, 1  ;;  %v443_v25 = vor.u32 %v441_v59, %v439_v17  ;;  %v7590_v28 = vcombine.low %v7554_v58, %v7555_v63  ;;  %v731_v33 = vrot.slane %v441_v59, 1 }
 0x10d   : > { %v688_v35 = vsel %vm538_vm2, %v684_v4, %v687_v1  ;;  %v2522_v0 = vshrl.u32 %v11014_v22, 16  ;;  %v2524_v47 = vshll.u32 %v11014_v22, 16  ;;  %v2531_v10 = vrot.slane %v2529_v53, 1 }
 0x10e   : > { %2255 = vmatmul.mubr.bf16.gmra.mrb[28].mxu1 %v688_v35  ;;  %v435_v54 = vor.u32 %v434_v21, %v430_v11  ;;  %v744_v62 = vshrl.u32 %v443_v25, 16  ;;  %v747_v51 = vshll.u32 %v443_v25, 16  ;;  %v724_v29 = vshrl.u32 %v7590_v28, 16  ;;  %v9854_v21 = vld [vmem:[%s10632_s11 + $0x68] ss:$0 sps:$4 sm:$0x33]  }
 0x10f   : > { %v2526_v57 = vrot.slane %v2524_v47, 1  ;;  %v2535_v39 = vor.u32 %v2533_v42, %v2531_v10  ;;  %v727_v49 = vshll.u32 %v7590_v28, 16  ;;  %v732_v45 = vrot.slane %v437_v7, 2  ;;  %v7558_v35 = vld [vmem:[%s10632_s11 + $0x64] sm:$0xf] }
 0x110   : > { %v440_v63 = vsel %vm368_vm0, %v435_v54, %v439_v17  ;;  %v746_v55 = vrot.slane %v744_v62, 1  ;;  %v749_v1 = vrot.slane %v747_v51, 2  ;;  %v726_v14 = vrot.slane %v724_v29, 1  ;;  %v7571_v47 = vld [vmem:[%s10632_s11 + $0x60] sm:$0xc] }
 0x111   : > { %v736_v3 = vshrl.u32 %v440_v63, 16  ;;  %v739_v15 = vshll.u32 %v440_v63, 16  ;;  %v2527_v59 = vor.u32 %v2526_v57, %v2522_v0  ;;  %v2710_v58 = vshrl.u32 %v2535_v39, 16  ;;  %v11028_v54 = vld [vmem:[%s10632_s11 + $0x50] ss:$0 sps:$4 sm:$0x33]  }
 0x112   : > { %v750_v60 = vor.u32 %v749_v1, %v746_v55  ;;  %v2713_v11 = vshll.u32 %v2535_v39, 16  ;;  %v729_v5 = vrot.slane %v727_v49, 2  ;;  %v733_v4 = vor.u32 %v732_v45, %v731_v33  ;;  %v11032_v45 = vld [vmem:[%s10632_s11 + $0x4c] sm:$0xf] }
 0x113   : > { %v738_v7 = vrot.slane %v736_v3, 1  ;;  %v741_v25 = vrot.slane %v739_v15, 2  ;;  %v2532_v17 = vsel %vm368_vm0, %v2527_v59, %v2531_v10  ;;  %v2712_v28 = vrot.slane %v2710_v58, 1  ;;  %v7759_v3 = vld [vmem:[%s10632_s11 + $0x48] sm:$0xc] }
 0x114   : > { %v2702_v62 = vshrl.u32 %v2532_v17, 16  ;;  %v2705_v51 = vshll.u32 %v2532_v17, 16  ;;  %v2715_v0 = vrot.slane %v2713_v11, 2  ;;  %v730_v29 = vor.u32 %v729_v5, %v726_v14 }
 0x115   : > { %v742_v57 = vor.u32 %v741_v25, %v738_v7  ;;  %v7774_v39 = vcombine.low %v7734_v23, %v11003_v19  ;;  %v2697_v33 = vrot.slane %v2533_v42, 1  ;;  %v2698_v49 = vrot.slane %v2529_v53, 2  ;;  %v7557_v25 = vld [vmem:[%s10632_s11 + $0x60] sm:$0xe] }
 0x116   : > { %v2704_v63 = vrot.slane %v2702_v62, 1  ;;  %v2707_v55 = vrot.slane %v2705_v51, 2  ;;  %v2716_v10 = vor.u32 %v2715_v0, %v2712_v28  ;;  %v734_v1 = vsel %vm538_vm2, %v730_v29, %v733_v4  ;;  %v9852_v51 = vld [vmem:[#allocation4 + $0x240] sm:$0xff]  }
 0x117   : > { %v751_v15 = vsel %vm538_vm2, %v742_v57, %v750_v60  ;;  %v2690_v59 = vshrl.u32 %v7774_v39, 16  ;;  %v2693_v58 = vshll.u32 %v7774_v39, 16  ;;  %v2699_v11 = vor.u32 %v2698_v49, %v2697_v33  ;;  %v9861_v57 = vld [vmem:[#allocation4 + $0x288] sm:$0xff]  }
 0x118   : > { %2262 = vmatprep.mubr.bf16.mxu1 %v751_v15  ;;  %v2708_v14 = vor.u32 %v2707_v55, %v2704_v63  ;;  %v11037_v5 = vcombine.low %v7571_v47, %v7558_v35  ;;  %v452_v19 = vshll.u32 %v9854_v21, 16  ;;  %v456_v53 = vshrl.u32 %v9854_v21, 16  ;;  %v9862_v15 = vld [vmem:[#allocation4 + $0x248] sm:$0xff]  }
 0x119   : > { %2263 = vmatmul.mubr.bf16.gmra.mrb[32].mxu1 %v734_v1  ;;  %v2692_v42 = vrot.slane %v2690_v59, 1  ;;  %v2695_v23 = vrot.slane %v2693_v58, 2  ;;  %v11040_v7 = vcombine.low %v7759_v3, %v11032_v45  ;;  %v2544_v4 = vshll.u32 %v11028_v54, 16 }
 0x11a   : > { %v2717_v60 = vsel %vm538_vm2, %v2708_v14, %v2716_v10  ;;  %v445_v17 = vshrl.u32 %v11037_v5, 16  ;;  %v447_v28 = vshll.u32 %v11037_v5, 16  ;;  %v454_v62 = vrot.slane %v452_v19, 1 }
 0x11b   : > { %3305 = vmatprep.mubr.bf16.mxu0 %v2717_v60  ;;  %v2696_v47 = vor.u32 %v2695_v23, %v2692_v42  ;;  %v2537_v21 = vshrl.u32 %v11040_v7, 16  ;;  %v2539_v0 = vshll.u32 %v11040_v7, 16  ;;  %v2546_v29 = vrot.slane %v2544_v4, 1 }
 0x11c   : > { %v449_v39 = vrot.slane %v447_v28, 1  ;;  %v458_v33 = vor.u32 %v456_v53, %v454_v62  ;;  %v2548_v49 = vshrl.u32 %v11028_v54, 16  ;;  %v7592_v63 = vcombine.low %v7557_v25, %v7558_v35  ;;  %v9890_v54 = vld [vmem:[#allocation4 + $0x2a0] sm:$0xff]  }
 0x11d   : > { %v2700_v55 = vsel %vm538_vm2, %v2696_v47, %v2699_v11  ;;  %v2541_v10 = vrot.slane %v2539_v0, 1  ;;  %v11053_v1 = vrot.slane %v456_v53, 1  ;;  %v11055_v3 = vrot.slane %v452_v19, 2  ;;  %v7737_v11 = vld [vmem:[%s10632_s11 + $0x48] sm:$0xe]  ;;  %v9871_v0 = vld [vmem:[#allocation4 + $0x290] sm:$0xff]  }
 0x11e   : > { %3306 = vmatmul.mubr.bf16.vlgmr.msra.gmra.mrb[32].mxu0 %v2700_v55  ;;  %v450_v59 = vor.u32 %v449_v39, %v445_v17  ;;  %v790_v58 = vshrl.u32 %v458_v33, 16  ;;  %v793_v14 = vshll.u32 %v458_v33, 16  ;;  %v2550_v42 = vor.u32 %v2548_v49, %v2546_v29 }
 0x11f   : > { %8613 = vmatpush3.bf16.msra.mxu0 %v9852_v51  ;;  %v2542_v23 = vor.u32 %v2541_v10, %v2537_v21  ;;  %v770_v60 = vshrl.u32 %v7592_v63, 16  ;;  %v773_v28 = vshll.u32 %v7592_v63, 16  ;;  %v779_v35 = vor.u32 %v11055_v3, %v11053_v1  ;;  %v11063_v21 = vld [vmem:[%s10632_s11 + $0x74] ss:$0 sps:$4 sm:$0x33]  }
 0x120   : > { %v455_v53 = vsel %vm368_vm0, %v450_v59, %v454_v62  ;;  %v792_v25 = vrot.slane %v790_v58, 1  ;;  %v795_v19 = vrot.slane %v793_v14, 2  ;;  %v2756_v47 = vshrl.u32 %v2550_v42, 16  ;;  %8614 = vmatprep.subr.bf16.mxu0 %v9861_v57  ;;  %v9872_v3 = vld [vmem:[#allocation4 + $0x250] sm:$0xff]  }
 0x121   : > { %v782_v17 = vshrl.u32 %v455_v53, 16  ;;  %v785_v39 = vshll.u32 %v455_v53, 16  ;;  %v2547_v51 = vsel %vm368_vm0, %v2542_v23, %v2546_v29  ;;  %v2759_v33 = vshll.u32 %v2550_v42, 16  ;;  %v7561_v14 = vld [vmem:[%s10632_s11 + $0x70] sm:$0xf] }
 0x122   : > { %v796_v63 = vor.u32 %v795_v19, %v792_v25  ;;  %v2748_v55 = vshrl.u32 %v2547_v51, 16  ;;  %v2751_v10 = vshll.u32 %v2547_v51, 16  ;;  %v2758_v1 = vrot.slane %v2756_v47, 1  ;;  %v7572_v23 = vld [vmem:[%s10632_s11 + $0x6c] sm:$0xc]  ;;  %v9881_v25 = vld [vmem:[#allocation4 + $0x298] sm:$0xff]  }
 0x123   : > { %v784_v62 = vrot.slane %v782_v17, 1  ;;  %v787_v59 = vrot.slane %v785_v39, 2  ;;  %v2761_v58 = vrot.slane %v2759_v33, 2  ;;  %v772_v57 = vrot.slane %v770_v60, 1  ;;  %8615 = vmatpush3.bf16.msra.mxu0 %v9862_v15  ;;  %v11071_v39 = vld [vmem:[%s10632_s11 + $0x58] sm:$0xf] }
 0x124   : > { %v2750_v48 = vrot.slane %v2748_v55, 1  ;;  %v2753_v53 = vrot.slane %v2751_v10, 2  ;;  %v775_v29 = vrot.slane %v773_v28, 2  ;;  %v7776_v42 = vcombine.low %v7737_v11, %v11032_v45  ;;  %8616 = vmatprep.subr.bf16.mxu0 %v9871_v0  ;;  %v11074_v28 = vld [vmem:[%s10632_s11 + $0x5c] ss:$0 sps:$4 sm:$0x33]  }
 0x125   : > { %v788_v19 = vor.u32 %v787_v59, %v784_v62  ;;  %v2762_v47 = vor.u32 %v2761_v58, %v2758_v1  ;;  %v2743_v51 = vrot.slane %v2548_v49, 1  ;;  %v2744_v17 = vrot.slane %v2544_v4, 2  ;;  %v9882_v45 = vld [vmem:[#allocation4 + $0x258] sm:$0xff]   ;;  %v7760_v1 = vld [vmem:[%s10632_s11 + $0x54] sm:$0xc] }
 0x126   : > { %v2754_v15 = vor.u32 %v2753_v53, %v2750_v48  ;;  %v776_v60 = vor.u32 %v775_v29, %v772_v57  ;;  %v2736_v33 = vshrl.u32 %v7776_v42, 16  ;;  %v2739_v55 = vshll.u32 %v7776_v42, 16  ;;  %v7560_v58 = vld [vmem:[%s10632_s11 + $0x6c] sm:$0xe] }
 0x127   : > { %v797_v11 = vsel %vm538_vm2, %v788_v19, %v796_v63  ;;  %v2745_v0 = vor.u32 %v2744_v17, %v2743_v51  ;;  %v11077_v10 = vcombine.low %v7572_v23, %v7561_v14  ;;  %v467_v49 = vshll.u32 %v11063_v21, 16  ;;  %8617 = vmatpush3.bf16.msra.mxu0 %v9872_v3  ;;  %v9891_v3 = vld [vmem:[#allocation4 + $0x260] sm:$0xff]  }
 0x128   : > { %2270 = vmatprep.mubr.bf16.mxu1 %v797_v11  ;;  %v2763_v48 = vsel %vm538_vm2, %v2754_v15, %v2762_v47  ;;  %v780_v4 = vsel %vm538_vm2, %v776_v60, %v779_v35  ;;  %v2738_v62 = vrot.slane %v2736_v33, 1  ;;  %v2741_v59 = vrot.slane %v2739_v55, 2  ;;  %8618 = vmatprep.subr.bf16.mxu0 %v9881_v25  ;;  %v9899_v55 = vld [vmem:[#allocation4 + $0x2a8] sm:$0xff]  }
 0x129   : > { %3313 = vmatprep.mubr.bf16.mxu0 %v2763_v48  ;;  %2271 = vmatmul.mubr.bf16.gmra.mrb[36].mxu1 %v780_v4  ;;  %v460_v63 = vshrl.u32 %v11077_v10, 16  ;;  %v462_v57 = vshll.u32 %v11077_v10, 16  ;;  %v469_v53 = vrot.slane %v467_v49, 1  ;;  %v471_v29 = vshrl.u32 %v11063_v21, 16 }
 0x12a   : > { %v2742_v42 = vor.u32 %v2741_v59, %v2738_v62  ;;  %v11088_v23 = vcombine.low %v7760_v1, %v11071_v39  ;;  %v2559_v35 = vshll.u32 %v11074_v28, 16  ;;  %v2563_v19 = vshrl.u32 %v11074_v28, 16 }
 0x12b   : > { %v464_v47 = vrot.slane %v462_v57, 1  ;;  %v473_v25 = vor.u32 %v471_v29, %v469_v53  ;;  %v7594_v51 = vcombine.low %v7560_v58, %v7561_v14  ;;  %v823_v17 = vrot.slane %v471_v29, 1  ;;  %8619 = vmatpush3.bf16.msra.mxu0 %v9882_v45  ;;  %v9900_v29 = vld [vmem:[#allocation4 + $0x268] sm:$0xff]  }
 0x12c   : > { %v2746_v15 = vsel %vm538_vm2, %v2742_v42, %v2745_v0  ;;  %v2552_v60 = vshrl.u32 %v11088_v23, 16  ;;  %v2554_v21 = vshll.u32 %v11088_v23, 16  ;;  %v2561_v33 = vrot.slane %v2559_v35, 1  ;;  %8620 = vmatprep.subr.bf16.mxu0 %v9890_v54 }
 0x12d   : > { %3314 = vmatmul.mubr.bf16.gmra.mrb[36].mxu0 %v2746_v15  ;;  %v465_v11 = vor.u32 %v464_v47, %v460_v63  ;;  %v836_v1 = vshrl.u32 %v473_v25, 16  ;;  %v839_v48 = vshll.u32 %v473_v25, 16  ;;  %v816_v4 = vshrl.u32 %v7594_v51, 16  ;;  %v9908_v25 = vld [vmem:[#allocation4 + $0x2b0] sm:$0xff]  }
 0x12e   : > { %v2556_v28 = vrot.slane %v2554_v21, 1  ;;  %v2565_v62 = vor.u32 %v2563_v19, %v2561_v33  ;;  %v819_v59 = vshll.u32 %v7594_v51, 16  ;;  %v824_v14 = vrot.slane %v467_v49, 2  ;;  %v7740_v21 = vld [vmem:[%s10632_s11 + $0x54] sm:$0xe] }
 0x12f   : > { %v470_v45 = vsel %vm368_vm0, %v465_v11, %v469_v53  ;;  %v838_v0 = vrot.slane %v836_v1, 1  ;;  %v841_v58 = vrot.slane %v839_v48, 2  ;;  %v818_v57 = vrot.slane %v816_v4, 1  ;;  %8621 = vmatpush3.bf16.msra.mxu0 %v9891_v3  ;;  %v7564_v4 = vld [vmem:[%s10632_s11 + $0x7c] sm:$0xf] }
 0x130   : > { %v828_v54 = vshrl.u32 %v470_v45, 16  ;;  %v831_v42 = vshll.u32 %v470_v45, 16  ;;  %v2557_v63 = vor.u32 %v2556_v28, %v2552_v60  ;;  %v2802_v47 = vshrl.u32 %v2565_v62, 16  ;;  %8622 = vmatprep.subr.bf16.mxu0 %v9899_v55  ;;  %v9874_v45 = vld [vmem:[%s10632_s11 + $0x80] ss:$0 sps:$4 sm:$0x33]  }
 0x131   : > { %v842_v15 = vor.u32 %v841_v58, %v838_v0  ;;  %v2805_v49 = vshll.u32 %v2565_v62, 16  ;;  %v821_v51 = vrot.slane %v819_v59, 2  ;;  %v825_v53 = vor.u32 %v824_v14, %v823_v17  ;;  %v11102_v0 = vld [vmem:[%s10632_s11 + $0x64] sm:$0xf]  ;;  %v9909_v62 = vld [vmem:[#allocation4 + $0x270] sm:$0xff]  }
 0x132   : > { %v830_v11 = vrot.slane %v828_v54, 1  ;;  %v833_v1 = vrot.slane %v831_v42, 2  ;;  %v2562_v3 = vsel %vm368_vm0, %v2557_v63, %v2561_v33  ;;  %v2804_v48 = vrot.slane %v2802_v47, 1  ;;  %v11106_v58 = vld [vmem:[%s10632_s11 + $0x68] ss:$0 sps:$4 sm:$0x33]  }
 0x133   : > { %v2794_v2 = vshrl.u32 %v2562_v3, 16  ;;  %v2797_v60 = vshll.u32 %v2562_v3, 16  ;;  %v2807_v28 = vrot.slane %v2805_v49, 2  ;;  %v822_v55 = vor.u32 %v821_v51, %v818_v57  ;;  %8623 = vmatpush3.bf16.msra.mxu0 %v9900_v29  ;;  %v9917_v54 = vld [vmem:[#allocation4 + $0x2b8] sm:$0xff]   ;;  %v7761_v57 = vld [vmem:[%s10632_s11 + $0x60] sm:$0xc] }
 0x134   : > { %v834_v17 = vor.u32 %v833_v1, %v830_v11  ;;  %v7778_v59 = vcombine.low %v7740_v21, %v11071_v39  ;;  %v2789_v14 = vrot.slane %v2563_v19, 1  ;;  %v2790_v33 = vrot.slane %v2559_v35, 2  ;;  %8624 = vmatprep.subr.bf16.mxu0 %v9908_v25  ;;  %v9918_v51 = vld [vmem:[#allocation4 + $0x278] sm:$0xff]  }
 0x135   : > { %v2796_v42 = vrot.slane %v2794_v2, 1  ;;  %v2799_v63 = vrot.slane %v2797_v60, 2  ;;  %v2808_v47 = vor.u32 %v2807_v28, %v2804_v48  ;;  %v826_v49 = vsel %vm538_vm2, %v822_v55, %v825_v53  ;;  %v7563_v39 = vld [vmem:[%s10632_s11 + $0x78] sm:$0xe] }
 0x136   : > { %v843_v29 = vsel %vm538_vm2, %v834_v17, %v842_v15  ;;  %v2782_v3 = vshrl.u32 %v7778_v59, 16  ;;  %v2785_v11 = vshll.u32 %v7778_v59, 16  ;;  %v2791_v1 = vor.u32 %v2790_v33, %v2789_v14  ;;  %v9927_v15 = vld [vmem:[#allocation4 + $0x340] sm:$0xff]  }
 0x137   : > { %2278 = vmatprep.mubr.bf16.mxu1 %v843_v29  ;;  %v2800_v19 = vor.u32 %v2799_v63, %v2796_v42  ;;  %v11112_v35 = vcombine.low %v7573_v44, %v7564_v4  ;;  %v482_v21 = vshll.u32 %v9874_v45, 16  ;;  %v486_v25 = vshrl.u32 %v9874_v45, 16  ;;  %8625 = vmatpush3.bf16.msra.mxu0 %v9909_v62 }
 0x138   : > { %2279 = vmatmul.mubr.bf16.gmra.mrb[40].mxu1 %v826_v49  ;;  %v2784_v2 = vrot.slane %v2782_v3, 1  ;;  %v2787_v48 = vrot.slane %v2785_v11, 2  ;;  %v11115_v53 = vcombine.low %v7761_v57, %v11102_v0  ;;  %v2574_v60 = vshll.u32 %v11106_v58, 16  ;;  %8626 = vmatprep.subr.bf16.mxu0 %v9917_v54 }
 0x139   : > { %v2809_v28 = vsel %vm538_vm2, %v2800_v19, %v2808_v47  ;;  %v475_v55 = vshrl.u32 %v11112_v35, 16  ;;  %v477_v44 = vshll.u32 %v11112_v35, 16  ;;  %v484_v17 = vrot.slane %v482_v21, 1 }
 0x13a   : > { %3321 = vmatprep.mubr.bf16.mxu0 %v2809_v28  ;;  %v2788_v45 = vor.u32 %v2787_v48, %v2784_v2  ;;  %v2567_v62 = vshrl.u32 %v11115_v53, 16  ;;  %v2569_v59 = vshll.u32 %v11115_v53, 16  ;;  %v2576_v14 = vrot.slane %v2574_v60, 1 }
 0x13b   : > { %v479_v33 = vrot.slane %v477_v44, 1  ;;  %v488_v42 = vor.u32 %v486_v25, %v484_v17  ;;  %v2578_v63 = vshrl.u32 %v11106_v58, 16  ;;  %v7596_v54 = vcombine.low %v7563_v39, %v7564_v4  ;;  %8627 = vmatpush3.bf16.msra.mxu0 %v9918_v51 }
 0x13c   : > { %v2792_v47 = vsel %vm538_vm2, %v2788_v45, %v2791_v1  ;;  %v2571_v49 = vrot.slane %v2569_v59, 1  ;;  %v869_v57 = vrot.slane %v486_v25, 1  ;;  %v870_v29 = vrot.slane %v482_v21, 2  ;;  %8692 = vmatprep.subr.bf16.mxu0 %v9927_v15 }
 0x13d   : > { %3322 = vmatmul.mubr.bf16.gmra.mrb[40].mxu0 %v2792_v47  ;;  %v480_v3 = vor.u32 %v479_v33, %v475_v55  ;;  %v882_v11 = vshrl.u32 %v488_v42, 16  ;;  %v885_v19 = vshll.u32 %v488_v42, 16  ;;  %v2580_v2 = vor.u32 %v2578_v63, %v2576_v14  ;;  %v7743_v55 = vld [vmem:[%s10632_s11 + $0x60] sm:$0xe] }
 0x13e   : > { %v2572_v48 = vor.u32 %v2571_v49, %v2567_v62  ;;  %v862_v28 = vshrl.u32 %v7596_v54, 16  ;;  %v865_v44 = vshll.u32 %v7596_v54, 16  ;;  %v871_v6 = vor.u32 %v870_v29, %v869_v57  ;;  %v9884_v42 = vld [vmem:[%s10632_s11 + $0x2c] ss:$0 sps:$4 sm:$0x77]  }
 0x13f   : > { %v485_v4 = vsel %vm368_vm0, %v480_v3, %v484_v17  ;;  %v884_v58 = vrot.slane %v882_v11, 1  ;;  %v887_v51 = vrot.slane %v885_v19, 2  ;;  %v2848_v1 = vshrl.u32 %v2580_v2, 16  ;;  %v7762_v19 = vld [vmem:[%s10632_s11 + $0x6c] sm:$0xc] }
 0x140   : > { %v874_v39 = vshrl.u32 %v485_v4, 16  ;;  %v877_v25 = vshll.u32 %v485_v4, 16  ;;  %v2577_v21 = vsel %vm368_vm0, %v2572_v48, %v2576_v14  ;;  %v2851_v15 = vshll.u32 %v2580_v2, 16  ;;  %v7747_v14 = vld [vmem:[%s10632_s11 + $0x70] sm:$0xf] }
 0x141   : > { %v888_v45 = vor.u32 %v887_v51, %v884_v58  ;;  %v2840_v62 = vshrl.u32 %v2577_v21, 16  ;;  %v2843_v59 = vshll.u32 %v2577_v21, 16  ;;  %v2850_v33 = vrot.slane %v2848_v1, 1  ;;  %v9885_v2 = vld [vmem:[%s10632_s11 + $0x74] ss:$0 sps:$4 sm:$0x33]  }
 0x142   : > { %v876_v54 = vrot.slane %v874_v39, 1  ;;  %v879_v47 = vrot.slane %v877_v25, 2  ;;  %v2853_v17 = vrot.slane %v2851_v15, 2  ;;  %v864_v49 = vrot.slane %v862_v28, 1 }
 0x143   : > { %v2842_v57 = vrot.slane %v2840_v62, 1  ;;  %v2845_v29 = vrot.slane %v2843_v59, 2  ;;  %v867_v3 = vrot.slane %v865_v44, 2  ;;  %v7780_v11 = vcombine.low %v7743_v55, %v11102_v0 }
 0x144   : > { %v880_v48 = vor.u32 %v879_v47, %v876_v54  ;;  %v2854_v4 = vor.u32 %v2853_v17, %v2850_v33  ;;  %v2835_v37 = vrot.slane %v2578_v63, 1  ;;  %v2836_v58 = vrot.slane %v2574_v60, 2 }
 0x145   : > { %v2846_v51 = vor.u32 %v2845_v29, %v2842_v57  ;;  %v868_v21 = vor.u32 %v867_v3, %v864_v49  ;;  %v2828_v1 = vshrl.u32 %v7780_v11, 16  ;;  %v2831_v46 = vshll.u32 %v7780_v11, 16  ;;  %v7746_v49 = vld [vmem:[%s10632_s11 + $0x6c] sm:$0xe] }
 0x146   : > { %v889_v39 = vsel %vm538_vm2, %v880_v48, %v888_v45  ;;  %v2837_v28 = vor.u32 %v2836_v58, %v2835_v37  ;;  %v514_v25 = vrot.slane %v10871_v12, 1  ;;  %v515_v44 = vrot.slane %v9884_v42, 1  ;;  %v9887_v37 = vld [vmem:[%s10632_s11 + $0x38] ss:$0 sps:$4 sm:$0x77]  }
 0x147   : > { %2286 = vmatprep.mubr.bf16.mxu1 %v889_v39  ;;  %v2855_v0 = vsel %vm538_vm2, %v2846_v51, %v2854_v4  ;;  %v872_v15 = vsel %vm538_vm2, %v868_v21, %v871_v6  ;;  %v2830_v55 = vrot.slane %v2828_v1, 1  ;;  %v2833_v62 = vrot.slane %v2831_v46, 2 }
 0x148   : > { %3329 = vmatprep.mubr.bf16.mxu0 %v2855_v0  ;;  %2287 = vmatmul.mubr.bf16.gmra.mrb[44].mxu1 %v872_v15  ;;  %v516_v60 = vsel %vm513_vm1, %v514_v25, %v515_v44  ;;  %v577_v63 = vshrl.u32 %v515_v44, 16  ;;  %v580_v59 = vshll.u32 %v515_v44, 16  ;;  %v11138_v33 = vcombine.low %v7762_v19, %v7747_v14 }
 0x149   : > { %v2834_v45 = vor.u32 %v2833_v62, %v2830_v55  ;;  %v569_v12 = vshrl.u32 %v516_v60, 16  ;;  %v572_v42 = vshll.u32 %v516_v60, 16  ;;  %v2589_v54 = vshll.u32 %v9885_v2, 16 }
 0x14a   : > { %v579_v47 = vrot.slane %v577_v63, 1  ;;  %v582_v17 = vrot.slane %v580_v59, 2  ;;  %v2582_v6 = vshrl.u32 %v11138_v33, 16  ;;  %v2584_v46 = vshll.u32 %v11138_v33, 16 }
 0x14b   : > { %v2838_v57 = vsel %vm538_vm2, %v2834_v45, %v2837_v28  ;;  %v571_v29 = vrot.slane %v569_v12, 1  ;;  %v574_v3 = vrot.slane %v572_v42, 2  ;;  %v2591_v11 = vrot.slane %v2589_v54, 1 }
 0x14c   : > { %3330 = vmatmul.mubr.bf16.gmra.mrb[44].mxu0 %v2838_v57  ;;  %v583_v19 = vor.u32 %v582_v17, %v579_v47  ;;  %v2586_v48 = vrot.slane %v2584_v46, 1  ;;  %v2593_v4 = vshrl.u32 %v9885_v2, 16  ;;  %v517_v58 = vrot.slane %v10907_v18, 1  ;;  %v9893_v18 = vld [vmem:[%s10632_s11 + $0x44] ss:$0 sps:$4 sm:$0x77]  }
 0x14d   : > { %v575_v51 = vor.u32 %v574_v3, %v571_v29  ;;  %v518_v21 = vrot.slane %v9887_v37, 1  ;;  %v7782_v1 = vcombine.low %v7746_v49, %v7747_v14  ;;  %v11146_v39 = vrot.slane %v2589_v54, 2  ;;  %v11154_v37 = vld [vmem:[%s10632_s11 + $0x80] ss:$0 sps:$4 sm:$0x33]  }
 0x14e   : > { %v2587_v25 = vor.u32 %v2586_v48, %v2582_v6  ;;  %v2595_v44 = vor.u32 %v2593_v4, %v2591_v11  ;;  %v2881_v0 = vrot.slane %v2593_v4, 1  ;;  %v520_v28 = vrot.slane %v10939_v52, 1  ;;  %v7750_v54 = vld [vmem:[%s10632_s11 + $0x7c] sm:$0xf]  ;;  %v7763_v47 = vld [vmem:[%s10632_s11 + $0x78] sm:$0xc] }
 0x14f   : > { %v584_v15 = vsel %vm538_vm2, %v575_v51, %v583_v19  ;;  %v519_v55 = vsel %vm513_vm1, %v517_v58, %v518_v21  ;;  %v623_v2 = vshrl.u32 %v518_v21, 16  ;;  %v626_v62 = vshll.u32 %v518_v21, 16 }
 0x150   : > { %9140 = vmatprep.mubr.bf16.mxu1 %v584_v15  ;;  %v2592_v14 = vsel %vm368_vm0, %v2587_v25, %v2591_v11  ;;  %v2894_v60 = vshrl.u32 %v2595_v44, 16  ;;  %v2897_v63 = vshll.u32 %v2595_v44, 16  ;;  %v615_v59 = vshrl.u32 %v519_v55, 16 }
 0x151   : > { %v2886_v45 = vshrl.u32 %v2592_v14, 16  ;;  %v2889_v12 = vshll.u32 %v2592_v14, 16  ;;  %v618_v52 = vshll.u32 %v519_v55, 16  ;;  %v625_v42 = vrot.slane %v623_v2, 1  ;;  %v9892_v55 = vld [vmem:[#allocation4 + $0x208] sm:$0xff]  }
 0x152   : > { %v2896_v17 = vrot.slane %v2894_v60, 1  ;;  %v2899_v6 = vrot.slane %v2897_v63, 2  ;;  %v617_v46 = vrot.slane %v615_v59, 1  ;;  %v628_v49 = vrot.slane %v626_v62, 2 }
 0x153   : > { %v2888_v57 = vrot.slane %v2886_v45, 1  ;;  %v2891_v29 = vrot.slane %v2889_v12, 2  ;;  %v620_v3 = vrot.slane %v618_v52, 2  ;;  %v2874_v19 = vshrl.u32 %v7782_v1, 16  ;;  %v7749_v52 = vld [vmem:[%s10632_s11 + $0x78] sm:$0xe] }
 0x154   : > { %v2900_v11 = vor.u32 %v2899_v6, %v2896_v17  ;;  %v629_v48 = vor.u32 %v628_v49, %v625_v42  ;;  %v2877_v4 = vshll.u32 %v7782_v1, 16  ;;  %v2883_v58 = vor.u32 %v11146_v39, %v2881_v0  ;;  %v9896_v0 = vld [vmem:[%s10632_s11 + $0x50] ss:$0 sps:$4 sm:$0x77]   ;;  %v10248_v42 = vld [vmem:[#allocation4 + $0x200] sm:$0xff]  }
 0x155   : > { %v2892_v51 = vor.u32 %v2891_v29, %v2888_v57  ;;  %v621_v21 = vor.u32 %v620_v3, %v617_v46  ;;  %v2876_v25 = vrot.slane %v2874_v19, 1  ;;  %v521_v44 = vrot.slane %v9893_v18, 1  ;;  %v9898_v3 = vld [vmem:[#allocation4 + $0x210] sm:$0xff]  }
 0x156   : > { %v2879_v15 = vrot.slane %v2877_v4, 2  ;;  %v11159_v2 = vcombine.low %v7763_v47, %v7750_v54  ;;  %v2604_v62 = vshll.u32 %v11154_v37, 16  ;;  %v2608_v14 = vshrl.u32 %v11154_v37, 16 }
 0x157   : > { %v2901_v60 = vsel %vm538_vm2, %v2892_v51, %v2900_v11  ;;  %v630_v63 = vsel %vm538_vm2, %v621_v21, %v629_v48  ;;  %v522_v1 = vsel %vm513_vm1, %v520_v28, %v521_v44  ;;  %v669_v39 = vshrl.u32 %v521_v44, 16 }
 0x158   : > { %3337 = vmatprep.mubr.bf16.mxu0 %v2901_v60  ;;  %9141 = vmatmul.mubr.bf16.vlgmr.msra.gmra.mrb[0].mxu1 %v630_v63  ;;  %v2880_v18 = vor.u32 %v2879_v15, %v2876_v25  ;;  %v661_v59 = vshrl.u32 %v522_v1, 16  ;;  %v664_v45 = vshll.u32 %v522_v1, 16  ;;  %v672_v12 = vshll.u32 %v521_v44, 16 }
 0x159   : > { %9157 = vmatpush3.bf16.msra.mxu1 %v10248_v42  ;;  %v671_v47 = vrot.slane %v669_v39, 1  ;;  %v2597_v17 = vshrl.u32 %v11159_v2, 16  ;;  %v2599_v6 = vshll.u32 %v11159_v2, 16  ;;  %v2606_v46 = vrot.slane %v2604_v62, 1 }
 0x15a   : > { %v2884_v28 = vsel %vm538_vm2, %v2880_v18, %v2883_v58  ;;  %9158 = vmatprep.subr.bf16.mxu1 %v9892_v55  ;;  %v663_v49 = vrot.slane %v661_v59, 1  ;;  %v666_v57 = vrot.slane %v664_v45, 2  ;;  %v674_v29 = vrot.slane %v672_v12, 2  ;;  %v9901_v18 = vld [vmem:[#allocation4 + $0x218] sm:$0xff]   ;;  %v7753_v12 = vld [vmem:[%s10632_s11 + $0x88] sm:$0xf] }
 0x15b   : > { %3338 = vmatmul.mubr.bf16.gmra.mrb[48].mxu0 %v2884_v28  ;;  %v2601_v19 = vrot.slane %v2599_v6, 1  ;;  %v2610_v11 = vor.u32 %v2608_v14, %v2606_v46  ;;  %v523_v48 = vrot.slane %v10979_v13, 1  ;;  %v524_v4 = vrot.slane %v9896_v0, 1  ;;  %v9902_v59 = vld [vmem:[%s10632_s11 + $0x5c] ss:$0 sps:$4 sm:$0x77]  }
 0x15c   : > { %v667_v51 = vor.u32 %v666_v57, %v663_v49  ;;  %v675_v21 = vor.u32 %v674_v29, %v671_v47  ;;  %v7784_v25 = vcombine.low %v7749_v52, %v7750_v54  ;;  %v11174_v44 = vrot.slane %v2608_v14, 1  ;;  %v7764_v52 = vld [vmem:[%s10632_s11 + $0x84] sm:$0xc]  ;;  %v9903_v42 = vld [vmem:[%s10632_s11 + $0x8c] ss:$0 sps:$4 sm:$0x33]  }
 0x15d   : > { %9159 = vmatpush3.bf16.msra.mxu1 %v9892_v55  ;;  %v2602_v15 = vor.u32 %v2601_v19, %v2597_v17  ;;  %v2940_v58 = vshrl.u32 %v2610_v11, 16  ;;  %v2943_v60 = vshll.u32 %v2610_v11, 16  ;;  %v525_v63 = vsel %vm513_vm1, %v523_v48, %v524_v4 }
 0x15e   : > { %v676_v1 = vsel %vm538_vm2, %v667_v51, %v675_v21  ;;  %v707_v39 = vshrl.u32 %v525_v63, 16  ;;  %v710_v13 = vshll.u32 %v525_v63, 16  ;;  %v715_v0 = vshrl.u32 %v524_v4, 16  ;;  %9160 = vmatprep.subr.bf16.mxu1 %v9898_v3 }
 0x15f   : > { %9144 = vmatprep.mubr.bf16.mxu1 %v676_v1  ;;  %v2607_v54 = vsel %vm368_vm0, %v2602_v15, %v2606_v46  ;;  %v2942_v55 = vrot.slane %v2940_v58, 1  ;;  %v2945_v14 = vrot.slane %v2943_v60, 2  ;;  %v718_v45 = vshll.u32 %v524_v4, 16  ;;  %v9907_v46 = vld [vmem:[#allocation4 + $0x220] sm:$0xff]  }
 0x160   : > { %v2932_v47 = vshrl.u32 %v2607_v54, 16  ;;  %v2935_v17 = vshll.u32 %v2607_v54, 16  ;;  %v709_v6 = vrot.slane %v707_v39, 1  ;;  %v712_v28 = vrot.slane %v710_v13, 2 }
 0x161   : > { %v2946_v49 = vor.u32 %v2945_v14, %v2942_v55  ;;  %v717_v57 = vrot.slane %v715_v0, 1  ;;  %v720_v29 = vrot.slane %v718_v45, 2  ;;  %v2920_v19 = vshrl.u32 %v7784_v25, 16  ;;  %9161 = vmatpush3.bf16.msra.mxu1 %v9898_v3  ;;  %v9905_v55 = vld [vmem:[%s10632_s11 + $0x68] ss:$0 sps:$4 sm:$0x77]  }
 0x162   : > { %v2934_v11 = vrot.slane %v2932_v47, 1  ;;  %v2937_v48 = vrot.slane %v2935_v17, 2  ;;  %v713_v51 = vor.u32 %v712_v28, %v709_v6  ;;  %v2923_v21 = vshll.u32 %v7784_v25, 16  ;;  %9162 = vmatprep.subr.bf16.mxu1 %v9901_v18  ;;  %v7752_v45 = vld [vmem:[%s10632_s11 + $0x84] sm:$0xe] }
 0x163   : > { %v721_v4 = vor.u32 %v720_v29, %v717_v57  ;;  %v2922_v15 = vrot.slane %v2920_v19, 1  ;;  %v2928_v58 = vrot.slane %v2604_v62, 2  ;;  %v526_v60 = vrot.slane %v11005_v50, 1 }
 0x164   : > { %v2938_v63 = vor.u32 %v2937_v48, %v2934_v11  ;;  %v2925_v1 = vrot.slane %v2923_v21, 2  ;;  %v527_v39 = vrot.slane %v9902_v59, 1  ;;  %v11186_v13 = vcombine.low %v7764_v52, %v7753_v12  ;;  %v9910_v59 = vld [vmem:[#allocation4 + $0x228] sm:$0xff]  }
 0x165   : > { %v722_v3 = vsel %vm538_vm2, %v713_v51, %v721_v4  ;;  %v2929_v25 = vor.u32 %v2928_v58, %v11174_v44  ;;  %9163 = vmatpush3.bf16.msra.mxu1 %v9901_v18  ;;  %v2619_v0 = vshll.u32 %v9903_v42, 16  ;;  %v2623_v54 = vshrl.u32 %v9903_v42, 16  ;;  %v9916_v4 = vld [vmem:[#allocation4 + $0x230] sm:$0xff]  }
 0x166   : > { %v2947_v14 = vsel %vm538_vm2, %v2938_v63, %v2946_v49  ;;  %9145 = vmatmul.mubr.bf16.gmra.mrb[4].mxu1 %v722_v3  ;;  %v2926_v37 = vor.u32 %v2925_v1, %v2922_v15  ;;  %v528_v50 = vsel %vm513_vm1, %v526_v60, %v527_v39  ;;  %v761_v62 = vshrl.u32 %v527_v39, 16  ;;  %9164 = vmatprep.subr.bf16.mxu1 %v9907_v46 }
 0x167   : > { %3345 = vmatprep.mubr.bf16.mxu0 %v2947_v14  ;;  %v753_v52 = vshrl.u32 %v528_v50, 16  ;;  %v756_v47 = vshll.u32 %v528_v50, 16  ;;  %v764_v17 = vshll.u32 %v527_v39, 16  ;;  %v2612_v44 = vshrl.u32 %v11186_v13, 16 }
 0x168   : > { %v2930_v18 = vsel %vm538_vm2, %v2926_v37, %v2929_v25  ;;  %v763_v42 = vrot.slane %v761_v62, 1  ;;  %v2614_v6 = vshll.u32 %v11186_v13, 16  ;;  %v2621_v28 = vrot.slane %v2619_v0, 1  ;;  %v9911_v14 = vld [vmem:[%s10632_s11 + $0x74] ss:$0 sps:$4 sm:$0x77]  }
 0x169   : > { %3346 = vmatmul.mubr.bf16.gmra.mrb[52].mxu0 %v2930_v18  ;;  %v755_v49 = vrot.slane %v753_v52, 1  ;;  %v758_v57 = vrot.slane %v756_v47, 2  ;;  %v766_v29 = vrot.slane %v764_v17, 2  ;;  %v529_v19 = vrot.slane %v11037_v5, 1  ;;  %9165 = vmatpush3.bf16.msra.mxu1 %v9907_v46  ;;  %v7756_v62 = vld [vmem:[%s10632_s11 + $0x94] sm:$0xf] }
 0x16a   : > { %v2616_v11 = vrot.slane %v2614_v6, 1  ;;  %v2625_v48 = vor.u32 %v2623_v54, %v2621_v28  ;;  %v530_v51 = vrot.slane %v9905_v55, 1  ;;  %v7786_v21 = vcombine.low %v7752_v45, %v7753_v12  ;;  %9166 = vmatprep.subr.bf16.mxu1 %v9910_v59  ;;  %v7765_v45 = vld [vmem:[%s10632_s11 + $0x90] sm:$0xc]  ;;  %v9919_v47 = vld [vmem:[#allocation4 + $0x238] sm:$0xff]  }
 0x16b   : > { %v759_v15 = vor.u32 %v758_v57, %v755_v49  ;;  %v767_v58 = vor.u32 %v766_v29, %v763_v42  ;;  %v11198_v60 = vrot.slane %v2623_v54, 1  ;;  %v11200_v63 = vrot.slane %v2619_v0, 2  ;;  %v11209_v52 = vld [vmem:[%s10632_s11 + $0x98] ss:$0 sps:$4 sm:$0x33]  }
 0x16c   : > { %v2617_v1 = vor.u32 %v2616_v11, %v2612_v44  ;;  %v2986_v39 = vshrl.u32 %v2625_v48, 16  ;;  %v2989_v5 = vshll.u32 %v2625_v48, 16  ;;  %v531_v46 = vsel %vm513_vm1, %v529_v19, %v530_v51 }
 0x16d   : > { %v768_v3 = vsel %vm538_vm2, %v759_v15, %v767_v58  ;;  %v799_v12 = vshrl.u32 %v531_v46, 16  ;;  %v802_v25 = vshll.u32 %v531_v46, 16  ;;  %v807_v55 = vshrl.u32 %v530_v51, 16  ;;  %9167 = vmatpush3.bf16.msra.mxu1 %v9910_v59 }
 0x16e   : > { %9148 = vmatprep.mubr.bf16.mxu1 %v768_v3  ;;  %v2622_v54 = vsel %vm368_vm0, %v2617_v1, %v2621_v28  ;;  %v2988_v0 = vrot.slane %v2986_v39, 1  ;;  %v2991_v37 = vrot.slane %v2989_v5, 2  ;;  %v810_v50 = vshll.u32 %v530_v51, 16  ;;  %9168 = vmatprep.subr.bf16.mxu1 %v9916_v4  ;;  %v11216_v3 = vld [vmem:[#allocation4 + $0x2c0] sm:$0xff]  }
 0x16f   : > { %v2978_v17 = vshrl.u32 %v2622_v54, 16  ;;  %v2981_v44 = vshll.u32 %v2622_v54, 16  ;;  %v801_v18 = vrot.slane %v799_v12, 1  ;;  %v804_v42 = vrot.slane %v802_v25, 2  ;;  %v7755_v54 = vld [vmem:[%s10632_s11 + $0x90] sm:$0xe] }
 0x170   : > { %v2992_v6 = vor.u32 %v2991_v37, %v2988_v0  ;;  %v809_v49 = vrot.slane %v807_v55, 1  ;;  %v812_v59 = vrot.slane %v810_v50, 2  ;;  %v2966_v57 = vshrl.u32 %v7786_v21, 16  ;;  %v9914_v25 = vld [vmem:[%s10632_s11 + $0x80] ss:$0 sps:$4 sm:$0x77]  }
 0x171   : > { %v2980_v29 = vrot.slane %v2978_v17, 1  ;;  %v2983_v19 = vrot.slane %v2981_v44, 2  ;;  %v805_v28 = vor.u32 %v804_v42, %v801_v18  ;;  %v2969_v11 = vshll.u32 %v7786_v21, 16  ;;  %9169 = vmatpush3.bf16.msra.mxu1 %v9916_v4 }
 0x172   : > { %v813_v48 = vor.u32 %v812_v59, %v809_v49  ;;  %v2968_v51 = vrot.slane %v2966_v57, 1  ;;  %v2975_v15 = vor.u32 %v11200_v63, %v11198_v60  ;;  %v532_v58 = vrot.slane %v11077_v10, 1  ;;  %9170 = vmatprep.subr.bf16.mxu1 %v9919_v47 }
 0x173   : > { %v2984_v1 = vor.u32 %v2983_v19, %v2980_v29  ;;  %v2971_v39 = vrot.slane %v2969_v11, 2  ;;  %v533_v5 = vrot.slane %v9911_v14, 1  ;;  %v11214_v46 = vcombine.low %v7765_v45, %v7756_v62 }
 0x174   : > { %v814_v12 = vsel %vm538_vm2, %v805_v28, %v813_v48  ;;  %v2634_v21 = vshll.u32 %v11209_v52, 16  ;;  %v2638_v4 = vshrl.u32 %v11209_v52, 16  ;;  %v535_v60 = vrot.slane %v11112_v35, 1 }
 0x175   : > { %v2993_v10 = vsel %vm538_vm2, %v2984_v1, %v2992_v6  ;;  %9149 = vmatmul.mubr.bf16.gmra.mrb[8].mxu1 %v814_v12  ;;  %v2972_v63 = vor.u32 %v2971_v39, %v2968_v51  ;;  %v534_v55 = vsel %vm513_vm1, %v532_v58, %v533_v5  ;;  %v853_v14 = vshrl.u32 %v533_v5, 16 }
 0x176   : > { %3353 = vmatprep.mubr.bf16.mxu0 %v2993_v10  ;;  %v845_v0 = vshrl.u32 %v534_v55, 16  ;;  %v848_v37 = vshll.u32 %v534_v55, 16  ;;  %v856_v50 = vshll.u32 %v533_v5, 16  ;;  %v2627_v45 = vshrl.u32 %v11214_v46, 16  ;;  %9171 = vmatpush3.bf16.msra.mxu1 %v9919_v47  ;;  %v11235_v55 = vld [vmem:[%s10632_s11 + $0x1c] sm:$0xf] }
 0x177   : > { %v2976_v52 = vsel %vm538_vm2, %v2972_v63, %v2975_v15  ;;  %v855_v17 = vrot.slane %v853_v14, 1  ;;  %v2629_v35 = vshll.u32 %v11214_v46, 16  ;;  %v2636_v44 = vrot.slane %v2634_v21, 1  ;;  %9188 = vmatprep.subr.bf16.mxu1 %v11216_v3  ;;  %v7854_v14 = vld [vmem:[%s10632_s11 + $0x18] sm:$0xc] }
 0x178   : > { %3354 = vmatmul.mubr.bf16.gmra.mrb[56].mxu0 %v2976_v52  ;;  %v847_v18 = vrot.slane %v845_v0, 1  ;;  %v850_v42 = vrot.slane %v848_v37, 2  ;;  %v858_v6 = vrot.slane %v856_v50, 2  ;;  %v536_v49 = vrot.slane %v9914_v25, 1  ;;  %v11240_v37 = vpop.f32.mrb[0].mxu0 }
 0x179   : > { %v2631_v59 = vrot.slane %v2629_v35, 1  ;;  %v2640_v57 = vor.u32 %v2638_v4, %v2636_v44  ;;  %v7788_v29 = vcombine.low %v7755_v54, %v7756_v62  ;;  %v3019_v19 = vrot.slane %v2638_v4, 1  ;;  %v9920_v62 = vld [vmem:[%s10632_s11 + $0x44] ss:$0 sps:$4 sm:$0x77]  }
 0x17a   : > { %v851_v28 = vor.u32 %v850_v42, %v847_v18  ;;  %v859_v47 = vor.u32 %v858_v6, %v855_v17  ;;  %v537_v11 = vsel %vm513_vm1, %v535_v60, %v536_v49  ;;  %v899_v48 = vshrl.u32 %v536_v49, 16  ;;  %v9922_v54 = vld [vmem:[%s10632_s11 + $0x20] ss:$0 sps:$4 sm:$0x33]  }
 0x17b   : > { %v2632_v51 = vor.u32 %v2631_v59, %v2627_v45  ;;  %v3032_v15 = vshrl.u32 %v2640_v57, 16  ;;  %v3035_v58 = vshll.u32 %v2640_v57, 16  ;;  %v891_v1 = vshrl.u32 %v537_v11, 16  ;;  %v9923_v0 = vld [vmem:[%s10632_s11 + $0x50] ss:$0 sps:$4 sm:$0x77]  }
 0x17c   : > { %v860_v39 = vsel %vm538_vm2, %v851_v28, %v859_v47  ;;  %v894_v5 = vshll.u32 %v537_v11, 16  ;;  %v901_v12 = vrot.slane %v899_v48, 1  ;;  %v902_v25 = vshll.u32 %v536_v49, 16  ;;  %v11242_v49 = vpop.f32.mrb[1].mxu0 }
 0x17d   : > { %9152 = vmatprep.mubr.bf16.mxu1 %v860_v39  ;;  %v2637_v4 = vsel %vm368_vm0, %v2632_v51, %v2636_v44  ;;  %v3034_v10 = vrot.slane %v3032_v15, 1  ;;  %v3037_v60 = vrot.slane %v3035_v58, 2  ;;  %v893_v63 = vrot.slane %v891_v1, 1 }
 0x17e   : > { %v3024_v50 = vshrl.u32 %v2637_v4, 16  ;;  %v3027_v45 = vshll.u32 %v2637_v4, 16  ;;  %v896_v52 = vrot.slane %v894_v5, 2  ;;  %v904_v17 = vrot.slane %v902_v25, 2 }
 0x17f   : > { %v3038_v35 = vor.u32 %v3037_v60, %v3034_v10  ;;  %v3012_v18 = vshrl.u32 %v7788_v29, 16  ;;  %v3015_v42 = vshll.u32 %v7788_v29, 16  ;;  %v3020_v6 = vrot.slane %v2634_v21, 2 }
 0x180   : > { %v3026_v44 = vrot.slane %v3024_v50, 1  ;;  %v3029_v59 = vrot.slane %v3027_v45, 2  ;;  %v897_v57 = vor.u32 %v896_v52, %v893_v63  ;;  %v905_v28 = vor.u32 %v904_v17, %v901_v12  ;;  %v11248_v12 = vpop.f32.mrb[2].mxu0  ;;  %v9930_v17 = vld [vmem:[%s10632_s11 + $0x5c] ss:$0 sps:$4 sm:$0x77]  }
 0x181   : > { %v3014_v47 = vrot.slane %v3012_v18, 1  ;;  %v3017_v11 = vrot.slane %v3015_v42, 2  ;;  %v3021_v48 = vor.u32 %v3020_v6, %v3019_v19  ;;  %v2665_v51 = vrot.slane %v11014_v22, 1 }
 0x182   : > { %v3030_v15 = vor.u32 %v3029_v59, %v3026_v44  ;;  %v906_v58 = vsel %vm538_vm2, %v897_v57, %v905_v28  ;;  %v2666_v1 = vrot.slane %v9920_v62, 1  ;;  %v7902_v39 = vcombine.low %v7854_v14, %v11235_v55  ;;  %v7830_v62 = vld [vmem:[%s10632_s11 + $0x18] sm:$0xe]  ;;  %v11260_v59 = vld [vmem:[%s10632_s11 + $0x28] sm:$0xf] }
 0x183   : > { %9153 = vmatmul.mubr.bf16.gmra.mrb[12].mxu1 %v906_v58  ;;  %v3018_v21 = vor.u32 %v3017_v11, %v3014_v47  ;;  %v3653_v29 = vrot.slane %v9922_v54, 1  ;;  %v2668_v5 = vrot.slane %v11040_v7, 1  ;;  %v2669_v25 = vrot.slane %v9923_v0, 1  ;;  %v9925_v54 = vld [vmem:[%s10632_s11 + $0x20] ss:$0 sps:$4 sm:$0x11]  }
 0x184   : > { %v3039_v19 = vsel %vm538_vm2, %v3030_v15, %v3038_v35  ;;  %v2667_v22 = vsel %vm513_vm1, %v2665_v51, %v2666_v1  ;;  %v2727_v4 = vshrl.u32 %v2666_v1, 16  ;;  %v2730_v10 = vshll.u32 %v2666_v1, 16  ;;  %v9932_v35 = vld [vmem:[%s10632_s11 + $0x2c] ss:$0 sps:$4 sm:$0x33]   ;;  %v11264_v15 = vpop.f32.mrb[3].mxu0 }
 0x185   : > { %3361 = vmatprep.mubr.bf16.mxu0 %v3039_v19  ;;  %v3022_v60 = vsel %vm538_vm2, %v3018_v21, %v3021_v48  ;;  %v2719_v63 = vshrl.u32 %v2667_v22, 16  ;;  %v2722_v14 = vshll.u32 %v2667_v22, 16  ;;  %v3652_v7 = vrot.slane %v7902_v39, 1  ;;  %v9933_v57 = vld [vmem:[%s10632_s11 + $0x68] ss:$0 sps:$4 sm:$0x77]  }
 0x186   : > { %3362 = vmatmul.mubr.bf16.gmra.mrb[60].mxu0 %v3022_v60  ;;  %v2729_v0 = vrot.slane %v2727_v4, 1  ;;  %v2732_v50 = vrot.slane %v2730_v10, 2  ;;  %v3753_v45 = vrot.slane %v3653_v29, 1  ;;  %v2670_v52 = vsel %vm513_vm1, %v2668_v5, %v2669_v25  ;;  %v7856_v51 = vld [vmem:[%s10632_s11 + $0x24] sm:$0xc] }
 0x187   : > { %v2721_v18 = vrot.slane %v2719_v63, 1  ;;  %v2724_v42 = vrot.slane %v2722_v14, 2  ;;  %v3654_v6 = vsel %vm513_vm1, %v3652_v7, %v3653_v29  ;;  %v2765_v44 = vshrl.u32 %v2670_v52, 16  ;;  %v9928_v4 = vld [vmem:[#allocation4 + $0x300] sm:$0xff]   ;;  %v9937_v7 = vld [vmem:[#allocation4 + $0x348] sm:$0xff]  }
 0x188   : > { %v2733_v28 = vor.u32 %v2732_v50, %v2729_v0  ;;  %v3752_v47 = vrot.slane %v3654_v6, 1  ;;  %v2768_v11 = vshll.u32 %v2670_v52, 16  ;;  %v2773_v48 = vshrl.u32 %v2669_v25, 16 }
 0x189   : > { %v2725_v58 = vor.u32 %v2724_v42, %v2721_v18  ;;  %v2767_v1 = vrot.slane %v2765_v44, 1  ;;  %v2776_v39 = vshll.u32 %v2669_v25, 16  ;;  %v7886_v21 = vcombine.low %v7830_v62, %v11235_v55  ;;  %v9929_v42 = vld [vmem:[#allocation4 + $0x2c8] sm:$0xff]  }
 0x18a   : > { %v3754_v5 = vsel %vm513_vm1, %v3752_v47, %v3753_v45  ;;  %v2770_v19 = vrot.slane %v2768_v11, 2  ;;  %v2775_v29 = vrot.slane %v2773_v48, 1  ;;  %v3750_v22 = vrot.slane %v9925_v54, 1  ;;  %v7833_v47 = vld [vmem:[%s10632_s11 + $0x24] sm:$0xe] }
 0x18b   : > { %v2734_v10 = vsel %vm538_vm2, %v2725_v58, %v2733_v28  ;;  %4069 = vmatprep.mubr.bf16.mxu0 %v3754_v5  ;;  %v2778_v60 = vrot.slane %v2776_v39, 2  ;;  %v3749_v63 = vrot.slane %v7886_v21, 1  ;;  %v2671_v14 = vrot.slane %v11088_v23, 1  ;;  %v9935_v11 = vld [vmem:[%s10632_s11 + $0x2c] ss:$0 sps:$4 sm:$0x11]  }
 0x18c   : > { %9172 = vmatprep.mubr.bf16.mxu1 %v2734_v10  ;;  %v2771_v25 = vor.u32 %v2770_v19, %v2767_v1  ;;  %v2672_v0 = vrot.slane %v9930_v17, 1  ;;  %v7904_v62 = vcombine.low %v7856_v51, %v11260_v59  ;;  %v3656_v50 = vrot.slane %v9932_v35, 1  ;;  %v9938_v58 = vld [vmem:[#allocation4 + $0x308] sm:$0xff]   ;;  %v11279_v21 = vld [vmem:[#allocation4 + $0x2d0] sm:$0xff]  }
 0x18d   : > { %v2779_v45 = vor.u32 %v2778_v60, %v2775_v29  ;;  %v3751_v54 = vsel %vm513_vm1, %v3749_v63, %v3750_v22  ;;  %v2674_v52 = vrot.slane %v11115_v53, 1  ;;  %v2675_v18 = vrot.slane %v9933_v57, 1  ;;  %v9940_v5 = vld [vmem:[%s10632_s11 + $0x74] ss:$0 sps:$4 sm:$0x77]  }
 0x18e   : > { %4070 = vmatmul.mubr.bf16.vlgmr.msra.gmra.mrb[64].mxu0 %v3751_v54  ;;  %v2673_v6 = vsel %vm513_vm1, %v2671_v14, %v2672_v0  ;;  %v2819_v23 = vshrl.u32 %v2672_v0, 16  ;;  %v2822_v44 = vshll.u32 %v2672_v0, 16  ;;  %v3655_v28 = vrot.slane %v7904_v62, 1  ;;  %v9947_v19 = vld [vmem:[#allocation4 + $0x350] sm:$0xff]  }
 0x18f   : > { %v2780_v17 = vsel %vm538_vm2, %v2771_v25, %v2779_v45  ;;  %8693 = vmatpush3.bf16.msra.mxu0 %v9928_v4  ;;  %v2811_v35 = vshrl.u32 %v2673_v6, 16  ;;  %v2814_v48 = vshll.u32 %v2673_v6, 16  ;;  %v3762_v51 = vrot.slane %v3656_v50, 1  ;;  %v11284_v60 = vld [vmem:[%s10632_s11 + $0x34] sm:$0xf] }
 0x190   : > { %9173 = vmatmul.mubr.bf16.vlgmr.msra.gmra.mrb[0].mxu1 %v2780_v17  ;;  %v2821_v53 = vrot.slane %v2819_v23, 1  ;;  %v2824_v57 = vrot.slane %v2822_v44, 2  ;;  %v3657_v1 = vsel %vm513_vm1, %v3655_v28, %v3656_v50  ;;  %v2676_v39 = vsel %vm513_vm1, %v2674_v52, %v2675_v18  ;;  %8694 = vmatprep.subr.bf16.mxu0 %v9937_v7  ;;  %v9942_v62 = vld [vmem:[%s10632_s11 + $0x38] ss:$0 sps:$4 sm:$0x33]   ;;  %v9948_v52 = vld [vmem:[#allocation4 + $0x310] sm:$0xff]  }
 0x191   : > { %9189 = vmatpush3.bf16.msra.mxu1 %v11216_v3  ;;  %v2813_v29 = vrot.slane %v2811_v35, 1  ;;  %v2816_v22 = vrot.slane %v2814_v48, 2  ;;  %v3761_v4 = vrot.slane %v3657_v1, 1  ;;  %v2857_v10 = vshrl.u32 %v2676_v39, 16  ;;  %v7858_v3 = vld [vmem:[%s10632_s11 + $0x30] sm:$0xc] }
 0x192   : > { %9190 = vmatprep.subr.bf16.mxu1 %v9929_v42  ;;  %v2825_v63 = vor.u32 %v2824_v57, %v2821_v53  ;;  %v2860_v14 = vshll.u32 %v2676_v39, 16  ;;  %v2865_v25 = vshrl.u32 %v2675_v18, 16  ;;  %v2868_v0 = vshll.u32 %v2675_v18, 16  ;;  %v9957_v17 = vld [vmem:[#allocation4 + $0x358] sm:$0xff]  }
 0x193   : > { %v2817_v50 = vor.u32 %v2816_v22, %v2813_v29  ;;  %v3763_v7 = vsel %vm513_vm1, %v3761_v4, %v3762_v51  ;;  %v2859_v45 = vrot.slane %v2857_v10, 1  ;;  %v7888_v54 = vcombine.low %v7833_v47, %v11260_v59  ;;  %8695 = vmatpush3.bf16.msra.mxu0 %v9938_v58  ;;  %v9943_v47 = vld [vmem:[%s10632_s11 + $0x80] ss:$0 sps:$4 sm:$0x77]  }
 0x194   : > { %4077 = vmatprep.mubr.bf16.mxu0 %v3763_v7  ;;  %v2862_v6 = vrot.slane %v2860_v14, 2  ;;  %v2867_v23 = vrot.slane %v2865_v25, 1  ;;  %v2870_v44 = vrot.slane %v2868_v0, 2  ;;  %v3759_v28 = vrot.slane %v9935_v11, 1  ;;  %8696 = vmatprep.subr.bf16.mxu0 %v9947_v19  ;;  %v7836_v14 = vld [vmem:[%s10632_s11 + $0x30] sm:$0xe] }
 0x195   : > { %9191 = vmatpush3.bf16.msra.mxu1 %v9929_v42  ;;  %v2826_v18 = vsel %vm538_vm2, %v2817_v50, %v2825_v63  ;;  %v3758_v35 = vrot.slane %v7888_v54, 1  ;;  %v2677_v48 = vrot.slane %v11138_v33, 1  ;;  %v2678_v51 = vrot.slane %v9940_v5, 1  ;;  %v9945_v11 = vld [vmem:[%s10632_s11 + $0x38] ss:$0 sps:$4 sm:$0x11]  }
 0x196   : > { %9176 = vmatprep.mubr.bf16.mxu1 %v2826_v18  ;;  %v2863_v58 = vor.u32 %v2862_v6, %v2859_v45  ;;  %v2871_v53 = vor.u32 %v2870_v44, %v2867_v23  ;;  %9192 = vmatprep.subr.bf16.mxu1 %v11279_v21  ;;  %v7906_v57 = vcombine.low %v7858_v3, %v11284_v60  ;;  %v3659_v1 = vrot.slane %v9942_v62, 1  ;;  %v9939_v42 = vld [vmem:[#allocation4 + $0x2d8] sm:$0xff]   ;;  %v9968_v25 = vld [vmem:[#allocation4 + $0x360] sm:$0xff]   ;;  %v9950_v54 = vld [vmem:[%s10632_s11 + $0x8c] ss:$0 sps:$4 sm:$0x77]  }
 0x197   : > { %v3760_v39 = vsel %vm513_vm1, %v3758_v35, %v3759_v28  ;;  %v2679_v19 = vsel %vm513_vm1, %v2677_v48, %v2678_v51  ;;  %v2911_v29 = vshrl.u32 %v2678_v51, 16  ;;  %v2914_v22 = vshll.u32 %v2678_v51, 16  ;;  %8697 = vmatpush3.bf16.msra.mxu0 %v9948_v52  ;;  %v9958_v33 = vld [vmem:[#allocation4 + $0x318] sm:$0xff]   ;;  %v9946_v45 = vld [vmem:[#allocation4 + $0x2e0] sm:$0xff]   ;;  %v11307_v28 = vpop.f32.mrb[4].mxu0 }
 0x198   : > { %v2872_v5 = vsel %vm538_vm2, %v2863_v58, %v2871_v53  ;;  %4078 = vmatmul.mubr.bf16.gmra.mrb[68].mxu0 %v3760_v39  ;;  %v2903_v4 = vshrl.u32 %v2679_v19, 16  ;;  %v2906_v10 = vshll.u32 %v2679_v19, 16  ;;  %v3658_v63 = vrot.slane %v7906_v57, 1  ;;  %8698 = vmatprep.subr.bf16.mxu0 %v9957_v17  ;;  %v11305_v44 = vld [vmem:[%s10632_s11 + $0x44] ss:$0 sps:$4 sm:$0x33]  }
 0x199   : > { %9177 = vmatmul.mubr.bf16.gmra.mrb[4].mxu1 %v2872_v5  ;;  %v2913_v0 = vrot.slane %v2911_v29, 1  ;;  %v2916_v62 = vrot.slane %v2914_v22, 2  ;;  %v3771_v50 = vrot.slane %v3659_v1, 1  ;;  %v2680_v7 = vrot.slane %v11159_v2, 1  ;;  %v11311_v48 = vld [vmem:[%s10632_s11 + $0x40] sm:$0xf] }
 0x19a   : > { %9193 = vmatpush3.bf16.msra.mxu1 %v11279_v21  ;;  %v2905_v3 = vrot.slane %v2903_v4, 1  ;;  %v2908_v52 = vrot.slane %v2906_v10, 2  ;;  %v3660_v6 = vsel %vm513_vm1, %v3658_v63, %v3659_v1  ;;  %v2681_v23 = vrot.slane %v9943_v47, 1  ;;  %v7860_v51 = vld [vmem:[%s10632_s11 + $0x3c] sm:$0xc]  ;;  %v9970_v21 = vld [vmem:[#allocation4 + $0x320] sm:$0xff]  }
 0x19b   : > { %9194 = vmatprep.subr.bf16.mxu1 %v9939_v42  ;;  %v2917_v17 = vor.u32 %v2916_v62, %v2913_v0  ;;  %v3770_v18 = vrot.slane %v3660_v6, 1  ;;  %v7890_v2 = vcombine.low %v7836_v14, %v11284_v60  ;;  %v3768_v35 = vrot.slane %v9945_v11, 1  ;;  %8699 = vmatpush3.bf16.msra.mxu0 %v9958_v33  ;;  %v9953_v22 = vld [vmem:[%s10632_s11 + $0x98] ss:$0 sps:$4 sm:$0x77]   ;;  %v11317_v5 = vpop.f32.mrb[5].mxu0 }
 0x19c   : > { %v2909_v58 = vor.u32 %v2908_v52, %v2905_v3  ;;  %v2682_v53 = vsel %vm513_vm1, %v2680_v7, %v2681_v23  ;;  %v2957_v47 = vshrl.u32 %v2681_v23, 16  ;;  %v2960_v57 = vshll.u32 %v2681_v23, 16  ;;  %8700 = vmatprep.subr.bf16.mxu0 %v9968_v25  ;;  %v9980_v63 = vld [vmem:[#allocation4 + $0x368] sm:$0xff]   ;;  %v11322_v7 = vpop.f32.mrb[6].mxu0  ;;  %v7839_v6 = vld [vmem:[%s10632_s11 + $0x3c] sm:$0xe] }
 0x19d   : > { %v3772_v1 = vsel %vm513_vm1, %v3770_v18, %v3771_v50  ;;  %v2949_v39 = vshrl.u32 %v2682_v53, 16  ;;  %v2952_v19 = vshll.u32 %v2682_v53, 16  ;;  %v3767_v29 = vrot.slane %v7890_v2, 1  ;;  %v9949_v62 = vld [vmem:[#allocation4 + $0x2e8] sm:$0xff]  }
 0x19e   : > { %9195 = vmatpush3.bf16.msra.mxu1 %v9939_v42  ;;  %v2918_v11 = vsel %vm538_vm2, %v2909_v58, %v2917_v17  ;;  %4085 = vmatprep.mubr.bf16.mxu0 %v3772_v1  ;;  %v2959_v33 = vrot.slane %v2957_v47, 1  ;;  %v2962_v4 = vrot.slane %v2960_v57, 2  ;;  %v2683_v10 = vrot.slane %v11186_v13, 1 }
 0x19f   : > { %9180 = vmatprep.mubr.bf16.mxu1 %v2918_v11  ;;  %v2951_v14 = vrot.slane %v2949_v39, 1  ;;  %v2954_v25 = vrot.slane %v2952_v19, 2  ;;  %v3769_v0 = vsel %vm513_vm1, %v3767_v29, %v3768_v35  ;;  %9196 = vmatprep.subr.bf16.mxu1 %v9946_v45  ;;  %v2684_v50 = vrot.slane %v9950_v54, 1  ;;  %v9955_v35 = vld [vmem:[%s10632_s11 + $0x44] ss:$0 sps:$4 sm:$0x11]  }
 0x1a0   : > { %v2963_v42 = vor.u32 %v2962_v4, %v2959_v33  ;;  %4086 = vmatmul.mubr.bf16.gmra.mrb[72].mxu0 %v3769_v0  ;;  %v7908_v3 = vcombine.low %v7860_v51, %v11311_v48  ;;  %v3662_v52 = vrot.slane %v11305_v44, 1  ;;  %v2686_v13 = vrot.slane %v11214_v46, 1  ;;  %v9982_v54 = vld [vmem:[#allocation4 + $0x328] sm:$0xff]   ;;  %v9956_v51 = vld [vmem:[#allocation4 + $0x2f0] sm:$0xff]  }
 0x1a1   : > { %v2955_v23 = vor.u32 %v2954_v25, %v2951_v14  ;;  %v2685_v17 = vsel %vm513_vm1, %v2683_v10, %v2684_v50  ;;  %v3003_v18 = vshrl.u32 %v2684_v50, 16  ;;  %v3006_v2 = vshll.u32 %v2684_v50, 16  ;;  %8701 = vmatpush3.bf16.msra.mxu0 %v9970_v21  ;;  %v9992_v46 = vld [vmem:[#allocation4 + $0x370] sm:$0xff]   ;;  %v11339_v10 = vld [vmem:[%s10632_s11 + $0x4c] sm:$0xf] }
 0x1a2   : > { %9197 = vmatpush3.bf16.msra.mxu1 %v9946_v45  ;;  %v2995_v58 = vshrl.u32 %v2685_v17, 16  ;;  %v2998_v53 = vshll.u32 %v2685_v17, 16  ;;  %v3661_v47 = vrot.slane %v7908_v3, 1  ;;  %v3780_v57 = vrot.slane %v3662_v52, 1  ;;  %8702 = vmatprep.subr.bf16.mxu0 %v9980_v63  ;;  %v11334_v45 = vpop.f32.mrb[7].mxu0  ;;  %v9959_v3 = vld [vmem:[#allocation4 + $0x2f8] sm:$0xff]  }
 0x1a3   : > { %v2964_v44 = vsel %vm538_vm2, %v2955_v23, %v2963_v42  ;;  %9198 = vmatprep.subr.bf16.mxu1 %v9949_v62  ;;  %v3005_v1 = vrot.slane %v3003_v18, 1  ;;  %v3008_v39 = vrot.slane %v3006_v2, 2  ;;  %v2687_v19 = vrot.slane %v9953_v22, 1  ;;  %v11332_v29 = vld [vmem:[%s10632_s11 + $0x50] ss:$0 sps:$4 sm:$0x33]  }
 0x1a4   : > { %9181 = vmatmul.mubr.bf16.gmra.mrb[8].mxu1 %v2964_v44  ;;  %v2997_v21 = vrot.slane %v2995_v58, 1  ;;  %v3000_v11 = vrot.slane %v2998_v53, 2  ;;  %v3663_v33 = vsel %vm513_vm1, %v3661_v47, %v3662_v52  ;;  %v7892_v4 = vcombine.low %v7839_v6, %v11311_v48  ;;  %v7862_v63 = vld [vmem:[%s10632_s11 + $0x48] sm:$0xc]  ;;  %v9994_v22 = vld [vmem:[#allocation4 + $0x330] sm:$0xff]   ;;  %v10004_v52 = vld [vmem:[#allocation4 + $0x378] sm:$0xff]  }
 0x1a5   : > { %v11343_v14 = vld [vmem:[%s10632_s11 + $0x20] ss:$0 sps:$4 sm:$0x77]   ;;  %v3009_v25 = vor.u32 %v3008_v39, %v3005_v1  ;;  %v3779_v0 = vrot.slane %v3663_v33, 1  ;;  %v2688_v50 = vsel %vm513_vm1, %v2686_v13, %v2687_v19  ;;  %v3049_v42 = vshrl.u32 %v2687_v19, 16  ;;  %8703 = vmatpush3.bf16.msra.mxu0 %v9982_v54 }
 0x1a6   : > { %v7870_v23 = vld [vmem:[%s10632_s11 + $0x18] sm:$0x8]  ;;  %9199 = vmatpush3.bf16.msra.mxu1 %v9949_v62  ;;  %v3001_v6 = vor.u32 %v3000_v11, %v2997_v21  ;;  %v3041_v17 = vshrl.u32 %v2688_v50, 16  ;;  %v3044_v18 = vshll.u32 %v2688_v50, 16  ;;  %v3052_v2 = vshll.u32 %v2687_v19, 16  ;;  %8704 = vmatprep.subr.bf16.mxu0 %v9992_v46  ;;  %v10012_v46 = vld [vmem:[#allocation4 + $0x4c0] sm:$0xff]  }
 0x1a7   : > { %v7842_v58 = vld [vmem:[%s10632_s11 + $0x48] sm:$0xe]  ;;  %v11349_v53 = vld [vmem:[%s10632_s11 + $0x50] ss:$0 sps:$4 sm:$0x11]   ;;  %v3781_v47 = vsel %vm513_vm1, %v3779_v0, %v3780_v57  ;;  %v3051_v44 = vrot.slane %v3049_v42, 1  ;;  %9200 = vmatprep.subr.bf16.mxu1 %v9956_v51  ;;  %v7910_v57 = vcombine.low %v7862_v63, %v11339_v10  ;;  %v7918_v0 = vcombine.low %v7870_v23, %v11235_v55 }
 0x1a8   : > { %v3776_v13 = vrot.slane %v7892_v4, 1  ;;  %v3777_v1 = vrot.slane %v9955_v35, 1  ;;  %v7872_v39 = vld [vmem:[%s10632_s11 + $0x24] sm:$0x8]  ;;  %v10006_v62 = vld [vmem:[#allocation4 + $0x338] sm:$0xff]   ;;  %v3010_v21 = vsel %vm538_vm2, %v3001_v6, %v3009_v25  ;;  %4093 = vmatprep.mubr.bf16.mxu0 %v3781_v47  ;;  %v3043_v19 = vrot.slane %v3041_v17, 1 }
 0x1a9   : > { %v11354_v54 = vld [vmem:[%s10632_s11 + $0x2c] ss:$0 sps:$4 sm:$0x77]   ;;  %v3046_v11 = vrot.slane %v3044_v18, 2  ;;  %v3054_v33 = vrot.slane %v3052_v2, 2  ;;  %v11357_v50 = vpop.f32.mrb[8].mxu0  ;;  %9184 = vmatprep.mubr.bf16.mxu1 %v3010_v21  ;;  %8705 = vmatpush3.bf16.msra.mxu0 %v9994_v22 }
 0x1aa   : > { %v3778_v35 = vsel %vm513_vm1, %v3776_v13, %v3777_v1  ;;  %v3665_v4 = vrot.slane %v11332_v29, 1  ;;  %v11363_v42 = vld [vmem:[#allocation4 + $0x380] sm:$0xff]   ;;  %v11366_v25 = vld [vmem:[%s10632_s11 + $0x58] sm:$0xf]  ;;  %v7864_v6 = vld [vmem:[%s10632_s11 + $0x54] sm:$0xc]  ;;  %9201 = vmatpush3.bf16.msra.mxu1 %v9956_v51  ;;  %v7894_v13 = vcombine.low %v7842_v58, %v11339_v10  ;;  %8706 = vmatprep.subr.bf16.mxu0 %v10004_v52 }
 0x1ab   : > { %v9973_v17 = vld [vmem:[%s10632_s11 + $0x5c] ss:$0 sps:$4 sm:$0x33]   ;;  %v3047_v18 = vor.u32 %v3046_v11, %v3043_v19  ;;  %v3055_v2 = vor.u32 %v3054_v33, %v3051_v44  ;;  %4094 = vmatmul.mubr.bf16.gmra.mrb[76].mxu0 %v3778_v35  ;;  %v3726_v63 = vrot.slane %v11343_v14, 2  ;;  %v7874_v47 = vld [vmem:[%s10632_s11 + $0x30] sm:$0x8]  ;;  %9202 = vmatprep.subr.bf16.mxu1 %v9959_v3  ;;  %v7920_v14 = vcombine.low %v7872_v39, %v11260_v59 }
 0x1ac   : > { %v3664_v29 = vrot.slane %v7910_v57, 1  ;;  %v3789_v55 = vrot.slane %v3665_v4, 1  ;;  %v3725_v23 = vrot.slane %v7918_v0, 2  ;;  %v9975_v1 = vld [vmem:[%s10632_s11 + $0x38] ss:$0 sps:$4 sm:$0x77]  }
 0x1ad   : > { %v11374_v21 = vpop.f32.mrb[9].mxu0  ;;  %v3056_v22 = vsel %vm538_vm2, %v3047_v18, %v3055_v2  ;;  %v3756_v44 = vrot.slane %v3726_v63, 1  ;;  %v3786_v51 = vrot.slane %v11349_v53, 1  ;;  %v11380_v19 = vld [vmem:[%s10632_s11 + $0x5c] ss:$0 sps:$4 sm:$0x11]   ;;  %8707 = vmatpush3.bf16.msra.mxu0 %v10006_v62  ;;  %v7912_v53 = vcombine.low %v7864_v6, %v11366_v25 }
 0x1ae   : > { %9185 = vmatmul.mubr.bf16.gmra.mrb[12].mxu1 %v3056_v22  ;;  %v3666_v11 = vsel %vm513_vm1, %v3664_v29, %v3665_v4  ;;  %v3727_v58 = vsel %vm3724_vm3, %v3725_v23, %v3726_v63  ;;  %v3785_v33 = vrot.slane %v7894_v13, 1  ;;  %v3729_v52 = vrot.slane %v11354_v54, 2  ;;  %v7845_v59 = vld [vmem:[%s10632_s11 + $0x54] sm:$0xe]  ;;  %8852 = vmatprep.subr.bf16.mxu0 %v10012_v46  ;;  %v11388_v4 = vpop.f32.mrb[10].mxu0 }
 0x1af   : > { %9203 = vmatpush3.bf16.msra.mxu1 %v9959_v3  ;;  %v3788_v35 = vrot.slane %v3666_v11, 1  ;;  %v3755_v57 = vrot.slane %v3727_v58, 1  ;;  %v3728_v0 = vrot.slane %v7920_v14, 2  ;;  %v9979_v39 = vld [vmem:[%s10632_s11 + $0x44] ss:$0 sps:$4 sm:$0x77]   ;;  %v7922_v3 = vcombine.low %v7874_v47, %v11284_v60 }
 0x1b0   : > { %v3787_v18 = vsel %vm513_vm1, %v3785_v33, %v3786_v51  ;;  %v3765_v2 = vrot.slane %v3729_v52, 1  ;;  %9220 = vmatprep.subr.bf16.mxu1 %v11363_v42  ;;  %v3668_v54 = vrot.slane %v9973_v17, 1  ;;  %v7876_v62 = vld [vmem:[%s10632_s11 + $0x3c] sm:$0x8]  ;;  %v3667_v23 = vrot.slane %v7912_v53, 1  ;;  %v9971_v17 = vld [vmem:[#allocation4 + $0x388] sm:$0xff]  }
 0x1b1   : > { %v3790_v63 = vsel %vm513_vm1, %v3788_v35, %v3789_v55  ;;  %v3757_v6 = vsel %vm513_vm1, %v3755_v57, %v3756_v44  ;;  %v3730_v29 = vsel %vm3724_vm3, %v3728_v0, %v3729_v52  ;;  %v11398_v46 = vld [vmem:[%s10632_s11 + $0x64] sm:$0xf]  ;;  %v7866_v13 = vld [vmem:[%s10632_s11 + $0x60] sm:$0xc]  ;;  %v3731_v47 = vrot.slane %v7922_v3, 2 }
 0x1b2   : > { %v9985_v22 = vld [vmem:[%s10632_s11 + $0x68] ss:$0 sps:$4 sm:$0x33]   ;;  %4101 = vmatprep.mubr.bf16.mxu0 %v3790_v63  ;;  %9204 = vmatprep.mubr.bf16.mxu1 %v3757_v6  ;;  %v3764_v51 = vrot.slane %v3730_v29, 1  ;;  %v3798_v60 = vrot.slane %v3668_v54, 1  ;;  %v3732_v55 = vrot.slane %v9975_v1, 2  ;;  %v3669_v44 = vsel %vm513_vm1, %v3667_v23, %v3668_v54 }
 0x1b3   : > { %4102 = vmatmul.mubr.bf16.gmra.mrb[80].mxu0 %v3787_v18  ;;  %v7896_v14 = vcombine.low %v7845_v59, %v11366_v25  ;;  %v3795_v11 = vrot.slane %v11380_v19, 1  ;;  %v7924_v58 = vcombine.low %v7876_v62, %v11311_v48  ;;  %v7878_v33 = vld [vmem:[%s10632_s11 + $0x48] sm:$0x8]  ;;  %v9987_v52 = vld [vmem:[%s10632_s11 + $0x50] ss:$0 sps:$4 sm:$0x77]   ;;  %v7914_v62 = vcombine.low %v7866_v13, %v11398_v46 }
 0x1b4   : > { %v3766_v35 = vsel %vm513_vm1, %v3764_v51, %v3765_v2  ;;  %v3797_v57 = vrot.slane %v3669_v44, 1  ;;  %v3733_v0 = vsel %vm3724_vm3, %v3731_v47, %v3732_v55  ;;  %v3774_v53 = vrot.slane %v3732_v55, 1  ;;  %v7848_v3 = vld [vmem:[%s10632_s11 + $0x60] sm:$0xe]  ;;  %v7880_v1 = vld [vmem:[%s10632_s11 + $0x54] sm:$0x8] }
 0x1b5   : > { %v3773_v18 = vrot.slane %v3733_v0, 1  ;;  %v3794_v63 = vrot.slane %v7896_v14, 1  ;;  %v3734_v54 = vrot.slane %v7924_v58, 2  ;;  %v3735_v59 = vrot.slane %v9979_v39, 2  ;;  %v9981_v48 = vld [vmem:[#allocation4 + $0x390] sm:$0xff]  }
 0x1b6   : > { %9205 = vmatmul.mubr.bf16.vlgmr.msra.gmra.mrb[0].mxu1 %v3766_v35  ;;  %v3799_v19 = vsel %vm513_vm1, %v3797_v57, %v3798_v60  ;;  %v3671_v6 = vrot.slane %v9985_v22, 1  ;;  %v7926_v2 = vcombine.low %v7878_v33, %v11339_v10  ;;  %v9989_v29 = vld [vmem:[%s10632_s11 + $0x68] ss:$0 sps:$4 sm:$0x11]   ;;  %v3670_v13 = vrot.slane %v7914_v62, 1 }
 0x1b7   : > { %9221 = vmatpush3.bf16.msra.mxu1 %v11363_v42  ;;  %4109 = vmatprep.mubr.bf16.mxu0 %v3799_v19  ;;  %v3775_v23 = vsel %vm513_vm1, %v3773_v18, %v3774_v53  ;;  %v3796_v51 = vsel %vm513_vm1, %v3794_v63, %v3795_v11  ;;  %v3736_v47 = vsel %vm3724_vm3, %v3734_v54, %v3735_v59  ;;  %v3783_v39 = vrot.slane %v3735_v59, 1  ;;  %v9991_v55 = vld [vmem:[%s10632_s11 + $0x5c] ss:$0 sps:$4 sm:$0x77]   ;;  %v7852_v19 = vld [vmem:[%s10632_s11 + $0x70] sm:$0xf] }
 0x1b8   : > { %9222 = vmatprep.subr.bf16.mxu1 %v9971_v17  ;;  %9208 = vmatprep.mubr.bf16.mxu1 %v3775_v23  ;;  %v3782_v60 = vrot.slane %v3736_v47, 1  ;;  %v3807_v22 = vrot.slane %v3671_v6, 1  ;;  %v3737_v44 = vrot.slane %v7926_v2, 2  ;;  %v3738_v10 = vrot.slane %v9987_v52, 2  ;;  %v7868_v2 = vld [vmem:[%s10632_s11 + $0x6c] sm:$0xc] }
 0x1b9   : > { %v7898_v14 = vcombine.low %v7848_v3, %v11398_v46  ;;  %v3804_v42 = vrot.slane %v9989_v29, 1  ;;  %v7928_v58 = vcombine.low %v7880_v1, %v11366_v25  ;;  %v3672_v11 = vsel %vm513_vm1, %v3670_v13, %v3671_v6  ;;  %v11426_v57 = vld [vmem:[%s10632_s11 + $0x38] ss:$0 sps:$4 sm:$0x33]   ;;  %v8404_v25 = vpop.f32.mrb[11].mxu0 }
 0x1ba   : > { %v3784_v33 = vsel %vm513_vm1, %v3782_v60, %v3783_v39  ;;  %v3741_v35 = vrot.slane %v9991_v55, 2  ;;  %v4287_v0 = vrot.slane %v11426_v57, 1  ;;  %v3806_v52 = vrot.slane %v3672_v11, 1  ;;  %v9983_v1 = vld [vmem:[#allocation4 + $0x398] sm:$0xff]   ;;  %v7882_v29 = vld [vmem:[%s10632_s11 + $0x60] sm:$0x8] }
 0x1bb   : > { %9223 = vmatpush3.bf16.msra.mxu1 %v9971_v17  ;;  %4110 = vmatmul.mubr.bf16.gmra.mrb[84].mxu0 %v3796_v51  ;;  %v3739_v53 = vsel %vm3724_vm3, %v3737_v44, %v3738_v10  ;;  %v3792_v3 = vrot.slane %v3738_v10, 1  ;;  %v3803_v18 = vrot.slane %v7898_v14, 1  ;;  %v3740_v54 = vrot.slane %v7928_v58, 2  ;;  %v9993_v39 = vld [vmem:[#allocation4 + $0x3a0] sm:$0xff]  }
 0x1bc   : > { %9224 = vmatprep.subr.bf16.mxu1 %v9981_v48  ;;  %v3791_v63 = vrot.slane %v3739_v53, 1  ;;  %v3801_v59 = vrot.slane %v3741_v35, 1  ;;  %v11436_v17 = vsel %vm513_vm1, %v1252_v34, %v4287_v0  ;;  %v3808_v62 = vsel %vm513_vm1, %v3806_v52, %v3807_v22  ;;  %v9997_v60 = vld [vmem:[%s10632_s11 + $0x74] ss:$0 sps:$4 sm:$0x33]  }
 0x1bd   : > { %v3805_v6 = vsel %vm513_vm1, %v3803_v18, %v3804_v42  ;;  %v11444_v23 = vadd.f32 %v11242_v49, %v11240_v37  ;;  %v11448_v51 = vadd.f32 %v11264_v15, %v11248_v12  ;;  %4117 = vmatprep.mubr.bf16.mxu0 %v3808_v62  ;;  %v3742_v47 = vsel %vm3724_vm3, %v3740_v54, %v3741_v35  ;;  %v9999_v12 = vld [vmem:[%s10632_s11 + $0x68] ss:$0 sps:$4 sm:$0x77]   ;;  %v7851_v15 = vld [vmem:[%s10632_s11 + $0x6c] sm:$0xe] }
 0x1be   : > { %9209 = vmatmul.mubr.bf16.gmra.mrb[4].mxu1 %v3784_v33  ;;  %v3793_v34 = vsel %vm513_vm1, %v3791_v63, %v3792_v3  ;;  %v7916_v55 = vcombine.low %v7868_v2, %v7852_v19  ;;  %v4354_v13 = vrot.slane %v11436_v17, 1  ;;  %v3800_v37 = vrot.slane %v3742_v47, 1  ;;  %v9995_v35 = vld [vmem:[#allocation4 + $0x3a8] sm:$0xff]   ;;  %v10003_v63 = vld [vmem:[%s10632_s11 + $0x74] ss:$0 sps:$4 sm:$0x77]  }
 0x1bf   : > { %9225 = vmatpush3.bf16.msra.mxu1 %v9981_v48  ;;  %9212 = vmatprep.mubr.bf16.mxu1 %v3793_v34  ;;  %v7930_v49 = vcombine.low %v7882_v29, %v11398_v46  ;;  %v11459_v22 = vadd.f32 %v11317_v5, %v11307_v28  ;;  %v11463_v44 = vadd.f32 %v11334_v45, %v11322_v7  ;;  %v3674_v14 = vrot.slane %v9997_v60, 1  ;;  %v7884_v48 = vld [vmem:[%s10632_s11 + $0x6c] sm:$0x8]  ;;  %v10001_v28 = vld [vmem:[%s10632_s11 + $0x74] ss:$0 sps:$4 sm:$0x11]  }
 0x1c0   : > { %9226 = vmatprep.subr.bf16.mxu1 %v9983_v1  ;;  %v3673_v10 = vrot.slane %v7916_v55, 1  ;;  %v7900_v42 = vcombine.low %v7851_v15, %v7852_v19  ;;  %v11468_v58 = vadd.f32 %v11374_v21, %v11357_v50  ;;  %v3802_v46 = vsel %vm513_vm1, %v3800_v37, %v3801_v59  ;;  %v7966_v29 = vld [vmem:[%s10632_s11 + $0x30] sm:$0x8]  ;;  %v10250_v57 = vld [vmem:[%s10632_s11 + $0x38] ss:$0 sps:$4 sm:$0x77]  }
 0x1c1   : > { %v3743_v33 = vrot.slane %v7930_v49, 2  ;;  %v3744_v11 = vrot.slane %v9999_v12, 2  ;;  %v7932_v5 = vcombine.low %v7884_v48, %v7852_v19  ;;  %v3816_v45 = vrot.slane %v3674_v14, 1  ;;  %v10251_v47 = vld [vmem:[%s10632_s11 + $0x34] sm:$0xf]  ;;  %v10007_v48 = vld [vmem:[#allocation4 + $0x3b8] sm:$0xff]  }
 0x1c2   : > { %v3675_v7 = vsel %vm513_vm1, %v3673_v10, %v3674_v14  ;;  %v3812_v52 = vrot.slane %v7900_v42, 1  ;;  %v11474_v53 = vadd.f32 %v8404_v25, %v11388_v4  ;;  %v3813_v18 = vrot.slane %v10001_v28, 1  ;;  %v10009_v60 = vld [vmem:[%s10632_s11 + $0x38] ss:$0 sps:$4 sm:$0x11]  }
 0x1c3   : > { %9227 = vmatpush3.bf16.msra.mxu1 %v9983_v1  ;;  %4118 = vmatmul.mubr.bf16.gmra.mrb[88].mxu0 %v3805_v6  ;;  %v3815_v3 = vrot.slane %v3675_v7, 1  ;;  %v3745_v50 = vsel %vm3724_vm3, %v3743_v33, %v3744_v11  ;;  %v3810_v21 = vrot.slane %v3744_v11, 1  ;;  %v3746_v59 = vrot.slane %v7932_v5, 2  ;;  %v10005_v1 = vld [vmem:[#allocation4 + $0x3b0] sm:$0xff]   ;;  %v7967_v10 = vld [vmem:[%s10632_s11 + $0x3c] sm:$0x8] }
 0x1c4   : > { %9228 = vmatprep.subr.bf16.mxu1 %v9993_v39  ;;  %v3809_v54 = vrot.slane %v3745_v50, 1  ;;  %v3747_v17 = vrot.slane %v10003_v63, 2  ;;  %v4355_v4 = vrot.slane %v4287_v0, 1  ;;  %v3814_v62 = vsel %vm513_vm1, %v3812_v52, %v3813_v18  ;;  %v10253_v14 = vld [vmem:[%s10632_s11 + $0x44] ss:$0 sps:$4 sm:$0x33]  }
 0x1c5   : > { %v3817_v19 = vsel %vm513_vm1, %v3815_v3, %v3816_v45  ;;  %v4328_v34 = vrot.slane %v10250_v57, 2  ;;  %v7982_v55 = vcombine.low %v7966_v29, %v10251_v47  ;;  %v4351_v37 = vrot.slane %v10716_v36, 1  ;;  %v10254_v11 = vld [vmem:[%s10632_s11 + $0x40] sm:$0xf]  ;;  %v7969_v57 = vld [vmem:[%s10632_s11 + $0x54] sm:$0x8] }
 0x1c6   : > { %9213 = vmatmul.mubr.bf16.gmra.mrb[8].mxu1 %v3802_v46  ;;  %4125 = vmatprep.mubr.bf16.mxu0 %v3817_v19  ;;  %v3811_v25 = vsel %vm513_vm1, %v3809_v54, %v3810_v21  ;;  %v3748_v6 = vsel %vm3724_vm3, %v3746_v59, %v3747_v17  ;;  %v3819_v2 = vrot.slane %v3747_v17, 1  ;;  %v4356_v12 = vsel %vm513_vm1, %v4354_v13, %v4355_v4  ;;  %v10255_v21 = vld [vmem:[%s10632_s11 + $0x50] ss:$0 sps:$4 sm:$0x77]   ;;  %v10011_v63 = vld [vmem:[#allocation4 + $0x400] sm:$0xff]   ;;  %v10021_v4 = vld [vmem:[#allocation4 + $0x4c8] sm:$0xff]  }
 0x1c7   : > { %9229 = vmatpush3.bf16.msra.mxu1 %v9993_v39  ;;  %9216 = vmatprep.mubr.bf16.mxu1 %v3811_v25  ;;  %v3818_v0 = vrot.slane %v3748_v6, 1  ;;  %v10252_v39 = vld [vmem:[%s10632_s11 + $0x44] ss:$0 sps:$4 sm:$0x77]   ;;  %v4358_v15 = vrot.slane %v4328_v34, 1  ;;  %v4289_v42 = vrot.slane %v10253_v14, 1  ;;  %v7983_v28 = vcombine.low %v7967_v10, %v10254_v11 }
 0x1c8   : > { %9230 = vmatprep.subr.bf16.mxu1 %v9995_v35  ;;  %v4331_v49 = vrot.slane %v10252_v39, 2  ;;  %v4327_v46 = vrot.slane %v7982_v55, 2  ;;  %v4352_v33 = vrot.slane %v10009_v60, 1  ;;  %v10014_v54 = vld [vmem:[#allocation4 + $0x480] sm:$0xff]   ;;  %v7968_v19 = vld [vmem:[%s10632_s11 + $0x48] sm:$0x8] }
 0x1c9   : > { %v3820_v5 = vsel %vm513_vm1, %v3818_v0, %v3819_v2  ;;  %v4290_v36 = vsel %vm513_vm1, %v1255_v16, %v4289_v42  ;;  %v4364_v13 = vrot.slane %v4289_v42, 1  ;;  %v4330_v52 = vrot.slane %v7983_v28, 2  ;;  %v10018_v2 = vld [vmem:[%s10632_s11 + $0x44] ss:$0 sps:$4 sm:$0x11]   ;;  %v10030_v28 = vld [vmem:[#allocation4 + $0x4d0] sm:$0xff]  }
 0x1ca   : > { %v4367_v7 = vrot.slane %v4331_v49, 1  ;;  %v4329_v45 = vsel %vm3724_vm3, %v4327_v46, %v4328_v34  ;;  %v4363_v3 = vrot.slane %v4290_v36, 1  ;;  %v4353_v25 = vsel %vm513_vm1, %v4351_v37, %v4352_v33  ;;  %v10013_v34 = vld [vmem:[#allocation4 + $0x3c0] sm:$0xff]   ;;  %v10258_v47 = vld [vmem:[%s10632_s11 + $0x5c] ss:$0 sps:$4 sm:$0x77]  }
 0x1cb   : > { %9231 = vmatpush3.bf16.msra.mxu1 %v9995_v35  ;;  %4126 = vmatmul.mubr.bf16.gmra.mrb[92].mxu0 %v3814_v62  ;;  %v4357_v50 = vrot.slane %v4329_v45, 1  ;;  %v4334_v35 = vrot.slane %v10255_v21, 2  ;;  %v4332_v18 = vsel %vm3724_vm3, %v4330_v52, %v4331_v49  ;;  %v10256_v62 = vld [vmem:[%s10632_s11 + $0x4c] sm:$0xf]  ;;  %v4360_v29 = vrot.slane %v10752_v43, 1  ;;  %v10020_v45 = vld [vmem:[#allocation4 + $0x410] sm:$0xff]  }
 0x1cc   : > { %9232 = vmatprep.subr.bf16.mxu1 %v10005_v1  ;;  %4671 = vmatprep.mubr.bf16.mxu0 %v4356_v12  ;;  %v4366_v59 = vrot.slane %v4332_v18, 1  ;;  %v7984_v6 = vcombine.low %v7968_v19, %v10256_v62  ;;  %v4337_v55 = vrot.slane %v10258_v47, 2  ;;  %v10259_v60 = vld [vmem:[%s10632_s11 + $0x50] ss:$0 sps:$4 sm:$0x33]   ;;  %v10015_v49 = vld [vmem:[#allocation4 + $0x408] sm:$0xff]   ;;  %v4365_v12 = vsel %vm513_vm1, %v4363_v3, %v4364_v13 }
 0x1cd   : > { %v4359_v16 = vsel %vm513_vm1, %v4357_v50, %v4358_v15  ;;  %v4376_v17 = vrot.slane %v4334_v35, 1  ;;  %v4291_v39 = vrot.slane %v10259_v60, 1  ;;  %v4361_v10 = vrot.slane %v10018_v2, 1  ;;  %v10023_v43 = vld [vmem:[#allocation4 + $0x488] sm:$0xff]   ;;  %v7970_v3 = vld [vmem:[%s10632_s11 + $0x60] sm:$0x8] }
 0x1ce   : > { %9217 = vmatmul.mubr.bf16.gmra.mrb[12].mxu1 %v3820_v5  ;;  %v4333_v15 = vrot.slane %v7984_v6, 2  ;;  %v4368_v37 = vsel %vm513_vm1, %v4366_v59, %v4367_v7  ;;  %v4385_v42 = vrot.slane %v4337_v55, 1  ;;  %v12416_v46 = vrot.slane %v10749_v38, 1  ;;  %v10016_v5 = vld [vmem:[#allocation4 + $0x3c8] sm:$0xff]   ;;  %v10260_v21 = vld [vmem:[%s10632_s11 + $0x64] sm:$0xf] }
 0x1cf   : > { %9233 = vmatpush3.bf16.msra.mxu1 %v10005_v1  ;;  %9236 = vmatprep.mubr.bf16.mxu1 %v4359_v16  ;;  %v10257_v1 = vld [vmem:[%s10632_s11 + $0x58] sm:$0xf]  ;;  %v4373_v52 = vrot.slane %v4291_v39, 1  ;;  %v10261_v18 = vld [vmem:[%s10632_s11 + $0x68] ss:$0 sps:$4 sm:$0x77]   ;;  %v4362_v59 = vsel %vm513_vm1, %v4360_v29, %v4361_v10 }
 0x1d0   : > { %9234 = vmatprep.subr.bf16.mxu1 %v10007_v48  ;;  %v7985_v0 = vcombine.low %v7969_v57, %v10257_v1  ;;  %v4292_v33 = vsel %vm513_vm1, %v12416_v46, %v4291_v39  ;;  %v4335_v11 = vsel %vm3724_vm3, %v4333_v15, %v4334_v35  ;;  %v7986_v35 = vcombine.low %v7970_v3, %v10260_v21  ;;  %v10032_v16 = vld [vmem:[#allocation4 + $0x490] sm:$0xff]   ;;  %v10039_v62 = vld [vmem:[#allocation4 + $0x4d8] sm:$0xff]   ;;  %v11529_v47 = vpop.f32.mrb[12].mxu0  ;;  %v10265_v15 = vld [vmem:[%s10632_s11 + $0x80] ss:$0 sps:$4 sm:$0x77]  }
 0x1d1   : > { %v4372_v36 = vrot.slane %v4292_v33, 1  ;;  %v10262_v57 = vld [vmem:[%s10632_s11 + $0x70] sm:$0xf]  ;;  %v10263_v1 = vld [vmem:[%s10632_s11 + $0x74] ss:$0 sps:$4 sm:$0x77]  }
 0x1d2   : > { %v4336_v14 = vrot.slane %v7985_v0, 2  ;;  %v4339_v6 = vrot.slane %v7986_v35, 2  ;;  %v4343_v0 = vrot.slane %v10263_v1, 2  ;;  %v10264_v60 = vld [vmem:[%s10632_s11 + $0x5c] ss:$0 sps:$4 sm:$0x33]  }
 0x1d3   : > { %9235 = vmatpush3.bf16.msra.mxu1 %v10007_v48  ;;  %4672 = vmatmul.mubr.bf16.vlgmr.msra.gmra.mrb[96].mxu0 %v4353_v25  ;;  %v4375_v48 = vrot.slane %v4335_v11, 1  ;;  %v4374_v19 = vsel %vm513_vm1, %v4372_v36, %v4373_v52  ;;  %v7971_v25 = vld [vmem:[%s10632_s11 + $0x6c] sm:$0x8]  ;;  %v4293_v39 = vrot.slane %v10264_v60, 1  ;;  %v4346_v10 = vrot.slane %v10265_v15, 2  ;;  %v10049_v11 = vld [vmem:[#allocation4 + $0x4e0] sm:$0xff]  }
 0x1d4   : > { %8772 = vmatprep.subr.bf16.mxu1 %v10011_v63  ;;  %8853 = vmatpush3.bf16.msra.mxu0 %v10014_v54  ;;  %v4338_v7 = vsel %vm3724_vm3, %v4336_v14, %v4337_v55  ;;  %v4340_v63 = vrot.slane %v10261_v18, 2  ;;  %v10027_v54 = vld [vmem:[%s10632_s11 + $0x50] ss:$0 sps:$4 sm:$0x11]   ;;  %v10024_v55 = vld [vmem:[#allocation4 + $0x418] sm:$0xff]   ;;  %v10050_v21 = vld [vmem:[#allocation4 + $0x4a0] sm:$0xff]  }
 0x1d5   : > { %4679 = vmatprep.mubr.bf16.mxu0 %v4365_v12  ;;  %8854 = vmatprep.subr.bf16.mxu0 %v10021_v4  ;;  %v4384_v13 = vrot.slane %v4338_v7, 1  ;;  %v4377_v50 = vsel %vm513_vm1, %v4375_v48, %v4376_v17  ;;  %v4369_v4 = vrot.slane %v10791_v8, 1  ;;  %v10022_v17 = vld [vmem:[#allocation4 + $0x3d0] sm:$0xff]   ;;  %v4370_v29 = vrot.slane %v10027_v54, 1  ;;  %v10029_v7 = vld [vmem:[#allocation4 + $0x420] sm:$0xff]   ;;  %v10034_v15 = vld [vmem:[#allocation4 + $0x3e8] sm:$0xff]  }
 0x1d6   : > { %9237 = vmatmul.mubr.bf16.vlgmr.msra.gmra.mrb[0].mxu1 %v4368_v37  ;;  %v4394_v2 = vrot.slane %v4340_v63, 1  ;;  %v10041_v37 = vld [vmem:[#allocation4 + $0x498] sm:$0xff]   ;;  %v4382_v33 = vrot.slane %v4293_v39, 1  ;;  %v4403_v48 = vrot.slane %v4343_v0, 1  ;;  %v4412_v18 = vrot.slane %v4346_v10, 1 }
 0x1d7   : > { %8773 = vmatpush3.bf16.msra.mxu1 %v10013_v34  ;;  %9240 = vmatprep.mubr.bf16.mxu1 %v4377_v50  ;;  %v7987_v34 = vcombine.low %v7971_v25, %v10262_v57  ;;  %v4386_v8 = vsel %vm513_vm1, %v4384_v13, %v4385_v42  ;;  %v7972_v13 = vld [vmem:[%s10632_s11 + $0x78] sm:$0x8]  ;;  %v10266_v52 = vld [vmem:[%s10632_s11 + $0x7c] sm:$0xf]  ;;  %v4371_v35 = vsel %vm513_vm1, %v4369_v4, %v4370_v29  ;;  %v10033_v57 = vld [vmem:[#allocation4 + $0x428] sm:$0xff]  }
 0x1d8   : > { %8774 = vmatprep.subr.bf16.mxu1 %v10015_v49  ;;  %8855 = vmatpush3.bf16.msra.mxu0 %v10023_v43  ;;  %v4341_v49 = vsel %vm3724_vm3, %v4339_v6, %v4340_v63  ;;  %v12417_v43 = vrot.slane %v10768_v27, 1  ;;  %v7988_v3 = vcombine.low %v7972_v13, %v10266_v52  ;;  %v10036_v50 = vld [vmem:[%s10632_s11 + $0x5c] ss:$0 sps:$4 sm:$0x11]   ;;  %v7973_v63 = vld [vmem:[%s10632_s11 + $0x84] sm:$0x8] }
 0x1d9   : > { %8856 = vmatprep.subr.bf16.mxu0 %v10030_v28  ;;  %v4342_v12 = vrot.slane %v7987_v34, 2  ;;  %v4393_v14 = vrot.slane %v4341_v49, 1  ;;  %v10025_v28 = vld [vmem:[#allocation4 + $0x3d8] sm:$0xff]   ;;  %v10267_v54 = vld [vmem:[%s10632_s11 + $0x8c] ss:$0 sps:$4 sm:$0x77]  }
 0x1da   : > { %v4294_v46 = vsel %vm513_vm1, %v12417_v43, %v4293_v39  ;;  %v10268_v6 = vld [vmem:[%s10632_s11 + $0x88] sm:$0xf]  ;;  %v4379_v34 = vrot.slane %v10036_v50, 1  ;;  %v10038_v43 = vld [vmem:[#allocation4 + $0x430] sm:$0xff]   ;;  %v4387_v13 = vrot.slane %v10876_v20, 1 }
 0x1db   : > { %8775 = vmatpush3.bf16.msra.mxu1 %v10016_v5  ;;  %4680 = vmatmul.mubr.bf16.gmra.mrb[100].mxu0 %v4362_v59  ;;  %v4344_v42 = vsel %vm3724_vm3, %v4342_v12, %v4343_v0  ;;  %v4395_v5 = vsel %vm513_vm1, %v4393_v14, %v4394_v2  ;;  %v4381_v36 = vrot.slane %v4294_v46, 1  ;;  %v10056_v59 = vld [vmem:[#allocation4 + $0x4e8] sm:$0xff]   ;;  %v7989_v2 = vcombine.low %v7973_v63, %v10268_v6  ;;  %v10042_v63 = vld [vmem:[#allocation4 + $0x438] sm:$0xff]  }
 0x1dc   : > { %8776 = vmatprep.subr.bf16.mxu1 %v10020_v45  ;;  %4687 = vmatprep.mubr.bf16.mxu0 %v4374_v19  ;;  %v4402_v45 = vrot.slane %v4344_v42, 1  ;;  %v10031_v19 = vld [vmem:[#allocation4 + $0x3e0] sm:$0xff]   ;;  %v10269_v1 = vld [vmem:[%s10632_s11 + $0x68] ss:$0 sps:$4 sm:$0x33]  }
 0x1dd   : > { %8857 = vmatpush3.bf16.msra.mxu0 %v10032_v16  ;;  %v4349_v16 = vrot.slane %v10267_v54, 2  ;;  %v4383_v25 = vsel %vm513_vm1, %v4381_v36, %v4382_v33  ;;  %v4295_v0 = vrot.slane %v10269_v1, 1  ;;  %v4348_v29 = vrot.slane %v7989_v2, 2  ;;  %v10057_v39 = vld [vmem:[#allocation4 + $0x4a8] sm:$0xff]  }
 0x1de   : > { %9241 = vmatmul.mubr.bf16.gmra.mrb[4].mxu1 %v4386_v8  ;;  %8858 = vmatprep.subr.bf16.mxu0 %v10039_v62  ;;  %v4345_v62 = vrot.slane %v7988_v3, 2  ;;  %v4404_v4 = vsel %vm513_vm1, %v4402_v45, %v4403_v48  ;;  %v12418_v8 = vrot.slane %v10785_v61, 1  ;;  %v11558_v33 = vld [vmem:[%s10632_s11 + $0x4c] sm:$0xf]  ;;  %v10040_v45 = vld [vmem:[#allocation4 + $0x3f0] sm:$0xff]  }
 0x1df   : > { %8777 = vmatpush3.bf16.msra.mxu1 %v10022_v17  ;;  %9244 = vmatprep.mubr.bf16.mxu1 %v4395_v5  ;;  %v4378_v17 = vrot.slane %v10831_v41, 1  ;;  %v4421_v60 = vrot.slane %v4349_v16, 1  ;;  %v4391_v12 = vrot.slane %v4295_v0, 1  ;;  %v10045_v42 = vld [vmem:[%s10632_s11 + $0x50] ss:$0 sps:$4 sm:$0x33]  }
 0x1e0   : > { %8778 = vmatprep.subr.bf16.mxu1 %v10024_v55  ;;  %v4347_v55 = vsel %vm3724_vm3, %v4345_v62, %v4346_v10  ;;  %v4296_v49 = vsel %vm513_vm1, %v12418_v8, %v4295_v0  ;;  %v10270_v5 = vld [vmem:[%s10632_s11 + $0x74] ss:$0 sps:$4 sm:$0x33]   ;;  %v10046_v36 = vld [vmem:[%s10632_s11 + $0x68] ss:$0 sps:$4 sm:$0x11]  }
 0x1e1   : > { %8859 = vmatpush3.bf16.msra.mxu0 %v10041_v37  ;;  %v4411_v41 = vrot.slane %v4347_v55, 1  ;;  %v4350_v37 = vsel %vm3724_vm3, %v4348_v29, %v4349_v16  ;;  %v4390_v46 = vrot.slane %v4296_v49, 1  ;;  %v4297_v48 = vrot.slane %v10270_v5, 1  ;;  %v11577_v0 = vld [vmem:[%s10632_s11 + $0x58] sm:$0xf] }
 0x1e2   : > { %8860 = vmatprep.subr.bf16.mxu0 %v10049_v11  ;;  %v4420_v14 = vrot.slane %v4350_v37, 1  ;;  %v8038_v11 = vld [vmem:[%s10632_s11 + $0x48] sm:$0xc]  ;;  %v5019_v50 = vrot.slane %v10045_v42, 1  ;;  %v4388_v54 = vrot.slane %v10046_v36, 1  ;;  %v12420_v5 = vrot.slane %v10826_v31, 1 }
 0x1e3   : > { %8779 = vmatpush3.bf16.msra.mxu1 %v10025_v28  ;;  %4688 = vmatmul.mubr.bf16.gmra.mrb[104].mxu0 %v4371_v35  ;;  %v4413_v10 = vsel %vm513_vm1, %v4411_v41, %v4412_v18  ;;  %v8086_v28 = vcombine.low %v8038_v11, %v11558_v33  ;;  %v4392_v52 = vsel %vm513_vm1, %v4390_v46, %v4391_v12  ;;  %v12419_v35 = vrot.slane %v10809_v56, 1  ;;  %v10052_v41 = vld [vmem:[%s10632_s11 + $0x5c] ss:$0 sps:$4 sm:$0x33]  }
 0x1e4   : > { %8780 = vmatprep.subr.bf16.mxu1 %v10029_v7  ;;  %4695 = vmatprep.mubr.bf16.mxu0 %v4383_v25  ;;  %v4380_v7 = vsel %vm513_vm1, %v4378_v17, %v4379_v34  ;;  %v4422_v20 = vsel %vm513_vm1, %v4420_v14, %v4421_v60  ;;  %v5118_v25 = vrot.slane %v5019_v50, 1  ;;  %v10043_v34 = vld [vmem:[#allocation4 + $0x3f8] sm:$0xff]   ;;  %v4400_v1 = vrot.slane %v4297_v48, 1  ;;  %v10053_v49 = vld [vmem:[%s10632_s11 + $0x74] ss:$0 sps:$4 sm:$0x11]  }
 0x1e5   : > { %8861 = vmatpush3.bf16.msra.mxu0 %v10050_v21  ;;  %v5018_v3 = vrot.slane %v8086_v28, 1  ;;  %v8014_v21 = vld [vmem:[%s10632_s11 + $0x48] sm:$0xe]  ;;  %v4298_v18 = vsel %vm513_vm1, %v12419_v35, %v4297_v48  ;;  %v5022_v14 = vrot.slane %v10052_v41, 1  ;;  %v4396_v11 = vrot.slane %v10914_v30, 1 }
 0x1e6   : > { %9245 = vmatmul.mubr.bf16.gmra.mrb[8].mxu1 %v4404_v4  ;;  %8862 = vmatprep.subr.bf16.mxu0 %v10056_v59  ;;  %v8070_v16 = vcombine.low %v8014_v21, %v11558_v33  ;;  %v10048_v59 = vld [vmem:[%s10632_s11 + $0x50] ss:$0 sps:$4 sm:$0x11]   ;;  %v4399_v62 = vrot.slane %v4298_v18, 1  ;;  %v8040_v4 = vld [vmem:[%s10632_s11 + $0x54] sm:$0xc] }
 0x1e7   : > { %8781 = vmatpush3.bf16.msra.mxu1 %v10031_v19  ;;  %9248 = vmatprep.mubr.bf16.mxu1 %v4413_v10  ;;  %v5020_v19 = vsel %vm513_vm1, %v5018_v3, %v5019_v50  ;;  %v5115_v2 = vrot.slane %v10048_v59, 1  ;;  %v10055_v42 = vld [vmem:[%s10632_s11 + $0x5c] ss:$0 sps:$4 sm:$0x11]   ;;  %v5127_v36 = vrot.slane %v5022_v14, 1  ;;  %v10063_v50 = vld [vmem:[#allocation4 + $0x4f0] sm:$0xff]  }
 0x1e8   : > { %8782 = vmatprep.subr.bf16.mxu1 %v10033_v57  ;;  %v5117_v17 = vrot.slane %v5020_v19, 1  ;;  %v5114_v6 = vrot.slane %v8070_v16, 1  ;;  %v8407_v57 = vpop.f32.mrb[13].mxu0  ;;  %v4401_v46 = vsel %vm513_vm1, %v4399_v62, %v4400_v1  ;;  %v5124_v21 = vrot.slane %v10055_v42, 1  ;;  %v11602_v18 = vld [vmem:[%s10632_s11 + $0x64] sm:$0xf] }
 0x1e9   : > { %8863 = vmatpush3.bf16.msra.mxu0 %v10057_v39  ;;  %v11581_v55 = vadd.f32 %v8407_v57, %v11529_v47  ;;  %v8409_v29 = vpop.f32.mrb[14].mxu0  ;;  %v8088_v39 = vcombine.low %v8040_v4, %v11577_v0  ;;  %v4389_v47 = vsel %vm513_vm1, %v4387_v13, %v4388_v54  ;;  %v4397_v13 = vrot.slane %v10053_v49, 1  ;;  %v10059_v59 = vld [vmem:[%s10632_s11 + $0x68] ss:$0 sps:$4 sm:$0x33]  }
 0x1ea   : > { %v5119_v60 = vsel %vm513_vm1, %v5117_v17, %v5118_v25  ;;  %v8410_v8 = vpop.f32.mrb[15].mxu0  ;;  %8864 = vmatprep.subr.bf16.mxu0 %v10063_v50  ;;  %v10060_v19 = vld [vmem:[%s10632_s11 + $0x80] ss:$0 sps:$4 sm:$0x11]   ;;  %v5025_v17 = vrot.slane %v10059_v59, 1  ;;  %v4405_v57 = vrot.slane %v10950_v40, 1 }
 0x1eb   : > { %8783 = vmatpush3.bf16.msra.mxu1 %v10034_v15  ;;  %4696 = vmatmul.mubr.bf16.gmra.mrb[108].mxu0 %v4380_v7  ;;  %v11587_v12 = vadd.f32 %v8410_v8, %v8409_v29  ;;  %v10271_v15 = vld [vmem:[%s10632_s11 + $0x80] ss:$0 sps:$4 sm:$0x33]   ;;  %v5021_v10 = vrot.slane %v8088_v39, 1  ;;  %v8412_v25 = vpop.f32.mrb[16].mxu0  ;;  %v8468_v39 = vpop.f32.mrb[16].mxu1 }
 0x1ec   : > { %8784 = vmatprep.subr.bf16.mxu1 %v10038_v43  ;;  %4703 = vmatprep.mubr.bf16.mxu0 %v4392_v52  ;;  %v4299_v37 = vrot.slane %v10271_v15, 1  ;;  %v8017_v43 = vld [vmem:[%s10632_s11 + $0x54] sm:$0xe]  ;;  %v10062_v1 = vld [vmem:[%s10632_s11 + $0x68] ss:$0 sps:$4 sm:$0x11]  }
 0x1ed   : > { %v8072_v28 = vcombine.low %v8017_v43, %v11577_v0  ;;  %v5023_v7 = vsel %vm513_vm1, %v5021_v10, %v5022_v14  ;;  %v4406_v8 = vrot.slane %v10060_v19, 1  ;;  %v8413_v15 = vpop.f32.mrb[17].mxu0  ;;  %v5133_v40 = vrot.slane %v10062_v1, 1  ;;  %v8469_v10 = vpop.f32.mrb[17].mxu1  ;;  %v8023_v19 = vld [vmem:[%s10632_s11 + $0x6c] sm:$0xe] }
 0x1ee   : > { %9249 = vmatmul.mubr.bf16.gmra.mrb[12].mxu1 %v4422_v20  ;;  %v4300_v48 = vsel %vm513_vm1, %v12420_v5, %v4299_v37  ;;  %v5126_v30 = vrot.slane %v5023_v7, 1  ;;  %v4409_v35 = vrot.slane %v4299_v37, 1  ;;  %v10064_v20 = vld [vmem:[#allocation4 + $0x4b0] sm:$0xff]   ;;  %v8415_v14 = vpop.f32.mrb[18].mxu0  ;;  %v8470_v42 = vadd.f32 %v8469_v10, %v8468_v39  ;;  %v8471_v5 = vpop.f32.mrb[18].mxu1  ;;  %v10071_v1 = vld [vmem:[#allocation4 + $0x4b8] sm:$0xff]  }
 0x1ef   : > { %8785 = vmatpush3.bf16.msra.mxu1 %v10040_v45  ;;  %5434 = vmatprep.mubr.bf16.mxu1 %v5119_v60  ;;  %v5116_v45 = vsel %vm513_vm1, %v5114_v6, %v5115_v2  ;;  %v5123_v52 = vrot.slane %v8072_v28, 1  ;;  %v4408_v3 = vrot.slane %v4300_v48, 1  ;;  %v8020_v6 = vld [vmem:[%s10632_s11 + $0x60] sm:$0xe]  ;;  %v4398_v2 = vsel %vm513_vm1, %v4396_v11, %v4397_v13  ;;  %v11621_v11 = vld [vmem:[%s10632_s11 + $0x70] sm:$0xf] }
 0x1f0   : > { %8786 = vmatprep.subr.bf16.mxu1 %v10042_v63  ;;  %v8042_v63 = vld [vmem:[%s10632_s11 + $0x60] sm:$0xc]  ;;  %v5128_v54 = vsel %vm513_vm1, %v5126_v30, %v5127_v36  ;;  %8865 = vmatpush3.bf16.msra.mxu0 %v10064_v20  ;;  %v5136_v60 = vrot.slane %v5025_v17, 1  ;;  %v10272_v43 = vld [vmem:[%s10632_s11 + $0x8c] ss:$0 sps:$4 sm:$0x33]  }
 0x1f1   : > { %v8090_v16 = vcombine.low %v8042_v63, %v11602_v18  ;;  %v4410_v4 = vsel %vm513_vm1, %v4408_v3, %v4409_v35  ;;  %v5125_v37 = vsel %vm513_vm1, %v5123_v52, %v5124_v21  ;;  %v8416_v48 = vpop.f32.mrb[19].mxu0  ;;  %v8044_v7 = vld [vmem:[%s10632_s11 + $0x6c] sm:$0xc]  ;;  %v8472_v13 = vpop.f32.mrb[19].mxu1  ;;  %v10070_v21 = vld [vmem:[#allocation4 + $0x4f8] sm:$0xff]   ;;  %v11633_v35 = vadd.f32 %v8470_v42, %v11444_v23 }
 0x1f2   : > { %v11625_v36 = vadd.f32 %v8416_v48, %v8415_v14  ;;  %v8092_v3 = vcombine.low %v8044_v7, %v11621_v11  ;;  %v10066_v50 = vld [vmem:[%s10632_s11 + $0x74] ss:$0 sps:$4 sm:$0x33]   ;;  %v8473_v63 = vadd.f32 %v8472_v13, %v8471_v5  ;;  %8866 = vmatprep.subr.bf16.mxu0 %v10070_v21  ;;  %v8418_v39 = vpop.f32.mrb[20].mxu0  ;;  %v10079_v48 = vld [vmem:[#allocation4 + $0x440] sm:$0xff]  }
 0x1f3   : > { %8787 = vmatpush3.bf16.msra.mxu1 %v10043_v34  ;;  %4704 = vmatmul.mubr.bf16.gmra.mrb[112].mxu0 %v4389_v47  ;;  %v5024_v62 = vrot.slane %v8090_v16, 1  ;;  %v8074_v34 = vcombine.low %v8020_v6, %v11602_v18  ;;  %v11617_v47 = vadd.f32 %v8413_v15, %v8412_v25  ;;  %v10067_v16 = vld [vmem:[%s10632_s11 + $0x8c] ss:$0 sps:$4 sm:$0x11]   ;;  %v5028_v20 = vrot.slane %v10066_v50, 1 }
 0x1f4   : > { %4711 = vmatprep.mubr.bf16.mxu0 %v4401_v46  ;;  %v4301_v46 = vrot.slane %v10272_v43, 1  ;;  %v5027_v59 = vrot.slane %v8092_v3, 1  ;;  %v4407_v25 = vsel %vm513_vm1, %v4405_v57, %v4406_v8  ;;  %v10069_v6 = vld [vmem:[%s10632_s11 + $0x74] ss:$0 sps:$4 sm:$0x11]   ;;  %8867 = vmatpush3.bf16.msra.mxu0 %v10071_v1 }
 0x1f5   : > { %v5026_v29 = vsel %vm513_vm1, %v5024_v62, %v5025_v17  ;;  %v5132_v49 = vrot.slane %v8074_v34, 1  ;;  %v11639_v62 = vadd.f32 %v8473_v63, %v11448_v51  ;;  %v8076_v17 = vcombine.low %v8023_v19, %v11621_v11  ;;  %v8474_v51 = vpop.f32.mrb[20].mxu1  ;;  %v11648_v8 = vld [vmem:[%s10632_s11 + $0x7c] sm:$0xf]  ;;  %v8046_v15 = vld [vmem:[%s10632_s11 + $0x78] sm:$0xc]  ;;  %9252 = vmatprep.subr.bf16.mxu1 %v10079_v48 }
 0x1f6   : > { %5435 = vmatmul.mubr.bf16.vlgmr.msra.gmra.mrb[48].mxu1 %v5116_v45  ;;  %v5135_v41 = vrot.slane %v5026_v29, 1  ;;  %v12421_v45 = vrot.slane %v10847_v32, 1  ;;  %v4418_v52 = vrot.slane %v4301_v46, 1  ;;  %v5145_v34 = vrot.slane %v5028_v20, 1  ;;  %v8475_v43 = vpop.f32.mrb[21].mxu1 }
 0x1f7   : > { %5442 = vmatprep.mubr.bf16.mxu1 %v5128_v54  ;;  %v4414_v29 = vrot.slane %v10984_v24, 1  ;;  %v5134_v57 = vsel %vm513_vm1, %v5132_v49, %v5133_v40  ;;  %v5141_v10 = vrot.slane %v8076_v17, 1  ;;  %v5142_v14 = vrot.slane %v10069_v6, 1  ;;  %v8477_v49 = vpop.f32.mrb[22].mxu1  ;;  %9253 = vmatpush3.bf16.msra.mxu1 %v10079_v48 }
 0x1f8   : > { %v5137_v28 = vsel %vm513_vm1, %v5135_v41, %v5136_v60  ;;  %v4302_v30 = vsel %vm513_vm1, %v12421_v45, %v4301_v46  ;;  %v4415_v60 = vrot.slane %v10067_v16, 1  ;;  %v8419_v41 = vpop.f32.mrb[21].mxu0  ;;  %v8094_v42 = vcombine.low %v8046_v15, %v11648_v8  ;;  %v10073_v5 = vld [vmem:[%s10632_s11 + $0x80] ss:$0 sps:$4 sm:$0x33]   ;;  %v8478_v13 = vpop.f32.mrb[23].mxu1 }
 0x1f9   : > { %v4417_v54 = vrot.slane %v4302_v30, 1  ;;  %v11652_v24 = vadd.f32 %v8419_v41, %v8418_v39  ;;  %v8421_v46 = vpop.f32.mrb[22].mxu0  ;;  %v11659_v45 = vld [vmem:[%s10632_s11 + $0x4] sm:$0xf]  ;;  %v5628_v30 = vld [vmem:[%s10632_s11] sm:$0xc]  ;;  %v8479_v50 = vadd.f32 %v8478_v13, %v8477_v49 }
 0x1fa   : > { %v8422_v40 = vpop.f32.mrb[23].mxu0  ;;  %v5030_v21 = vrot.slane %v8094_v42, 1  ;;  %v5031_v63 = vrot.slane %v10073_v5, 1  ;;  %v4416_v16 = vsel %vm513_vm1, %v4414_v29, %v4415_v60  ;;  %v10078_v6 = vld [vmem:[%s10632_s11 + $0x80] ss:$0 sps:$4 sm:$0x11]   ;;  %v5143_v29 = vsel %vm513_vm1, %v5141_v10, %v5142_v14 }
 0x1fb   : > { %4712 = vmatmul.mubr.bf16.gmra.mrb[116].mxu0 %v4398_v2  ;;  %v4419_v23 = vsel %vm513_vm1, %v4417_v54, %v4418_v52  ;;  %v5029_v2 = vsel %vm513_vm1, %v5027_v59, %v5028_v20  ;;  %v11656_v7 = vadd.f32 %v8422_v40, %v8421_v46  ;;  %v10080_v52 = vld [vmem:[#allocation4 + $0x580] sm:$0xff]   ;;  %v8026_v54 = vld [vmem:[%s10632_s11 + $0x78] sm:$0xe]  ;;  %v8150_v59 = vcombine.low %v5628_v30, %v11659_v45  ;;  %v10076_v20 = vld [vmem:[%s10632_s11 + $0x8] ss:$0 sps:$4 sm:$0x33]  }
 0x1fc   : > { %4719 = vmatprep.mubr.bf16.mxu0 %v4410_v4  ;;  %v5144_v4 = vrot.slane %v5029_v2, 1  ;;  %v8078_v19 = vcombine.low %v8026_v54, %v11648_v8  ;;  %8932 = vmatprep.subr.bf16.mxu0 %v10080_v52  ;;  %v5154_v17 = vrot.slane %v5031_v63, 1  ;;  %v5612_v2 = vld [vmem:[%s10632_s11] sm:$0xf]  ;;  %v5749_v1 = vrot.slane %v10076_v20, 2  ;;  %v8424_v39 = vpop.f32.mrb[24].mxu0 }
 0x1fd   : > { %v5151_v60 = vrot.slane %v10078_v6, 1  ;;  %v8425_v41 = vpop.f32.mrb[25].mxu0  ;;  %v10081_v46 = vld [vmem:[#allocation4 + $0x540] sm:$0xff]   ;;  %v11682_v49 = vld [vmem:[%s10632_s11 + $0x88] sm:$0xf]  ;;  %v8142_v42 = vcombine.low %v5612_v2, %v11659_v45  ;;  %v10090_v45 = vld [vmem:[#allocation4 + $0x450] sm:$0xff]  }
 0x1fe   : > { %5443 = vmatmul.mubr.bf16.gmra.mrb[52].mxu1 %v5125_v37  ;;  %v5146_v37 = vsel %vm513_vm1, %v5144_v4, %v5145_v34  ;;  %v5748_v34 = vrot.slane %v8150_v59, 2  ;;  %v5150_v4 = vrot.slane %v8078_v19, 1  ;;  %v11679_v15 = vadd.f32 %v8425_v41, %v8424_v39  ;;  %v8427_v10 = vpop.f32.mrb[26].mxu0  ;;  %v8048_v40 = vld [vmem:[%s10632_s11 + $0x84] sm:$0xc]  ;;  %v10092_v20 = vld [vmem:[#allocation4 + $0x588] sm:$0xff]  }
 0x1ff   : > { %5450 = vmatprep.mubr.bf16.mxu1 %v5137_v28  ;;  %v8476_v28 = vadd.f32 %v8475_v43, %v8474_v51  ;;  %v8480_v51 = vpop.f32.mrb[24].mxu1  ;;  %v10082_v43 = vld [vmem:[#allocation4 + $0x448] sm:$0xff]   ;;  %v8428_v5 = vpop.f32.mrb[27].mxu0  ;;  %v8096_v13 = vcombine.low %v8048_v40, %v11682_v49  ;;  %v11688_v30 = vld [vmem:[%s10632_s11 + $0x10] sm:$0xf]  ;;  %v10101_v40 = vld [vmem:[#allocation4 + $0x460] sm:$0xff]  }
 0x200   : > { %9254 = vmatprep.subr.bf16.mxu1 %v10082_v43  ;;  %v5630_v54 = vld [vmem:[%s10632_s11 + $0xc] sm:$0xc]  ;;  %v5152_v6 = vsel %vm513_vm1, %v5150_v4, %v5151_v60 }
 0x201   : > { %v11663_v3 = vadd.f32 %v8476_v28, %v11459_v22  ;;  %v5032_v22 = vsel %vm513_vm1, %v5030_v21, %v5031_v63  ;;  %9255 = vmatpush3.bf16.msra.mxu1 %v10082_v43  ;;  %v10084_v63 = vld [vmem:[%s10632_s11 + $0x8c] ss:$0 sps:$4 sm:$0x33]   ;;  %v8152_v59 = vcombine.low %v5630_v54, %v11688_v30  ;;  %v8430_v43 = vpop.f32.mrb[28].mxu0 }
 0x202   : > { %9256 = vmatprep.subr.bf16.mxu1 %v10090_v45  ;;  %v10093_v41 = vld [vmem:[#allocation4 + $0x548] sm:$0xff]  }
 0x203   : > { %4720 = vmatmul.mubr.bf16.gmra.mrb[120].mxu0 %v4407_v25  ;;  %v11671_v25 = vadd.f32 %v8479_v50, %v11463_v44  ;;  %v5750_v44 = vsel %vm3724_vm3, %v5748_v34, %v5749_v1  ;;  %v11693_v50 = vadd.f32 %v8428_v5, %v8427_v10  ;;  %v10089_v34 = vld [vmem:[%s10632_s11 + $0x8c] ss:$0 sps:$4 sm:$0x11]  }
 0x204   : > { %4727 = vmatprep.mubr.bf16.mxu0 %v4419_v23  ;;  %v5153_v23 = vrot.slane %v5032_v22, 1  ;;  %v5034_v22 = vrot.slane %v10084_v63, 1  ;;  %v8050_v63 = vld [vmem:[%s10632_s11 + $0x90] sm:$0xc] }
 0x205   : > { %9257 = vmatpush3.bf16.msra.mxu1 %v10090_v45 }
 0x206   : > { %5451 = vmatmul.mubr.bf16.gmra.mrb[56].mxu1 %v5134_v57  ;;  %v5155_v57 = vsel %vm513_vm1, %v5153_v23, %v5154_v17  ;;  %v10086_v17 = vld [vmem:[%s10632_s11 + $0x14] ss:$0 sps:$4 sm:$0x33]   ;;  %v5751_v23 = vrot.slane %v8152_v59, 2 }
 0x207   : > { %5458 = vmatprep.mubr.bf16.mxu1 %v5146_v37  ;;  %v8481_v37 = vpop.f32.mrb[25].mxu1  ;;  %v5752_v39 = vrot.slane %v10086_v17, 2 }
 0x208   : > { %v8482_v28 = vadd.f32 %v8481_v37, %v8480_v51  ;;  %v8483_v14 = vpop.f32.mrb[26].mxu1  ;;  %v5614_v51 = vld [vmem:[%s10632_s11 + $0xc] sm:$0xf] }
 0x209   : > { %v8484_v48 = vpop.f32.mrb[27].mxu1  ;;  %v5753_v4 = vsel %vm3724_vm3, %v5751_v23, %v5752_v39  ;;  %v8143_v37 = vcombine.low %v5614_v51, %v11688_v30  ;;  %v5632_v23 = vld [vmem:[%s10632_s11 + $0x18] sm:$0xc] }
 0x20a   : > { %v11691_v52 = vadd.f32 %v8482_v28, %v11468_v58  ;;  %v8485_v21 = vadd.f32 %v8484_v48, %v8483_v14  ;;  %v8029_v58 = vld [vmem:[%s10632_s11 + $0x84] sm:$0xe]  ;;  %v8431_v28 = vpop.f32.mrb[29].mxu0  ;;  %v10094_v14 = vld [vmem:[#allocation4 + $0x458] sm:$0xff]  }
 0x20b   : > { %4728 = vmatmul.mubr.bf16.gmra.mrb[124].mxu0 %v4416_v16  ;;  %v5033_v16 = vrot.slane %v8096_v13, 1  ;;  %v8080_v2 = vcombine.low %v8029_v58, %v11682_v49  ;;  %v8433_v48 = vpop.f32.mrb[30].mxu0  ;;  %9258 = vmatprep.subr.bf16.mxu1 %v10094_v14 }
 0x20c   : > { %6036 = vmatprep.mubr.bf16.mxu0 %v5750_v44  ;;  %v11699_v19 = vadd.f32 %v8485_v21, %v11474_v53  ;;  %v5160_v44 = vrot.slane %v10089_v34, 1  ;;  %v11714_v21 = vld [vmem:[%s10632_s11 + $0x94] sm:$0xf]  ;;  %v8434_v45 = vpop.f32.mrb[31].mxu0  ;;  %9259 = vmatpush3.bf16.msra.mxu1 %v10094_v14 }
 0x20d   : > { %v5035_v1 = vsel %vm513_vm1, %v5033_v16, %v5034_v22  ;;  %v8098_v59 = vcombine.low %v8050_v63, %v11714_v21  ;;  %v11725_v17 = vadd.f32 %v8434_v45, %v8433_v48  ;;  %9260 = vmatprep.subr.bf16.mxu1 %v10101_v40 }
 0x20e   : > { %5459 = vmatmul.mubr.bf16.gmra.mrb[60].mxu1 %v5143_v29  ;;  %v5163_v29 = vrot.slane %v5034_v22, 1  ;;  %v5162_v53 = vrot.slane %v5035_v1, 1 }
 0x20f   : > { %5466 = vmatprep.mubr.bf16.mxu1 %v5155_v57  ;;  %v5159_v57 = vrot.slane %v8080_v2, 1  ;;  %v10103_v2 = vld [vmem:[#allocation4 + $0x590] sm:$0xff]   ;;  %v5036_v34 = vrot.slane %v8098_v59, 1 }
 0x210   : > { %v5164_v60 = vsel %vm513_vm1, %v5162_v53, %v5163_v29  ;;  %v10098_v29 = vld [vmem:[%s10632_s11 + $0x20] ss:$0 sps:$4 sm:$0x33]   ;;  %9261 = vmatpush3.bf16.msra.mxu1 %v10101_v40 }
 0x211   : > { %v5161_v54 = vsel %vm513_vm1, %v5159_v57, %v5160_v44  ;;  %v8032_v57 = vld [vmem:[%s10632_s11 + $0x90] sm:$0xe]  ;;  %v5755_v51 = vrot.slane %v10098_v29, 2  ;;  %v8052_v29 = vld [vmem:[%s10632_s11 + $0x9c] sm:$0xc] }
 0x213   : > { %6037 = vmatmul.mubr.bf16.vlgmr.msra.gmra.mrb[128].mxu0 %v8142_v42  ;;  %v11711_v42 = vadd.f32 %v8431_v28, %v8430_v43 }
 0x214   : > { %8933 = vmatpush3.bf16.msra.mxu0 %v10081_v46  ;;  %6044 = vmatprep.mubr.bf16.mxu0 %v5753_v4  ;;  %v8486_v46 = vpop.f32.mrb[28].mxu1  ;;  %v10100_v4 = vld [vmem:[%s10632_s11 + $0x98] ss:$0 sps:$4 sm:$0x11]  }
 0x215   : > { %8934 = vmatprep.subr.bf16.mxu0 %v10092_v20  ;;  %v8487_v10 = vpop.f32.mrb[29].mxu1  ;;  %v11720_v20 = vld [vmem:[%s10632_s11 + $0x1c] sm:$0xf]  ;;  %v5169_v14 = vrot.slane %v10100_v4, 1  ;;  %v5634_v4 = vld [vmem:[%s10632_s11 + $0x24] sm:$0xc] }
 0x216   : > { %5467 = vmatmul.mubr.bf16.gmra.mrb[64].mxu1 %v5152_v6  ;;  %v8488_v5 = vadd.f32 %v8487_v10, %v8486_v46  ;;  %v8489_v13 = vpop.f32.mrb[30].mxu1  ;;  %v10096_v6 = vld [vmem:[%s10632_s11 + $0x98] ss:$0 sps:$4 sm:$0x33]   ;;  %v8154_v1 = vcombine.low %v5632_v23, %v11720_v20  ;;  %v8548_v46 = vpop.f32.mrb[32].mxu0 }
 0x217   : > { %5474 = vmatprep.mubr.bf16.mxu1 %v5164_v60  ;;  %v8490_v16 = vpop.f32.mrb[31].mxu1  ;;  %v5037_v53 = vrot.slane %v10096_v6, 1  ;;  %v8549_v45 = vpop.f32.mrb[33].mxu0 }
 0x218   : > { %8935 = vmatpush3.bf16.msra.mxu0 %v10093_v41  ;;  %v11723_v22 = vadd.f32 %v8488_v5, %v11581_v55  ;;  %v8491_v58 = vadd.f32 %v8490_v16, %v8489_v13  ;;  %v10104_v55 = vld [vmem:[#allocation4 + $0x550] sm:$0xff]   ;;  %v5754_v44 = vrot.slane %v8154_v1, 2  ;;  %v8082_v41 = vcombine.low %v8032_v57, %v11714_v21  ;;  %v8492_v60 = vpop.f32.mrb[32].mxu1  ;;  %v5616_v5 = vld [vmem:[%s10632_s11 + $0x18] sm:$0xf]  ;;  %v10105_v16 = vld [vmem:[#allocation4 + $0x468] sm:$0xff]  }
 0x219   : > { %8936 = vmatprep.subr.bf16.mxu0 %v10103_v2  ;;  %v5172_v43 = vrot.slane %v5037_v53, 1  ;;  %v8493_v48 = vpop.f32.mrb[33].mxu1  ;;  %v8144_v13 = vcombine.low %v5616_v5, %v11720_v20  ;;  %v8551_v23 = vpop.f32.mrb[34].mxu0  ;;  %v11747_v2 = vld [vmem:[%s10632_s11 + $0xa0] sm:$0xf]  ;;  %9262 = vmatprep.subr.bf16.mxu1 %v10105_v16 }
 0x21a   : > { %v11732_v39 = vadd.f32 %v8491_v58, %v11587_v12  ;;  %v5756_v28 = vsel %vm3724_vm3, %v5754_v44, %v5755_v51  ;;  %v5168_v10 = vrot.slane %v8082_v41, 1  ;;  %v8494_v63 = vadd.f32 %v8493_v48, %v8492_v60  ;;  %v8495_v6 = vpop.f32.mrb[34].mxu1  ;;  %v8552_v1 = vpop.f32.mrb[35].mxu0  ;;  %9263 = vmatpush3.bf16.msra.mxu1 %v10105_v16  ;;  %v10107_v44 = vld [vmem:[%s10632_s11 + $0xa4] ss:$0 sps:$4 sm:$0x33]  }
 0x21b   : > { %6045 = vmatmul.mubr.bf16.gmra.mrb[132].mxu0 %v8143_v37  ;;  %v5038_v37 = vsel %vm513_vm1, %v5036_v34, %v5037_v53  ;;  %v8550_v58 = vadd.f32 %v8549_v45, %v8548_v46  ;;  %v8496_v34 = vpop.f32.mrb[35].mxu1  ;;  %v11756_v51 = vld [vmem:[%s10632_s11 + $0x28] sm:$0xf]  ;;  %v10112_v41 = vld [vmem:[#allocation4 + $0x470] sm:$0xff]   ;;  %v8035_v60 = vld [vmem:[%s10632_s11 + $0x9c] sm:$0xe] }
 0x21c   : > { %8937 = vmatpush3.bf16.msra.mxu0 %v10104_v55  ;;  %v5171_v12 = vrot.slane %v5038_v37, 1  ;;  %6052 = vmatprep.mubr.bf16.mxu0 %v5756_v28  ;;  %v5170_v40 = vsel %vm513_vm1, %v5168_v10, %v5169_v14  ;;  %v11744_v59 = vadd.f32 %v8494_v63, %v11617_v47  ;;  %v8497_v57 = vadd.f32 %v8496_v34, %v8495_v6  ;;  %v10114_v28 = vld [vmem:[#allocation4 + $0x598] sm:$0xff]   ;;  %v10111_v5 = vld [vmem:[%s10632_s11 + $0xa4] ss:$0 sps:$4 sm:$0x11]  }
 0x21d   : > { %v11751_v53 = vadd.f32 %v11633_v35, %v8550_v58  ;;  %v8553_v55 = vadd.f32 %v8552_v1, %v8551_v23  ;;  %v8100_v47 = vcombine.low %v8052_v29, %v11747_v2  ;;  %v5040_v46 = vrot.slane %v10107_v44, 1  ;;  %9264 = vmatprep.subr.bf16.mxu1 %v10112_v41  ;;  %v10115_v48 = vld [vmem:[#allocation4 + $0x558] sm:$0xff]   ;;  %8938 = vmatprep.subr.bf16.mxu0 %v10114_v28  ;;  %v8498_v1 = vpop.f32.mrb[36].mxu1  ;;  %v8554_v29 = vpop.f32.mrb[36].mxu0  ;;  %v11776_v44 = vld [vmem:[#allocation4 + $0x500] sm:$0xff]  }
 0x21e   : > { %5475 = vmatmul.mubr.bf16.gmra.mrb[68].mxu1 %v5161_v54  ;;  %v5173_v54 = vsel %vm513_vm1, %v5171_v12, %v5172_v43  ;;  %v11761_v37 = vadd.f32 %v8497_v57, %v11625_v36  ;;  %v10109_v12 = vld [vmem:[%s10632_s11 + $0x2c] ss:$0 sps:$4 sm:$0x33]   ;;  %v8156_v10 = vcombine.low %v5634_v4, %v11756_v51  ;;  %v8084_v14 = vcombine.low %v8035_v60, %v11747_v2  ;;  %v8499_v57 = vpop.f32.mrb[37].mxu1 }
 0x21f   : > { %5482 = vmatprep.mubr.bf16.mxu1 %v5173_v54  ;;  %v11764_v43 = vadd.f32 %v11639_v62, %v8553_v55  ;;  %v5039_v35 = vrot.slane %v8100_v47, 1  ;;  %v5181_v63 = vrot.slane %v5040_v46, 1  ;;  %v5758_v36 = vrot.slane %v10109_v12, 2  ;;  %9265 = vmatpush3.bf16.msra.mxu1 %v10112_v41  ;;  %v8555_v55 = vpop.f32.mrb[37].mxu0  ;;  %v10116_v47 = vld [vmem:[#allocation4 + $0x478] sm:$0xff]   ;;  %v8501_v60 = vpop.f32.mrb[38].mxu1 }
 0x220   : > { %v5757_v54 = vrot.slane %v8156_v10, 2  ;;  %v5177_v45 = vrot.slane %v8084_v14, 1  ;;  %v5178_v16 = vrot.slane %v10111_v5, 1  ;;  %8939 = vmatpush3.bf16.msra.mxu0 %v10115_v48  ;;  %v8500_v41 = vadd.f32 %v8499_v57, %v8498_v1  ;;  %9266 = vmatprep.subr.bf16.mxu1 %v10116_v47  ;;  %v8502_v12 = vpop.f32.mrb[39].mxu1  ;;  %v10125_v5 = vld [vmem:[#allocation4 + $0x5a0] sm:$0xff]  }
 0x221   : > { %v8556_v4 = vadd.f32 %v8555_v55, %v8554_v29  ;;  %v10118_v14 = vld [vmem:[%s10632_s11 + $0x50] ss:$0 sps:$4 sm:$0x77]   ;;  %8940 = vmatprep.subr.bf16.mxu0 %v10125_v5  ;;  %v10122_v55 = vld [vmem:[%s10632_s11 + $0x5c] ss:$0 sps:$4 sm:$0x77]  }
 0x222   : > { %v5759_v23 = vsel %vm3724_vm3, %v5757_v54, %v5758_v36  ;;  %v5179_v34 = vsel %vm513_vm1, %v5177_v45, %v5178_v16  ;;  %v11782_v48 = vadd.f32 %v8500_v41, %v11652_v24  ;;  %v5636_v54 = vld [vmem:[%s10632_s11 + $0x30] sm:$0xc]  ;;  %v5091_v16 = vrot.slane %v10118_v14, 2  ;;  %v10126_v24 = vld [vmem:[#allocation4 + $0x560] sm:$0xff]  }
 0x223   : > { %6053 = vmatmul.mubr.bf16.gmra.mrb[136].mxu0 %v8144_v13  ;;  %v5041_v13 = vsel %vm513_vm1, %v5039_v35, %v5040_v46  ;;  %v8557_v35 = vpop.f32.mrb[38].mxu0  ;;  %v8054_v46 = vld [vmem:[%s10632_s11 + $0x48] sm:$0x8]  ;;  %9267 = vmatpush3.bf16.msra.mxu1 %v10116_v47 }
 0x224   : > { %v5180_v62 = vrot.slane %v5041_v13, 1  ;;  %6060 = vmatprep.mubr.bf16.mxu0 %v5759_v23  ;;  %v8558_v28 = vpop.f32.mrb[39].mxu0  ;;  %v8102_v10 = vcombine.low %v8054_v46, %v11558_v33  ;;  %v11785_v13 = vadd.f32 %v11663_v3, %v8556_v4  ;;  %9284 = vmatprep.subr.bf16.mxu1 %v11776_v44  ;;  %v5620_v23 = vld [vmem:[%s10632_s11 + $0x30] sm:$0xf]  ;;  %v5121_v1 = vrot.slane %v5091_v16, 1 }
 0x225   : > { %v8559_v36 = vadd.f32 %v8558_v28, %v8557_v35  ;;  %8941 = vmatpush3.bf16.msra.mxu0 %v10126_v24  ;;  %v5094_v35 = vrot.slane %v10122_v55, 2  ;;  %v10129_v55 = vld [vmem:[%s10632_s11 + $0x68] ss:$0 sps:$4 sm:$0x77]  }
 0x226   : > { %5483 = vmatmul.mubr.bf16.gmra.mrb[72].mxu1 %v5170_v40  ;;  %v5618_v40 = vld [vmem:[%s10632_s11 + $0x24] sm:$0xf]  ;;  %v5182_v6 = vsel %vm513_vm1, %v5180_v62, %v5181_v63  ;;  %v8503_v63 = vadd.f32 %v8502_v12, %v8501_v60  ;;  %v11788_v62 = vld [vmem:[%s10632_s11 + $0x34] sm:$0xf]  ;;  %v5090_v45 = vrot.slane %v8102_v10, 2  ;;  %v8504_v60 = vpop.f32.mrb[40].mxu1 }
 0x227   : > { %v8145_v58 = vcombine.low %v5618_v40, %v11756_v51  ;;  %5490 = vmatprep.mubr.bf16.mxu1 %v5182_v6  ;;  %v8158_v33 = vcombine.low %v5636_v54, %v11788_v62  ;;  %v10120_v40 = vld [vmem:[%s10632_s11 + $0x38] ss:$0 sps:$4 sm:$0x33]   ;;  %v8056_v6 = vld [vmem:[%s10632_s11 + $0x54] sm:$0x8]  ;;  %v8146_v4 = vcombine.low %v5620_v23, %v11788_v62  ;;  %v8505_v28 = vpop.f32.mrb[41].mxu1 }
 0x228   : > { %v11795_v3 = vadd.f32 %v8503_v63, %v11656_v7  ;;  %v5761_v57 = vrot.slane %v10120_v40, 2  ;;  %v8104_v41 = vcombine.low %v8056_v6, %v11577_v0  ;;  %v5130_v10 = vrot.slane %v5094_v35, 1  ;;  %v8507_v54 = vpop.f32.mrb[42].mxu1 }
 0x229   : > { %v5760_v29 = vrot.slane %v8158_v33, 2  ;;  %v8506_v14 = vadd.f32 %v8505_v28, %v8504_v60  ;;  %v8508_v24 = vpop.f32.mrb[43].mxu1  ;;  %v5638_v60 = vld [vmem:[%s10632_s11 + $0x3c] sm:$0xc] }
 0x22a   : > { %v5093_v12 = vrot.slane %v8104_v41, 2  ;;  %v10137_v41 = vld [vmem:[#allocation4 + $0x568] sm:$0xff]  }
 0x22b   : > { %6061 = vmatmul.mubr.bf16.gmra.mrb[140].mxu0 %v8145_v58  ;;  %v11798_v58 = vadd.f32 %v11671_v25, %v8559_v36  ;;  %v5762_v7 = vsel %vm3724_vm3, %v5760_v29, %v5761_v57  ;;  %v8560_v25 = vpop.f32.mrb[40].mxu0  ;;  %v10127_v36 = vld [vmem:[#allocation4 + $0x508] sm:$0xff]   ;;  %v11811_v40 = vadd.f32 %v8506_v14, %v11679_v15  ;;  %v8509_v29 = vadd.f32 %v8508_v24, %v8507_v54  ;;  %v10135_v14 = vld [vmem:[#allocation4 + $0x510] sm:$0xff]   ;;  %v5622_v54 = vld [vmem:[%s10632_s11 + $0x3c] sm:$0xf] }
 0x22c   : > { %6068 = vmatprep.mubr.bf16.mxu0 %v5762_v7  ;;  %v8561_v5 = vpop.f32.mrb[41].mxu0  ;;  %v5095_v0 = vsel %vm3724_vm3, %v5093_v12, %v5094_v35  ;;  %v8510_v7 = vpop.f32.mrb[44].mxu1  ;;  %v5097_v35 = vrot.slane %v10129_v55, 2  ;;  %v8060_v12 = vld [vmem:[%s10632_s11 + $0x6c] sm:$0x8] }
 0x22d   : > { %v8562_v63 = vadd.f32 %v8561_v5, %v8560_v25  ;;  %v5129_v33 = vrot.slane %v5095_v0, 1  ;;  %v8108_v28 = vcombine.low %v8060_v12, %v11621_v11 }
 0x22e   : > { %5491 = vmatmul.mubr.bf16.gmra.mrb[76].mxu1 %v5179_v34  ;;  %v5092_v34 = vsel %vm3724_vm3, %v5090_v45, %v5091_v16  ;;  %v8563_v45 = vpop.f32.mrb[42].mxu0  ;;  %v8058_v16 = vld [vmem:[%s10632_s11 + $0x60] sm:$0x8]  ;;  %v5139_v0 = vrot.slane %v5097_v35, 1 }
 0x22f   : > { %v5120_v47 = vrot.slane %v5092_v34, 1  ;;  %v8564_v6 = vpop.f32.mrb[43].mxu0  ;;  %v8106_v23 = vcombine.low %v8058_v16, %v11602_v18  ;;  %v10136_v34 = vld [vmem:[#allocation4 + $0x5a8] sm:$0xff]   ;;  %v5131_v15 = vsel %vm513_vm1, %v5129_v33, %v5130_v10  ;;  %v11824_v18 = vadd.f32 %v8509_v29, %v11693_v50  ;;  %v10133_v10 = vld [vmem:[%s10632_s11 + $0x74] ss:$0 sps:$4 sm:$0x77]  }
 0x230   : > { %v8565_v57 = vadd.f32 %v8564_v6, %v8563_v45  ;;  %8942 = vmatprep.subr.bf16.mxu0 %v10136_v34  ;;  %v8566_v5 = vpop.f32.mrb[44].mxu0  ;;  %v8511_v45 = vpop.f32.mrb[45].mxu1  ;;  %v5099_v33 = vrot.slane %v8108_v28, 2  ;;  %v5100_v24 = vrot.slane %v10133_v10, 2 }
 0x231   : > { %v5122_v46 = vsel %vm513_vm1, %v5120_v47, %v5121_v1  ;;  %v11815_v1 = vadd.f32 %v11691_v52, %v8562_v63  ;;  %v11819_v47 = vld [vmem:[%s10632_s11 + $0x40] sm:$0xf]  ;;  %8943 = vmatpush3.bf16.msra.mxu0 %v10137_v41  ;;  %v8512_v11 = vadd.f32 %v8511_v45, %v8510_v7  ;;  %v10138_v41 = vld [vmem:[#allocation4 + $0x518] sm:$0xff]  }
 0x232   : > { %9268 = vmatprep.mubr.bf16.mxu1 %v5122_v46  ;;  %v11827_v52 = vadd.f32 %v11699_v19, %v8565_v57  ;;  %v8160_v25 = vcombine.low %v5638_v60, %v11819_v47  ;;  %v10131_v46 = vld [vmem:[%s10632_s11 + $0x44] ss:$0 sps:$4 sm:$0x33]   ;;  %v8147_v6 = vcombine.low %v5622_v54, %v11819_v47  ;;  %v5101_v57 = vsel %vm3724_vm3, %v5099_v33, %v5100_v24 }
 0x233   : > { %6069 = vmatmul.mubr.bf16.gmra.mrb[144].mxu0 %v8146_v4  ;;  %v5096_v4 = vrot.slane %v8106_v23, 2  ;;  %v5764_v63 = vrot.slane %v10131_v46, 2  ;;  %v8567_v23 = vpop.f32.mrb[45].mxu0  ;;  %v5148_v55 = vrot.slane %v5100_v24, 1  ;;  %v10146_v33 = vld [vmem:[#allocation4 + $0x520] sm:$0xff]  }
 0x234   : > { %v5763_v19 = vrot.slane %v8160_v25, 2  ;;  %v8568_v34 = vadd.f32 %v8567_v23, %v8566_v5  ;;  %v8569_v7 = vpop.f32.mrb[46].mxu0  ;;  %v8062_v25 = vld [vmem:[%s10632_s11 + $0x78] sm:$0x8]  ;;  %v10147_v23 = vld [vmem:[#allocation4 + $0x5b0] sm:$0xff]  }
 0x235   : > { %v5098_v50 = vsel %vm3724_vm3, %v5096_v4, %v5097_v35  ;;  %v11842_v4 = vadd.f32 %v8512_v11, %v11711_v42  ;;  %v8570_v28 = vpop.f32.mrb[47].mxu0  ;;  %v8110_v10 = vcombine.low %v8062_v25, %v11648_v8  ;;  %v10140_v5 = vld [vmem:[%s10632_s11 + $0x80] ss:$0 sps:$4 sm:$0x77]   ;;  %v11852_v42 = vld [vmem:[%s10632_s11 + $0x4c] sm:$0xf]  ;;  %8944 = vmatprep.subr.bf16.mxu0 %v10147_v23 }
 0x236   : > { %9269 = vmatmul.mubr.bf16.vlgmr.msra.gmra.mrb[0].mxu1 %v5131_v15  ;;  %v5138_v16 = vrot.slane %v5098_v50, 1  ;;  %v5147_v15 = vrot.slane %v5101_v57, 1  ;;  %v11845_v60 = vadd.f32 %v11723_v22, %v8568_v34  ;;  %v8571_v50 = vadd.f32 %v8570_v28, %v8569_v7  ;;  %v5640_v22 = vld [vmem:[%s10632_s11 + $0x48] sm:$0xc]  ;;  %v8572_v7 = vpop.f32.mrb[48].mxu0 }
 0x237   : > { %9285 = vmatpush3.bf16.msra.mxu1 %v11776_v44  ;;  %v5765_v44 = vsel %vm3724_vm3, %v5763_v19, %v5764_v63  ;;  %v5102_v63 = vrot.slane %v8110_v10, 2  ;;  %v5103_v54 = vrot.slane %v10140_v5, 2  ;;  %v8162_v45 = vcombine.low %v5640_v22, %v11852_v42  ;;  %v5624_v34 = vld [vmem:[%s10632_s11 + $0x48] sm:$0xf]  ;;  %v8066_v5 = vld [vmem:[%s10632_s11 + $0x90] sm:$0x8] }
 0x238   : > { %9286 = vmatprep.subr.bf16.mxu1 %v10127_v36  ;;  %v5140_v29 = vsel %vm513_vm1, %v5138_v16, %v5139_v0  ;;  %6076 = vmatprep.mubr.bf16.mxu0 %v5765_v44  ;;  %v5149_v46 = vsel %vm513_vm1, %v5147_v15, %v5148_v55  ;;  %v8064_v0 = vld [vmem:[%s10632_s11 + $0x84] sm:$0x8]  ;;  %v10142_v16 = vld [vmem:[%s10632_s11 + $0x50] ss:$0 sps:$4 sm:$0x33]   ;;  %v11862_v8 = vadd.f32 %v11732_v39, %v8571_v50 }
 0x239   : > { %9272 = vmatprep.mubr.bf16.mxu1 %v5140_v29  ;;  %v8112_v24 = vcombine.low %v8064_v0, %v11682_v49  ;;  %v5157_v44 = vrot.slane %v5103_v54, 1  ;;  %v5766_v11 = vrot.slane %v8162_v45, 2  ;;  %v10148_v29 = vld [vmem:[#allocation4 + $0x570] sm:$0xff]   ;;  %v10151_v45 = vld [vmem:[%s10632_s11 + $0x98] ss:$0 sps:$4 sm:$0x77]  }
 0x23a   : > { %8945 = vmatpush3.bf16.msra.mxu0 %v10148_v29  ;;  %v10157_v50 = vld [vmem:[#allocation4 + $0x530] sm:$0xff]   ;;  %v8068_v23 = vld [vmem:[%s10632_s11 + $0x9c] sm:$0x8] }
 0x23b   : > { %9287 = vmatpush3.bf16.msra.mxu1 %v10127_v36  ;;  %6077 = vmatmul.mubr.bf16.gmra.mrb[148].mxu0 %v8147_v6  ;;  %v8513_v36 = vpop.f32.mrb[46].mxu1  ;;  %v10144_v6 = vld [vmem:[%s10632_s11 + $0x8c] ss:$0 sps:$4 sm:$0x77]   ;;  %v5105_v55 = vrot.slane %v8112_v24, 2  ;;  %v10159_v29 = vld [vmem:[#allocation4 + $0x578] sm:$0xff]  }
 0x23c   : > { %9288 = vmatprep.subr.bf16.mxu1 %v10135_v14  ;;  %v8514_v35 = vpop.f32.mrb[47].mxu1  ;;  %v5106_v15 = vrot.slane %v10144_v6, 2  ;;  %v5642_v6 = vld [vmem:[%s10632_s11 + $0x54] sm:$0xc] }
 0x23d   : > { %v8515_v12 = vadd.f32 %v8514_v35, %v8513_v36  ;;  %v8148_v36 = vcombine.low %v5624_v34, %v11852_v42 }
 0x23e   : > { %9273 = vmatmul.mubr.bf16.gmra.mrb[4].mxu1 %v5149_v46  ;;  %v5107_v35 = vsel %vm3724_vm3, %v5105_v55, %v5106_v15  ;;  %v5166_v25 = vrot.slane %v5106_v15, 1  ;;  %v8573_v46 = vpop.f32.mrb[49].mxu0 }
 0x23f   : > { %9289 = vmatpush3.bf16.msra.mxu1 %v10135_v14  ;;  %v11857_v19 = vadd.f32 %v8515_v12, %v11725_v17  ;;  %v5104_v14 = vsel %vm3724_vm3, %v5102_v63, %v5103_v54  ;;  %v5767_v17 = vrot.slane %v10142_v16, 2  ;;  %v5165_v12 = vrot.slane %v5107_v35, 1  ;;  %v8575_v10 = vpop.f32.mrb[50].mxu0  ;;  %v11880_v16 = vld [vmem:[%s10632_s11 + $0x58] sm:$0xf] }
 0x240   : > { %9290 = vmatprep.subr.bf16.mxu1 %v10138_v41  ;;  %v5156_v57 = vrot.slane %v5104_v14, 1  ;;  %v8574_v28 = vadd.f32 %v8573_v46, %v8572_v7  ;;  %v8576_v63 = vpop.f32.mrb[51].mxu0  ;;  %v8114_v54 = vcombine.low %v8066_v5, %v11714_v21  ;;  %v10155_v21 = vld [vmem:[%s10632_s11 + $0xa4] ss:$0 sps:$4 sm:$0x77]   ;;  %v10160_v5 = vld [vmem:[#allocation4 + $0x538] sm:$0xff]  }
 0x241   : > { %v5768_v49 = vsel %vm3724_vm3, %v5766_v11, %v5767_v17  ;;  %v5167_v22 = vsel %vm513_vm1, %v5165_v12, %v5166_v25  ;;  %v8577_v24 = vadd.f32 %v8576_v63, %v8575_v10  ;;  %v10153_v11 = vld [vmem:[%s10632_s11 + $0x5c] ss:$0 sps:$4 sm:$0x33]   ;;  %v5626_v7 = vld [vmem:[%s10632_s11 + $0x54] sm:$0xf]  ;;  %v5112_v25 = vrot.slane %v10155_v21, 2 }
 0x242   : > { %v5158_v39 = vsel %vm513_vm1, %v5156_v57, %v5157_v44  ;;  %6084 = vmatprep.mubr.bf16.mxu0 %v5768_v49  ;;  %v11875_v0 = vadd.f32 %v11744_v59, %v8574_v28  ;;  %v5108_v14 = vrot.slane %v8114_v54, 2  ;;  %v5109_v44 = vrot.slane %v10151_v45, 2  ;;  %v10158_v17 = vld [vmem:[#allocation4 + $0x5b8] sm:$0xff]   ;;  %v8578_v49 = vpop.f32.mrb[52].mxu0  ;;  %v10162_v21 = vld [vmem:[%s10632_s11 + $0x30] sm:$0xff]  }
 0x243   : > { %9291 = vmatpush3.bf16.msra.mxu1 %v10138_v41  ;;  %9276 = vmatprep.mubr.bf16.mxu1 %v5158_v39  ;;  %v10149_v41 = vld [vmem:[#allocation4 + $0x528] sm:$0xff]   ;;  %v8116_v59 = vcombine.low %v8068_v23, %v11747_v2  ;;  %v11888_v34 = vadd.f32 %v11761_v37, %v8577_v24  ;;  %v8149_v2 = vcombine.low %v5626_v7, %v11880_v16  ;;  %v8579_v37 = vpop.f32.mrb[53].mxu0  ;;  %v5184_v10 = vrot.slane %v5112_v25, 1  ;;  %v10273_v23 = vld [vmem:[%s10632_s11 + $0x38] ss:$0 sps:$4 sm:$0x33]  }
 0x244   : > { %9292 = vmatprep.subr.bf16.mxu1 %v10146_v33  ;;  %6085 = vmatmul.mubr.bf16.gmra.mrb[152].mxu0 %v8148_v36  ;;  %v5110_v57 = vsel %vm3724_vm3, %v5108_v14, %v5109_v44  ;;  %v5175_v55 = vrot.slane %v5109_v44, 1  ;;  %v5770_v36 = vrot.slane %v10153_v11, 2  ;;  %v8580_v12 = vadd.f32 %v8579_v37, %v8578_v49  ;;  %v8581_v54 = vpop.f32.mrb[54].mxu0  ;;  %v5644_v24 = vld [vmem:[%s10632_s11 + $0x8] sm:$0xf] }
 0x245   : > { %8946 = vmatprep.subr.bf16.mxu0 %v10158_v17  ;;  %v5174_v39 = vrot.slane %v5110_v57, 1  ;;  %v5111_v35 = vrot.slane %v8116_v59, 2  ;;  %v8582_v45 = vpop.f32.mrb[55].mxu0  ;;  %v6287_v14 = vrot.slane %v10273_v23, 2  ;;  %v5645_v44 = vld [vmem:[%s10632_s11 + $0x14] sm:$0xf] }
 0x246   : > { %9277 = vmatmul.mubr.bf16.gmra.mrb[8].mxu1 %v5167_v22  ;;  %8947 = vmatpush3.bf16.msra.mxu0 %v10159_v29  ;;  %v11898_v63 = vadd.f32 %v11782_v48, %v8580_v12  ;;  %v8583_v11 = vadd.f32 %v8582_v45, %v8581_v54  ;;  %v10274_v59 = vld [vmem:[%s10632_s11 + $0x4] sm:$0xf]  ;;  %v10166_v37 = vld [vmem:[#allocation4 + $0x5c8] sm:$0xff]   ;;  %v10170_v23 = vld [vmem:[#allocation4 + $0x5d0] sm:$0xff]  }
 0x247   : > { %9293 = vmatpush3.bf16.msra.mxu1 %v10146_v33  ;;  %v8164_v33 = vcombine.low %v5642_v6, %v11880_v16  ;;  %v5176_v28 = vsel %vm513_vm1, %v5174_v39, %v5175_v55  ;;  %v6286_v6 = vrot.slane %v10709_v26, 2  ;;  %v8166_v17 = vcombine.low %v10274_v59, %v5644_v24  ;;  %v10163_v29 = vld [vmem:[#allocation4 + $0x5c0] sm:$0xff]  }
 0x248   : > { %9294 = vmatprep.subr.bf16.mxu1 %v10149_v41  ;;  %9280 = vmatprep.mubr.bf16.mxu1 %v5176_v28  ;;  %v11909_v57 = vadd.f32 %v11795_v3, %v8583_v11  ;;  %v10164_v26 = vld [vmem:[#allocation4 + $0x640] sm:$0xff]   ;;  %v6292_v24 = vrot.slane %v10749_v38, 2 }
 0x249   : > { %v5769_v15 = vrot.slane %v8164_v33, 2  ;;  %v6288_v48 = vsel %vm3724_vm3, %v6286_v6, %v6287_v14  ;;  %9012 = vmatprep.subr.bf16.mxu0 %v10164_v26  ;;  %v5646_v39 = vld [vmem:[%s10632_s11 + $0x20] sm:$0xf]  ;;  %v10275_v12 = vld [vmem:[%s10632_s11 + $0x44] ss:$0 sps:$4 sm:$0x33]  }
 0x24a   : > { %v6290_v28 = vrot.slane %v10275_v12, 2  ;;  %v10276_v6 = vld [vmem:[%s10632_s11 + $0x50] ss:$0 sps:$4 sm:$0x33]  }
 0x24b   : > { %9295 = vmatpush3.bf16.msra.mxu1 %v10149_v41  ;;  %v5771_v46 = vsel %vm3724_vm3, %v5769_v15, %v5770_v36  ;;  %v5113_v41 = vsel %vm3724_vm3, %v5111_v35, %v5112_v25  ;;  %v10165_v15 = vld [vmem:[#allocation4 + $0x600] sm:$0xff]   ;;  %v8167_v35 = vcombine.low %v11688_v30, %v5645_v44  ;;  %v5648_v44 = vld [vmem:[%s10632_s11 + $0x38] sm:$0xf]  ;;  %v10179_v26 = vld [vmem:[#allocation4 + $0x610] sm:$0xff]  }
 0x24c   : > { %9296 = vmatprep.subr.bf16.mxu1 %v10157_v50  ;;  %6092 = vmatprep.mubr.bf16.mxu0 %v5771_v46  ;;  %v5183_v22 = vrot.slane %v5113_v41, 1  ;;  %v8168_v46 = vcombine.low %v11720_v20, %v5646_v39  ;;  %v10169_v20 = vld [vmem:[%s10632_s11 + $0x3c] sm:$0xff]  }
 0x24d   : > { %6093 = vmatmul.mubr.bf16.gmra.mrb[156].mxu0 %v8149_v2  ;;  %v6289_v2 = vrot.slane %v10727_v9, 2  ;;  %v10172_v9 = vld [vmem:[#allocation4 + $0x608] sm:$0xff]  }
 0x24e   : > { %v5185_v33 = vsel %vm513_vm1, %v5183_v22, %v5184_v10  ;;  %6574 = vmatprep.mubr.bf16.mxu0 %v6288_v48  ;;  %v5647_v22 = vld [vmem:[%s10632_s11 + $0x2c] sm:$0xf] }
 0x24f   : > { %9297 = vmatpush3.bf16.msra.mxu1 %v10157_v50  ;;  %v8584_v50 = vpop.f32.mrb[56].mxu0  ;;  %v6291_v30 = vsel %vm3724_vm3, %v6289_v2, %v6290_v28 }
 0x250   : > { %9298 = vmatprep.subr.bf16.mxu1 %v10160_v5  ;;  %9281 = vmatmul.mubr.bf16.gmra.mrb[12].mxu1 %v5185_v33  ;;  %v8585_v55 = vpop.f32.mrb[57].mxu0 }
 0x251   : > { %9300 = vmatprep.mubr.bf16.mxu1 %v8166_v17  ;;  %v8586_v36 = vadd.f32 %v8585_v55, %v8584_v50  ;;  %v8587_v7 = vpop.f32.mrb[58].mxu0  ;;  %v8169_v17 = vcombine.low %v11756_v51, %v5647_v22  ;;  %v10178_v50 = vld [vmem:[#allocation4 + $0x650] sm:$0xff]   ;;  %v6298_v22 = vrot.slane %v10785_v61, 2  ;;  %v10193_v61 = vld [vmem:[#allocation4 + $0x620] sm:$0xff]  }
 0x252   : > { %v8588_v49 = vpop.f32.mrb[59].mxu0 }
 0x253   : > { %9299 = vmatpush3.bf16.msra.mxu1 %v10160_v5  ;;  %v11914_v25 = vadd.f32 %v11811_v40, %v8586_v36  ;;  %v8589_v3 = vadd.f32 %v8588_v49, %v8587_v7  ;;  %v10171_v40 = vld [vmem:[#allocation4 + $0x648] sm:$0xff]   ;;  %v5649_v36 = vld [vmem:[%s10632_s11 + $0x44] sm:$0xf]  ;;  %v6295_v7 = vrot.slane %v10768_v27, 2  ;;  %v10185_v27 = vld [vmem:[#allocation4 + $0x658] sm:$0xff]  }
 0x254   : > { %9316 = vmatprep.subr.bf16.mxu1 %v10163_v29  ;;  %v10277_v49 = vld [vmem:[%s10632_s11 + $0x5c] ss:$0 sps:$4 sm:$0x33]   ;;  %v8171_v28 = vcombine.low %v11819_v47, %v5649_v36 }
 0x255   : > { %6575 = vmatmul.mubr.bf16.vlgmr.msra.gmra.mrb[160].mxu0 %v10162_v21  ;;  %v11920_v41 = vadd.f32 %v11824_v18, %v8589_v3  ;;  %v6293_v18 = vrot.slane %v10276_v6, 2  ;;  %v10173_v21 = vld [vmem:[#allocation4 + $0x5d8] sm:$0xff]   ;;  %v6296_v39 = vrot.slane %v10277_v49, 2  ;;  %v10177_v3 = vld [vmem:[#allocation4 + $0x5e0] sm:$0xff]  }
 0x256   : > { %9013 = vmatpush3.bf16.msra.mxu0 %v10165_v15  ;;  %6582 = vmatprep.mubr.bf16.mxu0 %v6291_v30  ;;  %v10186_v30 = vld [vmem:[#allocation4 + $0x618] sm:$0xff]   ;;  %v10192_v49 = vld [vmem:[#allocation4 + $0x680] sm:$0xff]  }
 0x257   : > { %9014 = vmatprep.subr.bf16.mxu0 %v10171_v40  ;;  %v6294_v59 = vsel %vm3724_vm3, %v6292_v24, %v6293_v18  ;;  %v10278_v24 = vld [vmem:[%s10632_s11 + $0x68] ss:$0 sps:$4 sm:$0x33]   ;;  %v10191_v18 = vld [vmem:[#allocation4 + $0x660] sm:$0xff]  }
 0x258   : > { %9301 = vmatmul.mubr.bf16.vlgmr.msra.gmra.mrb[0].mxu1 %v8167_v35  ;;  %v6299_v6 = vrot.slane %v10278_v24, 2 }
 0x259   : > { %v8590_v10 = vpop.f32.mrb[60].mxu0  ;;  %9317 = vmatpush3.bf16.msra.mxu1 %v10163_v29  ;;  %9304 = vmatprep.mubr.bf16.mxu1 %v8168_v46  ;;  %v8170_v29 = vcombine.low %v11788_v62, %v5648_v44  ;;  %v6297_v46 = vsel %vm3724_vm3, %v6295_v7, %v6296_v39  ;;  %v8215_v7 = vld [vmem:[%s10632_s11 + $0x44] sm:$0xf] }
 0x25a   : > { %v8591_v5 = vpop.f32.mrb[61].mxu0  ;;  %9318 = vmatprep.subr.bf16.mxu1 %v10166_v37  ;;  %9015 = vmatpush3.bf16.msra.mxu0 %v10172_v9 }
 0x25b   : > { %v8592_v54 = vadd.f32 %v8591_v5, %v8590_v10  ;;  %v8593_v45 = vpop.f32.mrb[62].mxu0  ;;  %9016 = vmatprep.subr.bf16.mxu0 %v10178_v50 }
 0x25c   : > { %v8594_v14 = vpop.f32.mrb[63].mxu0 }
 0x25d   : > { %v11929_v33 = vadd.f32 %v11842_v4, %v8592_v54  ;;  %v8595_v11 = vadd.f32 %v8594_v14, %v8593_v45  ;;  %9319 = vmatpush3.bf16.msra.mxu1 %v10166_v37  ;;  %6583 = vmatmul.mubr.bf16.gmra.mrb[164].mxu0 %v10169_v20  ;;  %v5650_v37 = vld [vmem:[%s10632_s11 + $0x50] sm:$0xf]  ;;  %v5651_v20 = vld [vmem:[%s10632_s11 + $0x5c] sm:$0xf]  ;;  %v10183_v54 = vld [vmem:[%s10632_s11 + $0x54] sm:$0xff]  }
 0x25e   : > { %9320 = vmatprep.subr.bf16.mxu1 %v10170_v23  ;;  %6590 = vmatprep.mubr.bf16.mxu0 %v6294_v59  ;;  %v8172_v40 = vcombine.low %v11852_v42, %v5650_v37  ;;  %v10184_v42 = vld [vmem:[#allocation4 + $0x5f0] sm:$0xff]   ;;  %v8214_v14 = vld [vmem:[%s10632_s11 + $0x38] sm:$0xf] }
 0x25f   : > { %v11934_v38 = vadd.f32 %v11857_v19, %v8595_v11  ;;  %v10176_v19 = vld [vmem:[%s10632_s11 + $0x48] sm:$0xff]   ;;  %9017 = vmatpush3.bf16.msra.mxu0 %v10179_v26  ;;  %v8173_v11 = vcombine.low %v11880_v16, %v5651_v20  ;;  %v10187_v59 = vld [vmem:[#allocation4 + $0x5f8] sm:$0xff]   ;;  %v10280_v26 = vld [vmem:[%s10632_s11 + $0x74] ss:$0 sps:$4 sm:$0x33]  }
 0x260   : > { %9305 = vmatmul.mubr.bf16.gmra.mrb[4].mxu1 %v8169_v17  ;;  %9018 = vmatprep.subr.bf16.mxu0 %v10185_v27  ;;  %v10199_v20 = vld [vmem:[#allocation4 + $0x690] sm:$0xff]  }
 0x261   : > { %v8628_v48 = vpop.f32.mrb[64].mxu0  ;;  %9321 = vmatpush3.bf16.msra.mxu1 %v10170_v23  ;;  %9308 = vmatprep.mubr.bf16.mxu1 %v8170_v29 }
 0x262   : > { %v8629_v4 = vpop.f32.mrb[65].mxu0  ;;  %9322 = vmatprep.subr.bf16.mxu1 %v10173_v21 }
 0x263   : > { %v8630_v55 = vadd.f32 %v8629_v4, %v8628_v48  ;;  %v8631_v15 = vpop.f32.mrb[66].mxu0  ;;  %9019 = vmatpush3.bf16.msra.mxu0 %v10186_v30  ;;  %v10198_v48 = vld [vmem:[#allocation4 + $0x668] sm:$0xff]  }
 0x264   : > { %v8632_v51 = vpop.f32.mrb[67].mxu0  ;;  %9020 = vmatprep.subr.bf16.mxu0 %v10191_v18  ;;  %v10194_v30 = vld [vmem:[#allocation4 + $0x688] sm:$0xff]   ;;  %v10214_v18 = vld [vmem:[#allocation4 + $0x638] sm:$0xff]  }
 0x265   : > { %v11942_v62 = vadd.f32 %v11751_v53, %v8630_v55  ;;  %v8633_v35 = vadd.f32 %v8632_v51, %v8631_v15  ;;  %9323 = vmatpush3.bf16.msra.mxu1 %v10173_v21  ;;  %6591 = vmatmul.mubr.bf16.gmra.mrb[168].mxu0 %v10176_v19  ;;  %v6301_v21 = vrot.slane %v10809_v56, 2  ;;  %v6302_v55 = vrot.slane %v10280_v26, 2  ;;  %v10200_v15 = vld [vmem:[#allocation4 + $0x628] sm:$0xff]   ;;  %v10189_v51 = vld [vmem:[%s10632_s11 + $0x60] sm:$0xff]   ;;  %v8216_v19 = vld [vmem:[%s10632_s11 + $0x50] sm:$0xf] }
 0x266   : > { %9324 = vmatprep.subr.bf16.mxu1 %v10177_v3  ;;  %6598 = vmatprep.mubr.bf16.mxu0 %v6297_v46  ;;  %v10282_v46 = vld [vmem:[%s10632_s11 + $0x4c] sm:$0xf]  ;;  %v8278_v26 = vld [vmem:[%s10632_s11 + $0x60] sm:$0xc] }
 0x267   : > { %v11945_v2 = vadd.f32 %v11764_v43, %v8633_v35  ;;  %v10180_v43 = vld [vmem:[#allocation4 + $0x5e8] sm:$0xff]   ;;  %9021 = vmatpush3.bf16.msra.mxu0 %v10193_v61  ;;  %v6303_v35 = vsel %vm3724_vm3, %v6301_v21, %v6302_v55  ;;  %v8232_v27 = vcombine.low %v10282_v46, %v8216_v19  ;;  %v10203_v55 = vld [vmem:[%s10632_s11 + $0x78] sm:$0xff]  }
 0x268   : > { %9309 = vmatmul.mubr.bf16.gmra.mrb[8].mxu1 %v8171_v28  ;;  %9022 = vmatprep.subr.bf16.mxu0 %v10198_v48  ;;  %v10207_v28 = vld [vmem:[#allocation4 + $0x630] sm:$0xff]   ;;  %v6307_v48 = vrot.slane %v10847_v32, 2  ;;  %v10206_v32 = vld [vmem:[#allocation4 + $0x6a0] sm:$0xff]  }
 0x269   : > { %9325 = vmatpush3.bf16.msra.mxu1 %v10177_v3  ;;  %9312 = vmatprep.mubr.bf16.mxu1 %v8172_v40  ;;  %v10281_v3 = vld [vmem:[%s10632_s11 + $0x40] sm:$0xf] }
 0x26a   : > { %9326 = vmatprep.subr.bf16.mxu1 %v10180_v43  ;;  %v8231_v37 = vcombine.low %v10281_v3, %v8215_v7  ;;  %v10283_v40 = vld [vmem:[%s10632_s11 + $0x80] ss:$0 sps:$4 sm:$0x33]  }
 0x26b   : > { %v8634_v12 = vpop.f32.mrb[68].mxu0  ;;  %9023 = vmatpush3.bf16.msra.mxu0 %v10200_v15 }
 0x26c   : > { %v8635_v53 = vpop.f32.mrb[69].mxu0 }
 0x26d   : > { %v8636_v10 = vadd.f32 %v8635_v53, %v8634_v12  ;;  %v8637_v9 = vpop.f32.mrb[70].mxu0  ;;  %9327 = vmatpush3.bf16.msra.mxu1 %v10180_v43  ;;  %6599 = vmatmul.mubr.bf16.gmra.mrb[172].mxu0 %v10183_v54  ;;  %v6304_v53 = vrot.slane %v10826_v31, 2  ;;  %v8217_v43 = vld [vmem:[%s10632_s11 + $0x5c] sm:$0xf] }
 0x26e   : > { %v8638_v5 = vpop.f32.mrb[71].mxu0  ;;  %9328 = vmatprep.subr.bf16.mxu1 %v10184_v42 }
 0x26f   : > { %v11955_v47 = vadd.f32 %v11785_v13, %v8636_v10  ;;  %v8639_v45 = vadd.f32 %v8638_v5, %v8637_v9  ;;  %v6300_v13 = vsel %vm3724_vm3, %v6298_v22, %v6299_v6  ;;  %v6305_v10 = vrot.slane %v10283_v40, 2  ;;  %v10196_v9 = vld [vmem:[%s10632_s11 + $0x6c] sm:$0xff]   ;;  %v8218_v6 = vld [vmem:[%s10632_s11 + $0x68] sm:$0xf] }
 0x270   : > { %6606 = vmatprep.mubr.bf16.mxu0 %v6300_v13  ;;  %9313 = vmatmul.mubr.bf16.gmra.mrb[12].mxu1 %v8173_v11  ;;  %v8280_v40 = vld [vmem:[%s10632_s11 + $0x6c] sm:$0xc] }
 0x271   : > { %v11959_v23 = vadd.f32 %v11798_v58, %v8639_v45  ;;  %v10279_v58 = vld [vmem:[%s10632_s11 + $0x34] sm:$0xf]  ;;  %9329 = vmatpush3.bf16.msra.mxu1 %v10184_v42  ;;  %v10212_v45 = vld [vmem:[#allocation4 + $0x678] sm:$0xff]   ;;  %v6306_v61 = vsel %vm3724_vm3, %v6304_v53, %v6305_v10  ;;  %v10210_v10 = vld [vmem:[%s10632_s11 + $0x84] sm:$0xff]  }
 0x272   : > { %v8230_v29 = vcombine.low %v10279_v58, %v8214_v14  ;;  %9330 = vmatprep.subr.bf16.mxu1 %v10187_v59  ;;  %v10284_v14 = vld [vmem:[%s10632_s11 + $0x58] sm:$0xf]  ;;  %v10286_v58 = vld [vmem:[%s10632_s11 + $0x8c] ss:$0 sps:$4 sm:$0x33]  }
 0x273   : > { %v8640_v44 = vpop.f32.mrb[72].mxu0  ;;  %v8233_v13 = vcombine.low %v10284_v14, %v8217_v43 }
 0x274   : > { %v8641_v17 = vpop.f32.mrb[73].mxu0  ;;  %9332 = vmatprep.mubr.bf16.mxu1 %v8230_v29  ;;  %v6308_v29 = vrot.slane %v10286_v58, 2 }
 0x275   : > { %v8642_v50 = vadd.f32 %v8641_v17, %v8640_v44  ;;  %v8643_v4 = vpop.f32.mrb[74].mxu0  ;;  %9331 = vmatpush3.bf16.msra.mxu1 %v10187_v59  ;;  %6607 = vmatmul.mubr.bf16.gmra.mrb[176].mxu0 %v10189_v51  ;;  %v10201_v59 = vld [vmem:[#allocation4 + $0x698] sm:$0xff]   ;;  %v8220_v51 = vld [vmem:[%s10632_s11 + $0x80] sm:$0xf] }
 0x276   : > { %v8644_v16 = vpop.f32.mrb[75].mxu0  ;;  %9348 = vmatprep.subr.bf16.mxu1 %v10192_v49  ;;  %6614 = vmatprep.mubr.bf16.mxu0 %v6303_v35  ;;  %v10218_v35 = vld [vmem:[%s10632_s11 + $0x68] ss:$0 sps:$4 sm:$0x33]  }
 0x277   : > { %v11968_v36 = vadd.f32 %v11815_v1, %v8642_v50  ;;  %v8645_v56 = vadd.f32 %v8644_v16, %v8643_v4  ;;  %v10205_v1 = vld [vmem:[#allocation4 + $0x670] sm:$0xff]   ;;  %v11996_v50 = vld [vmem:[%s10632_s11 + $0x64] sm:$0xf] }
 0x278   : > { %9024 = vmatprep.subr.bf16.mxu0 %v10205_v1  ;;  %9333 = vmatmul.mubr.bf16.vlgmr.msra.gmra.mrb[0].mxu1 %v8231_v37  ;;  %v8219_v16 = vld [vmem:[%s10632_s11 + $0x74] sm:$0xf]  ;;  %v8310_v19 = vcombine.low %v8278_v26, %v11996_v50  ;;  %v10287_v1 = vld [vmem:[%s10632_s11 + $0x70] sm:$0xf]  ;;  %v10288_v37 = vld [vmem:[%s10632_s11 + $0x7c] sm:$0xf] }
 0x279   : > { %v11973_v39 = vadd.f32 %v11827_v52, %v8645_v56  ;;  %9025 = vmatpush3.bf16.msra.mxu0 %v10207_v28  ;;  %9349 = vmatpush3.bf16.msra.mxu1 %v10192_v49  ;;  %v6309_v49 = vsel %vm3724_vm3, %v6307_v48, %v6308_v29  ;;  %v8235_v3 = vcombine.low %v10287_v1, %v8219_v16  ;;  %v8282_v48 = vld [vmem:[%s10632_s11 + $0x78] sm:$0xc]  ;;  %v8295_v29 = vld [vmem:[%s10632_s11 + $0x74] sm:$0xf]  ;;  %v8296_v16 = vld [vmem:[%s10632_s11 + $0x80] sm:$0xf] }
 0x27a   : > { %9336 = vmatprep.mubr.bf16.mxu1 %v8232_v27  ;;  %9350 = vmatprep.subr.bf16.mxu1 %v10194_v30  ;;  %v10208_v27 = vld [vmem:[#allocation4 + $0x6a8] sm:$0xff]  }
 0x27b   : > { %9026 = vmatprep.subr.bf16.mxu0 %v10212_v45 }
 0x27d   : > { %9027 = vmatpush3.bf16.msra.mxu0 %v10214_v18  ;;  %9351 = vmatpush3.bf16.msra.mxu1 %v10194_v30  ;;  %v6889_v30 = vrot.slane %v8310_v19, 2  ;;  %v10222_v18 = vld [vmem:[%s10632_s11 + $0x74] ss:$0 sps:$4 sm:$0x33]  }
 0x27e   : > { %v8646_v12 = vpop.f32.mrb[76].mxu0  ;;  %6615 = vmatmul.mubr.bf16.gmra.mrb[180].mxu0 %v10196_v9  ;;  %9352 = vmatprep.subr.bf16.mxu1 %v10199_v20  ;;  %v8221_v9 = vld [vmem:[%s10632_s11 + $0x8c] sm:$0xf] }
 0x27f   : > { %v8647_v52 = vpop.f32.mrb[77].mxu0  ;;  %6622 = vmatprep.mubr.bf16.mxu0 %v6306_v61  ;;  %v10289_v61 = vld [vmem:[%s10632_s11 + $0x88] sm:$0xf] }
 0x280   : > { %v8648_v5 = vadd.f32 %v8647_v52, %v8646_v12  ;;  %v8649_v22 = vpop.f32.mrb[78].mxu0  ;;  %9337 = vmatmul.mubr.bf16.gmra.mrb[4].mxu1 %v8233_v13  ;;  %v6890_v52 = vrot.slane %v10218_v35, 2  ;;  %v8237_v14 = vcombine.low %v10289_v61, %v8221_v9  ;;  %v8264_v35 = vld [vmem:[%s10632_s11 + $0x6c] sm:$0xf] }
 0x281   : > { %v8650_v54 = vpop.f32.mrb[79].mxu0  ;;  %9353 = vmatpush3.bf16.msra.mxu1 %v10199_v20  ;;  %v8294_v20 = vld [vmem:[%s10632_s11 + $0x68] sm:$0xf] }
 0x282   : > { %v11984_v24 = vadd.f32 %v11845_v60, %v8648_v5  ;;  %v8651_v31 = vadd.f32 %v8650_v54, %v8649_v22  ;;  %v10285_v60 = vld [vmem:[%s10632_s11 + $0x64] sm:$0xf]  ;;  %9354 = vmatprep.subr.bf16.mxu1 %v10201_v59  ;;  %v10213_v22 = vld [vmem:[#allocation4 + $0x6b0] sm:$0xff]  }
 0x283   : > { %v8234_v44 = vcombine.low %v10285_v60, %v8218_v6  ;;  %v12021_v54 = vld [vmem:[%s10632_s11 + $0x70] sm:$0xf]  ;;  %v10215_v60 = vld [vmem:[#allocation4 + $0x6b8] sm:$0xff]  }
 0x284   : > { %v11988_v42 = vadd.f32 %v11862_v8, %v8651_v31  ;;  %v6891_v31 = vsel %vm3724_vm3, %v6889_v30, %v6890_v52  ;;  %v8312_v6 = vcombine.low %v8280_v40, %v12021_v54  ;;  %v8298_v40 = vld [vmem:[%s10632_s11 + $0x98] sm:$0xf] }
 0x285   : > { %9340 = vmatprep.mubr.bf16.mxu1 %v8234_v44  ;;  %9355 = vmatpush3.bf16.msra.mxu1 %v10201_v59  ;;  %v8262_v44 = vld [vmem:[%s10632_s11 + $0x60] sm:$0xf] }
 0x286   : > { %v8652_v11 = vpop.f32.mrb[80].mxu0  ;;  %6623 = vmatmul.mubr.bf16.gmra.mrb[184].mxu0 %v10203_v55  ;;  %9356 = vmatprep.subr.bf16.mxu1 %v10206_v32  ;;  %v8302_v58 = vcombine.low %v8262_v44, %v11996_v50  ;;  %v8267_v55 = vld [vmem:[%s10632_s11 + $0x7c] sm:$0xf]  ;;  %v12067_v44 = vld [vmem:[%s10632_s11 + $0xa0] sm:$0xf] }
 0x287   : > { %v8653_v8 = vpop.f32.mrb[81].mxu0  ;;  %6630 = vmatprep.mubr.bf16.mxu0 %v6309_v49  ;;  %v10227_v49 = vld [vmem:[%s10632_s11 + $0x80] ss:$0 sps:$4 sm:$0x33]  }
 0x288   : > { %v8654_v17 = vadd.f32 %v8653_v8, %v8652_v11  ;;  %v8655_v21 = vpop.f32.mrb[82].mxu0  ;;  %9341 = vmatmul.mubr.bf16.gmra.mrb[8].mxu1 %v8235_v3  ;;  %v6892_v8 = vrot.slane %v8312_v6, 2 }
 0x289   : > { %v8656_v4 = vpop.f32.mrb[83].mxu0  ;;  %9357 = vmatpush3.bf16.msra.mxu1 %v10206_v32 }
 0x28a   : > { %v12002_v15 = vadd.f32 %v11875_v0, %v8654_v17  ;;  %v8657_v56 = vadd.f32 %v8656_v4, %v8655_v21  ;;  %v8236_v0 = vcombine.low %v10288_v37, %v8220_v51  ;;  %9358 = vmatprep.subr.bf16.mxu1 %v10208_v27  ;;  %v6893_v17 = vrot.slane %v10222_v18, 2 }
 0x28b   : > { %v8314_v51 = vcombine.low %v8282_v48, %v8267_v55 }
 0x28c   : > { %v12006_v7 = vadd.f32 %v11888_v34, %v8657_v56  ;;  %9344 = vmatprep.mubr.bf16.mxu1 %v8236_v0  ;;  %v6894_v32 = vsel %vm3724_vm3, %v6892_v8, %v6893_v17  ;;  %v6896_v0 = vrot.slane %v10227_v49, 2  ;;  %v12074_v8 = vld [vmem:[%s10632_s11 + $0xac] sm:$0xf]  ;;  %v8300_v17 = vld [vmem:[%s10632_s11 + $0xb0] sm:$0xf] }
 0x28d   : > { %9359 = vmatpush3.bf16.msra.mxu1 %v10208_v27  ;;  %v6895_v37 = vrot.slane %v8314_v51, 2  ;;  %v8284_v27 = vld [vmem:[%s10632_s11 + $0x84] sm:$0xc] }
 0x28e   : > { %v8658_v46 = vpop.f32.mrb[84].mxu0  ;;  %6631 = vmatmul.mubr.bf16.gmra.mrb[188].mxu0 %v10210_v10  ;;  %9360 = vmatprep.subr.bf16.mxu1 %v10213_v22 }
 0x28f   : > { %v8659_v34 = vpop.f32.mrb[85].mxu0  ;;  %7177 = vmatprep.mubr.bf16.mxu0 %v6891_v31  ;;  %v6897_v9 = vsel %vm3724_vm3, %v6895_v37, %v6896_v0  ;;  %v8266_v31 = vld [vmem:[%s10632_s11 + $0x78] sm:$0xf] }
 0x290   : > { %v8660_v12 = vadd.f32 %v8659_v34, %v8658_v46  ;;  %v8661_v28 = vpop.f32.mrb[86].mxu0  ;;  %9345 = vmatmul.mubr.bf16.gmra.mrb[12].mxu1 %v8237_v14  ;;  %v8303_v34 = vcombine.low %v8264_v35, %v12021_v54 }
 0x291   : > { %v8662_v53 = vpop.f32.mrb[87].mxu0  ;;  %9361 = vmatpush3.bf16.msra.mxu1 %v10213_v22  ;;  %v10232_v22 = vld [vmem:[%s10632_s11 + $0x8c] ss:$0 sps:$4 sm:$0x33]  }
 0x292   : > { %v12017_v43 = vadd.f32 %v11898_v63, %v8660_v12  ;;  %v8663_v5 = vadd.f32 %v8662_v53, %v8661_v28  ;;  %v8326_v63 = vcombine.low %v11996_v50, %v8294_v20  ;;  %9362 = vmatprep.subr.bf16.mxu1 %v10215_v60  ;;  %v8327_v50 = vcombine.low %v12021_v54, %v8295_v29  ;;  %v8269_v12 = vld [vmem:[%s10632_s11 + $0x88] sm:$0xf]  ;;  %v8297_v28 = vld [vmem:[%s10632_s11 + $0x8c] sm:$0xf]  ;;  %v12055_v53 = vld [vmem:[%s10632_s11 + $0x94] sm:$0xf] }
 0x293   : > { %v8329_v20 = vcombine.low %v8269_v12, %v8297_v28  ;;  %v8330_v54 = vcombine.low %v12055_v53, %v8298_v40  ;;  %v6899_v14 = vrot.slane %v10232_v22, 2  ;;  %v10237_v29 = vld [vmem:[%s10632_s11 + $0x98] ss:$0 sps:$4 sm:$0x33]  }
 0x294   : > { %v12024_v45 = vadd.f32 %v11909_v57, %v8663_v5  ;;  %9364 = vmatprep.mubr.bf16.mxu1 %v8326_v63  ;;  %v8316_v5 = vcombine.low %v8284_v27, %v8269_v12 }
 0x295   : > { %9363 = vmatpush3.bf16.msra.mxu1 %v10215_v60  ;;  %v8304_v60 = vcombine.low %v8266_v31, %v8267_v55 }
 0x296   : > { %v8664_v13 = vpop.f32.mrb[88].mxu0  ;;  %7178 = vmatmul.mubr.bf16.vlgmr.msra.gmra.mrb[192].mxu0 %v8302_v58  ;;  %v6898_v61 = vrot.slane %v8316_v5, 2 }
 0x297   : > { %v8665_v57 = vpop.f32.mrb[89].mxu0  ;;  %7185 = vmatprep.mubr.bf16.mxu0 %v6894_v32 }
 0x298   : > { %v8666_v11 = vadd.f32 %v8665_v57, %v8664_v13  ;;  %v8667_v59 = vpop.f32.mrb[90].mxu0  ;;  %9365 = vmatmul.mubr.bf16.vlgmr.msra.gmra.mrb[0].mxu1 %v8327_v50  ;;  %v8286_v13 = vld [vmem:[%s10632_s11 + $0x90] sm:$0xc]  ;;  %v8299_v57 = vld [vmem:[%s10632_s11 + $0xa4] sm:$0xf]  ;;  %v6900_v48 = vsel %vm3724_vm3, %v6898_v61, %v6899_v14  ;;  %v6902_v50 = vrot.slane %v10237_v29, 2 }
 0x299   : > { %v8668_v21 = vpop.f32.mrb[91].mxu0  ;;  %v8318_v58 = vcombine.low %v8286_v13, %v12055_v53  ;;  %v10243_v61 = vld [vmem:[%s10632_s11 + $0xb0] ss:$0 sps:$4 sm:$0x33]  }
 0x29a   : > { %v12036_v4 = vadd.f32 %v11914_v25, %v8666_v11  ;;  %v8669_v26 = vadd.f32 %v8668_v21, %v8667_v59  ;;  %v8328_v25 = vcombine.low %v8267_v55, %v8296_v16  ;;  %v8268_v16 = vld [vmem:[%s10632_s11 + $0x84] sm:$0xf] }
 0x29b   : > { %v6901_v49 = vrot.slane %v8318_v58, 2  ;;  %v8305_v35 = vcombine.low %v8268_v16, %v8269_v12 }
 0x29c   : > { %v12041_v56 = vadd.f32 %v11920_v41, %v8669_v26  ;;  %9368 = vmatprep.mubr.bf16.mxu1 %v8328_v25  ;;  %v8331_v26 = vcombine.low %v12067_v44, %v8299_v57  ;;  %v6908_v57 = vrot.slane %v10243_v61, 2 }
 0x29e   : > { %v8670_v19 = vpop.f32.mrb[92].mxu0  ;;  %7186 = vmatmul.mubr.bf16.gmra.mrb[196].mxu0 %v8303_v34  ;;  %v10240_v34 = vld [vmem:[%s10632_s11 + $0xa4] ss:$0 sps:$4 sm:$0x33]  }
 0x29f   : > { %v8671_v1 = vpop.f32.mrb[93].mxu0  ;;  %7193 = vmatprep.mubr.bf16.mxu0 %v6897_v9 }
 0x2a0   : > { %v8672_v41 = vadd.f32 %v8671_v1, %v8670_v19  ;;  %v8673_v3 = vpop.f32.mrb[94].mxu0  ;;  %9369 = vmatmul.mubr.bf16.gmra.mrb[4].mxu1 %v8329_v20  ;;  %v8288_v19 = vld [vmem:[%s10632_s11 + $0x9c] sm:$0xc]  ;;  %v12088_v1 = vld [vmem:[%s10632_s11 + $0xb8] sm:$0xf] }
 0x2a1   : > { %v8674_v46 = vpop.f32.mrb[95].mxu0  ;;  %9372 = vmatprep.mubr.bf16.mxu1 %v8330_v54  ;;  %v8320_v27 = vcombine.low %v8288_v19, %v12067_v44  ;;  %v8290_v20 = vld [vmem:[%s10632_s11 + $0xa8] sm:$0xc] }
 0x2a2   : > { %v12052_v30 = vadd.f32 %v11929_v33, %v8672_v41  ;;  %v8675_v52 = vadd.f32 %v8674_v46, %v8673_v3  ;;  %v8301_v41 = vld [vmem:[%s10632_s11 + $0xbc] sm:$0xf]  ;;  %v6903_v46 = vsel %vm3724_vm3, %v6901_v49, %v6902_v50 }
 0x2a3   : > { %v8333_v28 = vcombine.low %v12088_v1, %v8301_v41  ;;  %v6904_v5 = vrot.slane %v8320_v27, 2 }
 0x2a4   : > { %v12059_v10 = vadd.f32 %v11934_v38, %v8675_v52  ;;  %v8270_v52 = vld [vmem:[%s10632_s11 + $0x90] sm:$0xf] }
 0x2a5   : > { %v8306_v54 = vcombine.low %v8270_v52, %v12055_v53 }
 0x2a6   : > { %v8708_v33 = vpop.f32.mrb[96].mxu0  ;;  %7194 = vmatmul.mubr.bf16.gmra.mrb[200].mxu0 %v8304_v60 }
 0x2a7   : > { %v8709_v6 = vpop.f32.mrb[97].mxu0  ;;  %7201 = vmatprep.mubr.bf16.mxu0 %v6900_v48 }
 0x2a8   : > { %v8710_v18 = vadd.f32 %v8709_v6, %v8708_v33  ;;  %v8711_v38 = vpop.f32.mrb[98].mxu0  ;;  %9373 = vmatmul.mubr.bf16.gmra.mrb[8].mxu1 %v8331_v26 }
 0x2a9   : > { %v8712_v63 = vpop.f32.mrb[99].mxu0 }
 0x2aa   : > { %v12071_v11 = vadd.f32 %v11942_v62, %v8710_v18  ;;  %v8713_v59 = vadd.f32 %v8712_v63, %v8711_v38  ;;  %v8332_v62 = vcombine.low %v12074_v8, %v8300_v17  ;;  %v8322_v38 = vcombine.low %v8290_v20, %v12074_v8  ;;  %v8272_v63 = vld [vmem:[%s10632_s11 + $0x9c] sm:$0xf]  ;;  %v8292_v17 = vld [vmem:[%s10632_s11 + $0xb4] sm:$0xc] }
 0x2ac   : > { %v12078_v21 = vadd.f32 %v11945_v2, %v8713_v59  ;;  %9376 = vmatprep.mubr.bf16.mxu1 %v8332_v62  ;;  %v6907_v60 = vrot.slane %v8322_v38, 2  ;;  %v8324_v62 = vcombine.low %v8292_v17, %v12088_v1 }
 0x2ae   : > { %v8714_v55 = vpop.f32.mrb[100].mxu0  ;;  %7202 = vmatmul.mubr.bf16.gmra.mrb[204].mxu0 %v8305_v35  ;;  %v6909_v26 = vsel %vm3724_vm3, %v6907_v60, %v6908_v57 }
 0x2af   : > { %v8715_v32 = vpop.f32.mrb[101].mxu0  ;;  %7209 = vmatprep.mubr.bf16.mxu0 %v6903_v46 }
 0x2b0   : > { %v8716_v51 = vadd.f32 %v8715_v32, %v8714_v55  ;;  %v8717_v2 = vpop.f32.mrb[102].mxu0  ;;  %9377 = vmatmul.mubr.bf16.gmra.mrb[12].mxu1 %v8333_v28  ;;  %v10246_v55 = vld [vmem:[%s10632_s11 + $0xbc] ss:$0 sps:$4 sm:$0x33]   ;;  %v8274_v32 = vld [vmem:[%s10632_s11 + $0xa8] sm:$0xf] }
 0x2b1   : > { %v8718_v25 = vpop.f32.mrb[103].mxu0  ;;  %v6911_v50 = vrot.slane %v10246_v55, 2 }
 0x2b2   : > { %v12092_v3 = vadd.f32 %v11955_v47, %v8716_v51  ;;  %v8719_v37 = vadd.f32 %v8718_v25, %v8717_v2 }
 0x2b4   : > { %v12095_v0 = vadd.f32 %v11959_v23, %v8719_v37  ;;  %v6905_v23 = vrot.slane %v10240_v34, 2 }
 0x2b6   : > { %v8720_v12 = vpop.f32.mrb[104].mxu0  ;;  %v6906_v18 = vsel %vm3724_vm3, %v6904_v5, %v6905_v23  ;;  %7210 = vmatmul.mubr.bf16.gmra.mrb[208].mxu0 %v8306_v54 }
 0x2b7   : > { %v8721_v40 = vpop.f32.mrb[105].mxu0  ;;  %7217 = vmatprep.mubr.bf16.mxu0 %v6906_v18 }
 0x2b8   : > { %v8722_v47 = vadd.f32 %v8721_v40, %v8720_v12  ;;  %v8723_v9 = vpop.f32.mrb[106].mxu0 }
 0x2b9   : > { %v8724_v22 = vpop.f32.mrb[107].mxu0 }
 0x2ba   : > { %v12105_v33 = vadd.f32 %v11968_v36, %v8722_v47  ;;  %v8725_v31 = vadd.f32 %v8724_v22, %v8723_v9 }
 0x2bc   : > { %v12108_v6 = vadd.f32 %v11973_v39, %v8725_v31  ;;  %v8307_v39 = vcombine.low %v8272_v63, %v12067_v44  ;;  %v6910_v44 = vrot.slane %v8324_v62, 2 }
 0x2be   : > { %v8726_v14 = vpop.f32.mrb[108].mxu0  ;;  %7218 = vmatmul.mubr.bf16.gmra.mrb[212].mxu0 %v8307_v39  ;;  %v6912_v28 = vsel %vm3724_vm3, %v6910_v44, %v6911_v50 }
 0x2bf   : > { %v8727_v13 = vpop.f32.mrb[109].mxu0  ;;  %7225 = vmatprep.mubr.bf16.mxu0 %v6909_v26 }
 0x2c0   : > { %v8728_v53 = vadd.f32 %v8727_v13, %v8726_v14  ;;  %v8729_v36 = vpop.f32.mrb[110].mxu0 }
 0x2c1   : > { %v8730_v59 = vpop.f32.mrb[111].mxu0 }
 0x2c2   : > { %v12117_v48 = vadd.f32 %v11984_v24, %v8728_v53  ;;  %v8731_v58 = vadd.f32 %v8730_v59, %v8729_v36 }
 0x2c4   : > { %v12120_v29 = vadd.f32 %v11988_v42, %v8731_v58  ;;  %v8308_v42 = vcombine.low %v8274_v32, %v12074_v8 }
 0x2c6   : > { %v8732_v16 = vpop.f32.mrb[112].mxu0  ;;  %7226 = vmatmul.mubr.bf16.gmra.mrb[216].mxu0 %v8308_v42 }
 0x2c7   : > { %v8733_v51 = vpop.f32.mrb[113].mxu0  ;;  %7233 = vmatprep.mubr.bf16.mxu0 %v6912_v28 }
 0x2c8   : > { %v8734_v2 = vadd.f32 %v8733_v51, %v8732_v16  ;;  %v8735_v49 = vpop.f32.mrb[114].mxu0 }
 0x2c9   : > { %v8788_v24 = vpop.f32.mrb[48].mxu1  ;;  %v8736_v25 = vpop.f32.mrb[115].mxu0 }
 0x2ca   : > { %v12128_v19 = vadd.f32 %v12002_v15, %v8734_v2  ;;  %v8789_v35 = vpop.f32.mrb[49].mxu1  ;;  %v8737_v41 = vadd.f32 %v8736_v25, %v8735_v49  ;;  %v8276_v15 = vld [vmem:[%s10632_s11 + $0xb4] sm:$0xf]  ;;  %s8362_s11 = sshll.u32 %s10463_s16, 5 }
 0x2cb   : > { %v8790_v37 = vadd.f32 %v8789_v35, %v8788_v24  ;;  %v8791_v46 = vpop.f32.mrb[50].mxu1  ;;  %v8309_v22 = vcombine.low %v8276_v15, %v12088_v1  ;;  %s7408_s4 = sadd.s32 %s8371_s24, %s8362_s11 }
 0x2cc   : > { %v12131_v27 = vadd.f32 %v12006_v7, %v8737_v41  ;;  %v8792_v34 = vpop.f32.mrb[51].mxu1  ;;  %s8363_s16 = sshll.u32 %s7408_s4, 7 }
 0x2cd   : > { %v12135_v12 = vadd.f32 %v12071_v11, %v8790_v37  ;;  %v8793_v52 = vadd.f32 %v8792_v34, %v8791_v46  ;;  %s12325_s9 = scalar_lea.hbm %s12385_s3, %s8363_s16 }
 0x2ce   : > { %v8738_v40 = vpop.f32.mrb[116].mxu0  ;;  %7234 = vmatmul.mubr.bf16.gmra.mrb[220].mxu0 %v8309_v22 }
 0x2cf   : > { %v12138_v8 = vadd.f32 %v12078_v21, %v8793_v52  ;;  %v8739_v47 = vpop.f32.mrb[117].mxu0 }
 0x2d0   : > { %v8740_v9 = vadd.f32 %v8739_v47, %v8738_v40  ;;  %v8741_v5 = vpop.f32.mrb[118].mxu0 }
 0x2d1   : > { %v8794_v23 = vpop.f32.mrb[52].mxu1  ;;  %v8742_v7 = vpop.f32.mrb[119].mxu0 }
 0x2d2   : > { %v12143_v20 = vadd.f32 %v12017_v43, %v8740_v9  ;;  %v8795_v11 = vpop.f32.mrb[53].mxu1  ;;  %v8743_v54 = vadd.f32 %v8742_v7, %v8741_v5 }
 0x2d3   : > { %v8796_v31 = vadd.f32 %v8795_v11, %v8794_v23  ;;  %v8797_v18 = vpop.f32.mrb[54].mxu1 }
 0x2d4   : > { %v12146_v38 = vadd.f32 %v12024_v45, %v8743_v54  ;;  %v8798_v21 = vpop.f32.mrb[55].mxu1 }
 0x2d5   : > { %v9384_v61 = vadd.f32 %v12092_v3, %v8796_v31  ;;  %v8799_v14 = vadd.f32 %v8798_v21, %v8797_v18 }
 0x2d6   : > { %v8744_v63 = vpop.f32.mrb[120].mxu0 }
 0x2d7   : > { %v9402_v13 = vadd.f32 %v12095_v0, %v8799_v14  ;;  %v8745_v53 = vpop.f32.mrb[121].mxu0 }
 0x2d8   : > { %v8746_v1 = vadd.f32 %v8745_v53, %v8744_v63  ;;  %v8747_v36 = vpop.f32.mrb[122].mxu0 }
 0x2d9   : > { %v8800_v43 = vpop.f32.mrb[56].mxu1  ;;  %v8748_v60 = vpop.f32.mrb[123].mxu0 }
 0x2da   : > { %v12151_v57 = vadd.f32 %v12036_v4, %v8746_v1  ;;  %v8801_v59 = vpop.f32.mrb[57].mxu1  ;;  %v8749_v17 = vadd.f32 %v8748_v60, %v8747_v36 }
 0x2db   : > { %v8802_v45 = vadd.f32 %v8801_v59, %v8800_v43  ;;  %v8803_v39 = vpop.f32.mrb[58].mxu1 }
 0x2dc   : > { %v12154_v58 = vadd.f32 %v12041_v56, %v8749_v17  ;;  %v8804_v3 = vpop.f32.mrb[59].mxu1 }
 0x2dd   : > { %v9429_v26 = vadd.f32 %v12105_v33, %v8802_v45  ;;  %v8805_v62 = vadd.f32 %v8804_v3, %v8803_v39 }
 0x2de   : > { %v8750_v0 = vpop.f32.mrb[124].mxu0 }
 0x2df   : > { %v9447_v55 = vadd.f32 %v12108_v6, %v8805_v62  ;;  %v8751_v16 = vpop.f32.mrb[125].mxu0 }
 0x2e0   : > { %v8752_v32 = vadd.f32 %v8751_v16, %v8750_v0  ;;  %v8753_v51 = vpop.f32.mrb[126].mxu0 }
 0x2e1   : > { %v8806_v2 = vpop.f32.mrb[60].mxu1  ;;  %v8754_v4 = vpop.f32.mrb[127].mxu0 }
 0x2e2   : > { %v12159_v49 = vadd.f32 %v12052_v30, %v8752_v32  ;;  %v8807_v44 = vpop.f32.mrb[61].mxu1  ;;  %v8755_v50 = vadd.f32 %v8754_v4, %v8753_v51 }
 0x2e3   : > { %v8808_v24 = vadd.f32 %v8807_v44, %v8806_v2  ;;  %v8809_v56 = vpop.f32.mrb[62].mxu1 }
 0x2e4   : > { %v12162_v25 = vadd.f32 %v12059_v10, %v8755_v50  ;;  %v8810_v33 = vpop.f32.mrb[63].mxu1 }
 0x2e5   : > { %v9420_v42 = vadd.f32 %v12117_v48, %v8808_v24  ;;  %v8811_v35 = vadd.f32 %v8810_v33, %v8809_v56 }
 0x2e6   : > { %v8868_v6 = vpop.f32.mrb[128].mxu0 }
 0x2e7   : > { %v12166_v41 = vadd.f32 %v12120_v29, %v8811_v35  ;;  %v8869_v37 = vpop.f32.mrb[129].mxu0 }
 0x2e8   : > { %v8870_v46 = vadd.f32 %v8869_v37, %v8868_v6  ;;  %v8871_v34 = vpop.f32.mrb[130].mxu0 }
 0x2e9   : > { %v8812_v30 = vpop.f32.mrb[64].mxu1  ;;  %v8872_v28 = vpop.f32.mrb[131].mxu0 }
 0x2ea   : > { %v8813_v52 = vpop.f32.mrb[65].mxu1  ;;  %v12169_v40 = vadd.f32 %v12135_v12, %v8870_v46  ;;  %v8873_v15 = vadd.f32 %v8872_v28, %v8871_v34 }
 0x2eb   : > { %v8814_v10 = vadd.f32 %v8813_v52, %v8812_v30  ;;  %v8815_v47 = vpop.f32.mrb[66].mxu1 }
 0x2ec   : > { %v8816_v9 = vpop.f32.mrb[67].mxu1  ;;  %v12172_v48 = vadd.f32 %v12138_v8, %v8873_v15 }
 0x2ed   : > { %v9465_v5 = vadd.f32 %v12128_v19, %v8814_v10  ;;  %v8817_v29 = vadd.f32 %v8816_v9, %v8815_v47 }
 0x2ee   : > { %v8874_v23 = vpop.f32.mrb[132].mxu0 }
 0x2ef   : > { %v9483_v7 = vadd.f32 %v12131_v27, %v8817_v29  ;;  %v8875_v22 = vpop.f32.mrb[133].mxu0 }
 0x2f0   : > { %v8876_v11 = vadd.f32 %v8875_v22, %v8874_v23  ;;  %v8877_v54 = vpop.f32.mrb[134].mxu0 }
 0x2f1   : > { %v8818_v31 = vpop.f32.mrb[68].mxu1  ;;  %v8878_v18 = vpop.f32.mrb[135].mxu0 }
 0x2f2   : > { %v8819_v12 = vpop.f32.mrb[69].mxu1  ;;  %v12176_v21 = vadd.f32 %v9384_v61, %v8876_v11  ;;  %v8879_v14 = vadd.f32 %v8878_v18, %v8877_v54 }
 0x2f3   : > { %v8820_v63 = vadd.f32 %v8819_v12, %v8818_v31  ;;  %v8821_v53 = vpop.f32.mrb[70].mxu1 }
 0x2f4   : > { %v8822_v1 = vpop.f32.mrb[71].mxu1  ;;  %v12178_v8 = vadd.f32 %v9402_v13, %v8879_v14 }
 0x2f5   : > { %v9456_v19 = vadd.f32 %v12143_v20, %v8820_v63  ;;  %v8823_v36 = vadd.f32 %v8822_v1, %v8821_v53 }
 0x2f6   : > { %v8880_v43 = vpop.f32.mrb[136].mxu0 }
 0x2f7   : > { %v9474_v27 = vadd.f32 %v12146_v38, %v8823_v36  ;;  %v8881_v60 = vpop.f32.mrb[137].mxu0 }
 0x2f8   : > { %v8882_v59 = vadd.f32 %v8881_v60, %v8880_v43  ;;  %v8883_v17 = vpop.f32.mrb[138].mxu0 }
 0x2f9   : > { %v8824_v45 = vpop.f32.mrb[72].mxu1  ;;  %v8884_v39 = vpop.f32.mrb[139].mxu0 }
 0x2fa   : > { %v8825_v3 = vpop.f32.mrb[73].mxu1  ;;  %v12182_v61 = vadd.f32 %v9429_v26, %v8882_v59  ;;  %v8885_v62 = vadd.f32 %v8884_v39, %v8883_v17 }
 0x2fb   : > { %v8826_v0 = vadd.f32 %v8825_v3, %v8824_v45  ;;  %v8827_v16 = vpop.f32.mrb[74].mxu1 }
 0x2fc   : > { %v8828_v32 = vpop.f32.mrb[75].mxu1  ;;  %v12184_v13 = vadd.f32 %v9447_v55, %v8885_v62 }
 0x2fd   : > { %v9501_v20 = vadd.f32 %v12151_v57, %v8826_v0  ;;  %v8829_v51 = vadd.f32 %v8828_v32, %v8827_v16 }
 0x2fe   : > { %v8886_v4 = vpop.f32.mrb[140].mxu0 }
 0x2ff   : > { %v9519_v2 = vadd.f32 %v12154_v58, %v8829_v51  ;;  %v8887_v50 = vpop.f32.mrb[141].mxu0 }
 0x300   : > { %v8888_v56 = vadd.f32 %v8887_v50, %v8886_v4  ;;  %v8889_v26 = vpop.f32.mrb[142].mxu0 }
 0x301   : > { %v8830_v38 = vpop.f32.mrb[76].mxu1  ;;  %v8890_v6 = vpop.f32.mrb[143].mxu0 }
 0x302   : > { %v8831_v44 = vpop.f32.mrb[77].mxu1  ;;  %v12189_v46 = vadd.f32 %v9420_v42, %v8888_v56  ;;  %v8891_v34 = vadd.f32 %v8890_v6, %v8889_v26 }
 0x303   : > { %v8832_v24 = vadd.f32 %v8831_v44, %v8830_v38  ;;  %v8833_v33 = vpop.f32.mrb[78].mxu1 }
 0x304   : > { %v8834_v35 = vpop.f32.mrb[79].mxu1  ;;  %v12193_v58 = vadd.f32 %v12166_v41, %v8891_v34 }
 0x305   : > { %v9492_v37 = vadd.f32 %v12159_v49, %v8832_v24  ;;  %v8835_v55 = vadd.f32 %v8834_v35, %v8833_v33 }
 0x306   : > { %v8892_v30 = vpop.f32.mrb[144].mxu0 }
 0x307   : > { %v9510_v57 = vadd.f32 %v12162_v25, %v8835_v55  ;;  %v8893_v28 = vpop.f32.mrb[145].mxu0 }
 0x308   : > { %v8894_v52 = vadd.f32 %v8893_v28, %v8892_v30  ;;  %v8895_v15 = vpop.f32.mrb[146].mxu0 }
 0x309   : > { %v8896_v10 = vpop.f32.mrb[147].mxu0 }
 0x30a   : > { %v12195_v47 = vadd.f32 %v9465_v5, %v8894_v52  ;;  %v8897_v9 = vadd.f32 %v8896_v10, %v8895_v15 }
 0x30c   : > { %v12197_v29 = vadd.f32 %v9483_v7, %v8897_v9 }
 0x30e   : > { %v8898_v49 = vpop.f32.mrb[148].mxu0 }
 0x30f   : > { %v8899_v42 = vpop.f32.mrb[149].mxu0 }
 0x310   : > { %v8900_v23 = vadd.f32 %v8899_v42, %v8898_v49  ;;  %v8901_v22 = vpop.f32.mrb[150].mxu0 }
 0x311   : > { %v8902_v11 = vpop.f32.mrb[151].mxu0 }
 0x312   : > { %v12199_v54 = vadd.f32 %v9456_v19, %v8900_v23  ;;  %v8903_v25 = vadd.f32 %v8902_v11, %v8901_v22 }
 0x314   : > { %v12201_v41 = vadd.f32 %v9474_v27, %v8903_v25 }
 0x317   : > { %v8904_v31 = vpop.f32.mrb[152].mxu0 }
 0x318   : > { %v8905_v18 = vpop.f32.mrb[153].mxu0 }
 0x319   : > { %v8906_v12 = vadd.f32 %v8905_v18, %v8904_v31  ;;  %v8907_v14 = vpop.f32.mrb[154].mxu0 }
 0x31a   : > { %v8908_v63 = vpop.f32.mrb[155].mxu0 }
 0x31b   : > { %v12203_v5 = vadd.f32 %v9501_v20, %v8906_v12  ;;  %v8909_v53 = vadd.f32 %v8908_v63, %v8907_v14 }
 0x31d   : > { %v12205_v7 = vadd.f32 %v9519_v2, %v8909_v53 }
 0x320   : > { %v8910_v1 = vpop.f32.mrb[156].mxu0 }
 0x321   : > { %v8911_v36 = vpop.f32.mrb[157].mxu0 }
 0x322   : > { %v8912_v43 = vadd.f32 %v8911_v36, %v8910_v1  ;;  %v8913_v60 = vpop.f32.mrb[158].mxu0 }
 0x323   : > { %v8914_v59 = vpop.f32.mrb[159].mxu0 }
 0x324   : > { %v12207_v19 = vadd.f32 %v9492_v37, %v8912_v43  ;;  %v8915_v17 = vadd.f32 %v8914_v59, %v8913_v60 }
 0x326   : > { %v12209_v27 = vadd.f32 %v9510_v57, %v8915_v17 }
 0x328   : > { %v8948_v45 = vpop.f32.mrb[160].mxu0 }
 0x329   : > { %v8949_v39 = vpop.f32.mrb[161].mxu0 }
 0x32a   : > { %v8950_v3 = vadd.f32 %v8949_v39, %v8948_v45  ;;  %v8951_v62 = vpop.f32.mrb[162].mxu0 }
 0x32b   : > { %v8952_v0 = vpop.f32.mrb[163].mxu0 }
 0x32c   : > { %v12212_v16 = vadd.f32 %v12169_v40, %v8950_v3  ;;  %v8953_v32 = vadd.f32 %v8952_v0, %v8951_v62 }
 0x32e   : > { %v12215_v20 = vadd.f32 %v12172_v48, %v8953_v32 }
 0x330   : > { %v8954_v51 = vpop.f32.mrb[164].mxu0 }
 0x331   : > { %v8955_v2 = vpop.f32.mrb[165].mxu0 }
 0x332   : > { %v8956_v38 = vadd.f32 %v8955_v2, %v8954_v51  ;;  %v8957_v4 = vpop.f32.mrb[166].mxu0 }
 0x333   : > { %v8958_v44 = vpop.f32.mrb[167].mxu0 }
 0x334   : > { %v12218_v50 = vadd.f32 %v12176_v21, %v8956_v38  ;;  %v8959_v24 = vadd.f32 %v8958_v44, %v8957_v4 }
 0x336   : > { %v12221_v56 = vadd.f32 %v12178_v8, %v8959_v24 }
 0x338   : > { %v8960_v33 = vpop.f32.mrb[168].mxu0 }
 0x339   : > { %v8961_v26 = vpop.f32.mrb[169].mxu0 }
 0x33a   : > { %v8962_v40 = vadd.f32 %v8961_v26, %v8960_v33  ;;  %v8963_v35 = vpop.f32.mrb[170].mxu0 }
 0x33b   : > { %v8964_v6 = vpop.f32.mrb[171].mxu0 }
 0x33c   : > { %v12224_v48 = vadd.f32 %v12182_v61, %v8962_v40  ;;  %v8965_v37 = vadd.f32 %v8964_v6, %v8963_v35 }
 0x33e   : > { %v12227_v55 = vadd.f32 %v12184_v13, %v8965_v37 }
 0x340   : > { %v8966_v34 = vpop.f32.mrb[172].mxu0 }
 0x341   : > { %v8967_v57 = vpop.f32.mrb[173].mxu0 }
 0x342   : > { %v8968_v21 = vadd.f32 %v8967_v57, %v8966_v34  ;;  %v8969_v30 = vpop.f32.mrb[174].mxu0 }
 0x343   : > { %v8970_v28 = vpop.f32.mrb[175].mxu0 }
 0x344   : > { %v12230_v8 = vadd.f32 %v12189_v46, %v8968_v21  ;;  %v8971_v52 = vadd.f32 %v8970_v28, %v8969_v30 }
 0x346   : > { %v12233_v15 = vadd.f32 %v12193_v58, %v8971_v52 }
 0x348   : > { %v8972_v10 = vpop.f32.mrb[176].mxu0 }
 0x349   : > { %v8973_v9 = vpop.f32.mrb[177].mxu0 }
 0x34a   : > { %v8974_v61 = vadd.f32 %v8973_v9, %v8972_v10  ;;  %v8975_v49 = vpop.f32.mrb[178].mxu0 }
 0x34b   : > { %v8976_v42 = vpop.f32.mrb[179].mxu0 }
 0x34c   : > { %v12236_v13 = vadd.f32 %v12195_v47, %v8974_v61  ;;  %v8977_v23 = vadd.f32 %v8976_v42, %v8975_v49 }
 0x34e   : > { %v12239_v22 = vadd.f32 %v12197_v29, %v8977_v23 }
 0x351   : > { %v8978_v11 = vpop.f32.mrb[180].mxu0 }
 0x352   : > { %v8979_v25 = vpop.f32.mrb[181].mxu0 }
 0x353   : > { %v8980_v46 = vadd.f32 %v8979_v25, %v8978_v11  ;;  %v8981_v31 = vpop.f32.mrb[182].mxu0 }
 0x354   : > { %v8982_v18 = vpop.f32.mrb[183].mxu0 }
 0x355   : > { %v12242_v58 = vadd.f32 %v12199_v54, %v8980_v46  ;;  %v8983_v12 = vadd.f32 %v8982_v18, %v8981_v31 }
 0x357   : > { %v12245_v14 = vadd.f32 %v12201_v41, %v8983_v12 }
 0x359   : > { %v8984_v63 = vpop.f32.mrb[184].mxu0 }
 0x35a   : > { %v8985_v53 = vpop.f32.mrb[185].mxu0 }
 0x35b   : > { %v8986_v47 = vadd.f32 %v8985_v53, %v8984_v63  ;;  %v8987_v1 = vpop.f32.mrb[186].mxu0 }
 0x35c   : > { %v8988_v36 = vpop.f32.mrb[187].mxu0 }
 0x35d   : > { %v12248_v29 = vadd.f32 %v12203_v5, %v8986_v47  ;;  %v8989_v43 = vadd.f32 %v8988_v36, %v8987_v1 }
 0x35f   : > { %v12251_v60 = vadd.f32 %v12205_v7, %v8989_v43 }
 0x361   : > { %v8990_v59 = vpop.f32.mrb[188].mxu0 }
 0x362   : > { %v8991_v17 = vpop.f32.mrb[189].mxu0 }
 0x363   : > { %v8992_v54 = vadd.f32 %v8991_v17, %v8990_v59  ;;  %v8993_v45 = vpop.f32.mrb[190].mxu0 }
 0x364   : > { %v8994_v39 = vpop.f32.mrb[191].mxu0 }
 0x365   : > { %v12254_v41 = vadd.f32 %v12207_v19, %v8992_v54  ;;  %v8995_v3 = vadd.f32 %v8994_v39, %v8993_v45  ;;  %v12263_v19 = vld [vmem:[%s12384_s2] ss:$0 sm:$0xff] }
 0x367   : > { %v12257_v62 = vadd.f32 %v12209_v27, %v8995_v3 }
 0x369   : > { %v9028_v0 = vpop.f32.mrb[192].mxu0 }
 0x36a   : > { %v9029_v32 = vpop.f32.mrb[193].mxu0 }
 0x36b   : > { %v9030_v5 = vadd.f32 %v9029_v32, %v9028_v0  ;;  %v9031_v51 = vpop.f32.mrb[194].mxu0  ;;  %v9366_v2 = vpop.f32.mrb[0].mxu1 }
 0x36c   : > { %v9032_v7 = vpop.f32.mrb[195].mxu0  ;;  %v7276_v38 = vpop.f32.mrb[1].mxu1 }
 0x36d   : > { %v9396_v4 = vadd.f32 %v12212_v16, %v9030_v5  ;;  %v9033_v44 = vadd.f32 %v9032_v7, %v9031_v51  ;;  %v9367_v24 = vpop.f32.mrb[2].mxu1 }
 0x36e   : > { %v7279_v33 = vpop.f32.mrb[3].mxu1 }
 0x36f   : > { %v9397_v27 = vadd.f32 %v9396_v4, %v7276_v38  ;;  %v9414_v26 = vadd.f32 %v12215_v20, %v9033_v44 }
 0x371   : > { %v7362_v40 = vadd.f32 %v9397_v27, %v12263_v19  ;;  %v9415_v35 = vadd.f32 %v9414_v26, %v7279_v33  ;;  %v9034_v6 = vpop.f32.mrb[196].mxu0 }
 0x372   : > { %v9035_v37 = vpop.f32.mrb[197].mxu0 }
 0x373   : > { %7378 = vst [vmem:[%s10702_s18] sm:$0xff] %v7362_v40  ;;  %v7363_v16 = vadd.f32 %v9415_v35, %v12263_v19  ;;  %v9036_v34 = vadd.f32 %v9035_v37, %v9034_v6  ;;  %v9037_v57 = vpop.f32.mrb[198].mxu0  ;;  %v9370_v21 = vpop.f32.mrb[4].mxu1 }
 0x374   : > { %v9038_v30 = vpop.f32.mrb[199].mxu0  ;;  %v7292_v52 = vpop.f32.mrb[5].mxu1 }
 0x375   : > { %7379 = vst [vmem:[%s10702_s18 + $0x8] sm:$0xff] %v7363_v16  ;;  %v9387_v28 = vadd.f32 %v12218_v50, %v9036_v34  ;;  %v9039_v10 = vadd.f32 %v9038_v30, %v9037_v57  ;;  %v9371_v20 = vpop.f32.mrb[6].mxu1 }
 0x376   : > { %v7295_v49 = vpop.f32.mrb[7].mxu1 }
 0x377   : > { %v9388_v9 = vadd.f32 %v9387_v28, %v9366_v2  ;;  %v9405_v61 = vadd.f32 %v12221_v56, %v9039_v10 }
 0x379   : > { %v7364_v42 = vadd.f32 %v9388_v9, %v12263_v19  ;;  %v9406_v23 = vadd.f32 %v9405_v61, %v9367_v24  ;;  %v9040_v11 = vpop.f32.mrb[200].mxu0 }
 0x37a   : > { %v9041_v25 = vpop.f32.mrb[201].mxu0 }
 0x37b   : > { %7380 = vst [vmem:[%s10702_s18 + $0x10] sm:$0xff] %v7364_v42  ;;  %v7365_v46 = vadd.f32 %v9406_v23, %v12263_v19  ;;  %v9042_v31 = vadd.f32 %v9041_v25, %v9040_v11  ;;  %v9043_v18 = vpop.f32.mrb[202].mxu0  ;;  %v9374_v50 = vpop.f32.mrb[8].mxu1 }
 0x37c   : > { %v9044_v12 = vpop.f32.mrb[203].mxu0  ;;  %v7308_v53 = vpop.f32.mrb[9].mxu1 }
 0x37d   : > { %7381 = vst [vmem:[%s10702_s18 + $0x18] sm:$0xff] %v7365_v46  ;;  %v9432_v63 = vadd.f32 %v12224_v48, %v9042_v31  ;;  %v9045_v56 = vadd.f32 %v9044_v12, %v9043_v18  ;;  %v9375_v47 = vpop.f32.mrb[10].mxu1 }
 0x37e   : > { %v7311_v43 = vpop.f32.mrb[11].mxu1 }
 0x37f   : > { %v9433_v1 = vadd.f32 %v9432_v63, %v7292_v52  ;;  %v9450_v36 = vadd.f32 %v12227_v55, %v9045_v56 }
 0x381   : > { %v7366_v59 = vadd.f32 %v9433_v1, %v12263_v19  ;;  %v9451_v17 = vadd.f32 %v9450_v36, %v7295_v49  ;;  %v9046_v54 = vpop.f32.mrb[204].mxu0 }
 0x382   : > { %v9047_v45 = vpop.f32.mrb[205].mxu0 }
 0x383   : > { %7382 = vst [vmem:[%s10702_s18 + $0x20] sm:$0xff] %v7366_v59  ;;  %v7367_v39 = vadd.f32 %v9451_v17, %v12263_v19  ;;  %v9048_v3 = vadd.f32 %v9047_v45, %v9046_v54  ;;  %v9049_v0 = vpop.f32.mrb[206].mxu0  ;;  %v12281_v48 = vpop.f32.mrb[12].mxu1 }
 0x384   : > { %v9050_v32 = vpop.f32.mrb[207].mxu0  ;;  %v7324_v55 = vpop.f32.mrb[13].mxu1 }
 0x385   : > { %7383 = vst [vmem:[%s10702_s18 + $0x28] sm:$0xff] %v7367_v39  ;;  %v9423_v5 = vadd.f32 %v12230_v8, %v9048_v3  ;;  %v9051_v51 = vadd.f32 %v9050_v32, %v9049_v0  ;;  %v12285_v2 = vpop.f32.mrb[14].mxu1 }
 0x386   : > { %v7327_v4 = vpop.f32.mrb[15].mxu1 }
 0x387   : > { %v9424_v7 = vadd.f32 %v9423_v5, %v9370_v21  ;;  %v9441_v38 = vadd.f32 %v12233_v15, %v9051_v51 }
 0x389   : > { %v7368_v44 = vadd.f32 %v9424_v7, %v12263_v19  ;;  %v9442_v24 = vadd.f32 %v9441_v38, %v9371_v20  ;;  %v9052_v27 = vpop.f32.mrb[208].mxu0 }
 0x38a   : > { %v9053_v33 = vpop.f32.mrb[209].mxu0 }
 0x38b   : > { %7384 = vst [vmem:[%s10702_s18 + $0x30] sm:$0xff] %v7368_v44  ;;  %v7369_v26 = vadd.f32 %v9442_v24, %v12263_v19  ;;  %v9054_v40 = vadd.f32 %v9053_v33, %v9052_v27  ;;  %v9055_v8 = vpop.f32.mrb[210].mxu0 }
 0x38c   : > { %v9056_v35 = vpop.f32.mrb[211].mxu0 }
 0x38d   : > { %7385 = vst [vmem:[%s10702_s18 + $0x38] sm:$0xff] %v7369_v26  ;;  %v9468_v6 = vadd.f32 %v12236_v13, %v9054_v40  ;;  %v9057_v37 = vadd.f32 %v9056_v35, %v9055_v8 }
 0x38f   : > { %v9469_v16 = vadd.f32 %v9468_v6, %v7308_v53  ;;  %v9486_v15 = vadd.f32 %v12239_v22, %v9057_v37 }
 0x391   : > { %v7370_v34 = vadd.f32 %v9469_v16, %v12263_v19  ;;  %v9487_v57 = vadd.f32 %v9486_v15, %v7311_v43  ;;  %v9058_v21 = vpop.f32.mrb[212].mxu0 }
 0x392   : > { %v9059_v30 = vpop.f32.mrb[213].mxu0 }
 0x393   : > { %7386 = vst [vmem:[%s10702_s18 + $0x40] sm:$0xff] %v7370_v34  ;;  %v7371_v28 = vadd.f32 %v9487_v57, %v12263_v19  ;;  %v9060_v52 = vadd.f32 %v9059_v30, %v9058_v21  ;;  %v9061_v10 = vpop.f32.mrb[214].mxu0 }
 0x394   : > { %v9062_v20 = vpop.f32.mrb[215].mxu0 }
 0x395   : > { %7387 = vst [vmem:[%s10702_s18 + $0x48] sm:$0xff] %v7371_v28  ;;  %v9459_v13 = vadd.f32 %v12242_v58, %v9060_v52  ;;  %v9063_v9 = vadd.f32 %v9062_v20, %v9061_v10 }
 0x397   : > { %v9460_v61 = vadd.f32 %v9459_v13, %v9374_v50  ;;  %v9477_v22 = vadd.f32 %v12245_v14, %v9063_v9 }
 0x399   : > { %v7372_v49 = vadd.f32 %v9460_v61, %v12263_v19  ;;  %v9478_v42 = vadd.f32 %v9477_v22, %v9375_v47  ;;  %v9064_v23 = vpop.f32.mrb[216].mxu0 }
 0x39a   : > { %v9065_v11 = vpop.f32.mrb[217].mxu0 }
 0x39b   : > { %7388 = vst [vmem:[%s10702_s18 + $0x50] sm:$0xff] %v7372_v49  ;;  %v7373_v25 = vadd.f32 %v9478_v42, %v12263_v19  ;;  %v9066_v46 = vadd.f32 %v9065_v11, %v9064_v23  ;;  %v9067_v31 = vpop.f32.mrb[218].mxu0 }
 0x39c   : > { %v9068_v18 = vpop.f32.mrb[219].mxu0 }
 0x39d   : > { %7389 = vst [vmem:[%s10702_s18 + $0x58] sm:$0xff] %v7373_v25  ;;  %v9504_v58 = vadd.f32 %v12248_v29, %v9066_v46  ;;  %v9069_v50 = vadd.f32 %v9068_v18, %v9067_v31 }
 0x39f   : > { %v9505_v14 = vadd.f32 %v9504_v58, %v7324_v55  ;;  %v9522_v12 = vadd.f32 %v12251_v60, %v9069_v50 }
 0x3a1   : > { %v7374_v63 = vadd.f32 %v9505_v14, %v12263_v19  ;;  %v9523_v53 = vadd.f32 %v9522_v12, %v7327_v4  ;;  %v9070_v56 = vpop.f32.mrb[220].mxu0 }
 0x3a2   : > { %v9071_v47 = vpop.f32.mrb[221].mxu0 }
 0x3a3   : > { %7390 = vst [vmem:[%s10702_s18 + $0x60] sm:$0xff] %v7374_v63  ;;  %v7375_v1 = vadd.f32 %v9523_v53, %v12263_v19  ;;  %v9072_v36 = vadd.f32 %v9071_v47, %v9070_v56  ;;  %v9073_v43 = vpop.f32.mrb[222].mxu0 }
 0x3a4   : > { %v9074_v29 = vpop.f32.mrb[223].mxu0 }
 0x3a5   : > { %7391 = vst [vmem:[%s10702_s18 + $0x68] sm:$0xff] %v7375_v1  ;;  %v9495_v60 = vadd.f32 %v12254_v41, %v9072_v36  ;;  %v9075_v59 = vadd.f32 %v9074_v29, %v9073_v43 }
 0x3a7   : > { %v9496_v17 = vadd.f32 %v9495_v60, %v12281_v48  ;;  %v9513_v54 = vadd.f32 %v12257_v62, %v9075_v59 }
 0x3a9   : > { %v7376_v45 = vadd.f32 %v9496_v17, %v12263_v19  ;;  %v9514_v39 = vadd.f32 %v9513_v54, %v12285_v2 }
 0x3ab   : > { %7392 = vst [vmem:[%s10702_s18 + $0x70] sm:$0xff] %v7376_v45  ;;  %v7377_v41 = vadd.f32 %v9514_v39, %v12263_v19 }
 0x3ad   : > { %7393 = vst [vmem:[%s10702_s18 + $0x78] sm:$0xff] %v7377_v41 }
 0x3ae   : > { %10388 = shalt.err (!%p10385_p2)
}
 0x3af   : > { %s10389_s10 = scalar_lea.hbm %s12325_s9, 2048  ;;  %s10393_s18 = scalar_lea.hbm %s12385_s3, 8192 }
 0x3b0   : > { %p10390_p5 = scmp.ne.s32.totalorder %s12325_s9, %s10389_s10  ;;  %p10394_p10 = scmp.lt.u32.totalorder %s12325_s9, %s12385_s3 }
 0x3b1   : > { %p10395_p11 = scmp.lt.u32.totalorder %s10393_s18, %s10389_s10  ;;  %p10397_p9 = scmp.lt.u32.totalorder %s10389_s10, %s12325_s9 }
 0x3b2   : > { %p10391_p6 = pnand %p10390_p5, %p12423_p13 }
 0x3b3   : > { %p10396_p1 = por %p10395_p11, %p10394_p10 }
 0x3b4   : > { %p10392_p7 = pneg %p10391_p6 }
 0x3b5   : > { %p10398_p12 = por %p10397_p9, %p10396_p1 }
 0x3b7   : > { %p10399_p4 = pnand %p10398_p12, %p10392_p7 }
 0x3b9   : > { %10402 = shalt.err (!%p10399_p4)
}
 0x3ba   : > { %s10482_s24 = smov 128   ;;  %s10483_s11 = smov 8  }
 0x3bb   : > { %9660 = dma.vmem_to_hbm [thread:$0]  (%p12423_p13), %s12318_s15, 2048, %s12325_s9, %s12330_s8, %s10482_s24, %s10482_s24, %s10483_s11  }
 0x3bc PF: > { %p9674_p3 = scmp.ge.s32.totalorder %s10475_s19, 2  ;;  %s7426_s4 = sand.u32 1, %s10447_s12  }
 0x3bd   : > { %p12424_p8 = scmp.ne.s32.totalorder %s12407_s27, 0  ;;  %s7427_s16 = scalar_lea.sflag [#allocation6], %s7426_s4 }
 0x3bf   : > { %p9667_p0 = pnand %p9674_p3, %p12424_p8 }
 0x3c1   : > { %10442 = dma.done.wait (!%p9667_p0), %s7427_s16, 2048  }
 0x3c2   : > { %10444 = vsyncadd (!%p9667_p0), %s7427_s16, 4294965248  ;;  %s17_s19 = sadd.s32 1, %s10475_s19   ;;  %s12425_s16 = sld [smem:[#allocation17_spill]] }
 0x3c3   : > { %p14_p2 = scmp.ge.s32.totalorder %s17_s19, 6   ;;  %s12426_s26 = sld [smem:[#allocation18_spill]] }
 0x3c4   : > { %s12427_s18 = sld [smem:[#allocation19_spill]]  ;;  %s12428_s12 = smov %s10451_s13 }
 0x3c5   : > { %s12429_s13 = smov %s10455_s14  ;;  %s12430_s14 = smov %s10583_s5 }
 0x3c6   : > { %s12431_s15 = smov %s10467_s17  ;;  %16 = sbr.rel (!%p14_p2) target bundleno = 8 (0x8), region = 96 }
 0x3c9   : > { %s12432_s17 = smov %s12426_s26 }
 0x3cd   :  { %7432 = vsyncpa [#allocation5], 1 }
 0x3ce   :  { %7434 = vsyncpa [#allocation5 + $0x1], 1 }
 0x3cf   :  { %7435 = vsyncpa [#allocation6], 1 }
 0x3d0   :  { %7437 = vsyncpa [#allocation6 + $0x1], 1 }
 0x3d1   :  { %7438 = vsyncmov [#allocation3] }
 0x3d4   :  { %s7439_s27 = vpop.sfrf %7438 }
 0x3d5   :  { %p8366_p13 = scmp.ne.s32.totalorder %s7439_s27, 0 }
 0x3d7   :  { %7443 = shalt.err (%p8366_p13)  }
 0x3d8   :  { %7445 = vsyncmov [#allocation3 + $0x1] }
 0x3db   :  { %s7446_s5 = vpop.sfrf %7445 }
 0x3dc   :  { %p8367_p5 = scmp.ne.s32.totalorder %s7446_s5, 0 }
 0x3de   :  { %7450 = shalt.err (%p8367_p5)  }

</bundles_post_ra>
